<compile_context>
chip_gen: v7x
topology: tpu7x:2x2x1
jax: 0.10.0
libtpu: 0.0.40
codegen_flags: <defaults>
</compile_context>

<pallas_src>
import functools
import math

import jax
import jax.numpy as jnp
from jax.experimental import pallas as pl
from jax.experimental.pallas import tpu as pltpu


# ----------------------------------------------------------------------------
# Fused kernel: all encoder layers + TensorAttention, whole batch in one step.
# ----------------------------------------------------------------------------
def particle_pass_kernel(x_ref, wqkv_ref, wo_ref, bqkv_ref, vecs_ref, b1_ref,
                         w1_ref, w2_ref, taw_ref, enc_ref, asg_ref, *,
                         batch, seq, num_heads, num_encoders,
                         layers_per_encoder):
    B, S, H = batch, seq, num_heads
    y = x_ref[...]                                  # (B*S, D) f32
    D = y.shape[-1]
    Dh = D // H
    scale = 1.0 / math.sqrt(Dh)
    eps = 1e-5
    cdt = w1_ref.dtype                              # MXU compute dtype (bf16)

    def layer_norm(z, g, b):
        mu = jnp.mean(z, axis=-1, keepdims=True)
        var = jnp.mean((z - mu) ** 2, axis=-1, keepdims=True)
        return (z - mu) * jax.lax.rsqrt(var + eps) * g + b

    for m in range(num_encoders):
        wqkv_m = wqkv_ref[m]                        # (3, H, D, Dh) bf16
        wq, wk, wv = wqkv_m[0], wqkv_m[1], wqkv_m[2]
        wo = wo_ref[m]                              # (H, Dh, D) bf16
        bqkv_m = bqkv_ref[m]                        # (3, H, 1, Dh) f32
        bq, bk, bv = bqkv_m[0], bqkv_m[1], bqkv_m[2]
        vecs = vecs_ref[m]                          # (6, D) f32
        bo, g1, be1, g2, be2, b2 = [vecs[i:i + 1, :] for i in range(6)]
        b1 = b1_ref[m]                              # (1, DFF) f32
        w1 = w1_ref[m]                              # (D, DFF) bf16
        w2 = w2_ref[m]                              # (DFF, D) bf16

        # Layers inside a TransformerEncoder share (initial) weights.
        for _ in range(layers_per_encoder):
            # ---- multi-head self-attention (heads handled by batched einsums,
            #      only the per-batch score/context matmuls loop over B) ------
            attn_rows = []
            for b in range(B):
                xb = y[b * S:(b + 1) * S, :].astype(cdt)        # (S, D)
                xbh = jnp.broadcast_to(xb[None, :, :], (H, S, D))
                qh = jnp.einsum('hsd,hde->hse', xbh, wq,
                                preferred_element_type=jnp.float32) + bq
                kh = jnp.einsum('hsd,hde->hse', xbh, wk,
                                preferred_element_type=jnp.float32) + bk
                vh = jnp.einsum('hsd,hde->hse', xbh, wv,
                                preferred_element_type=jnp.float32) + bv
                s = jnp.einsum('hqd,hkd->hqk', (qh * scale).astype(cdt),
                               kh.astype(cdt),
                               preferred_element_type=jnp.float32)  # (H,S,S)
                s = s - jnp.max(s, axis=-1, keepdims=True)
                p = jnp.exp(s)
                p = p * pl.reciprocal(jnp.sum(p, axis=-1, keepdims=True),
                                      approx=True)
                ctx = jnp.einsum('hqk,hkd->hqd', p.astype(cdt), vh.astype(cdt),
                                 preferred_element_type=jnp.float32)  # (H,S,Dh)
                # Output projection folded per head -> no lane-axis concat.
                ao = jnp.einsum('hqd,hde->hqe', ctx.astype(cdt), wo,
                                preferred_element_type=jnp.float32)   # (H,S,D)
                attn_rows.append(jnp.sum(ao, axis=0) + bo)            # (S, D)
            attn = jnp.concatenate(attn_rows, axis=0)                 # (B*S, D)

            # ---- residual + LayerNorm 1 (post-norm) ----------------------
            y = layer_norm(y + attn, g1, be1)

            # ---- feed-forward (relu), full batch folded into M = B*S -----
            h1 = jnp.dot(y.astype(cdt), w1,
                         preferred_element_type=jnp.float32) + b1
            h1 = jnp.maximum(h1, 0.0)
            ff = jnp.dot(h1.astype(cdt), w2,
                         preferred_element_type=jnp.float32) + b2

            # ---- residual + LayerNorm 2 ----------------------------------
            y = layer_norm(y + ff, g2, be2)

    enc_ref[...] = y                                 # (B*S, D)

    # ---- TensorAttention (fused) --------------------------------------------
    taw = taw_ref[...]                               # (D, D) f32, symmetrized
    row = jax.lax.broadcasted_iota(jnp.int32, (S, S), 0)
    col = jax.lax.broadcasted_iota(jnp.int32, (S, S), 1)
    lower = row >= col                               # tril incl. diagonal
    asg_rows = []
    for b in range(B):
        xb = y[b * S:(b + 1) * S, :]                 # (S, D) f32
        xw = jnp.dot(xb, taw, preferred_element_type=jnp.float32)    # (S, D)
        t = jnp.dot(xw, xb.T, preferred_element_type=jnp.float32)    # (S, S)
        t = jnp.where(lower, -jnp.inf, t)
        tmax = jnp.max(t, keepdims=True)             # softmax over flattened S*S
        e = jnp.exp(t - tmax)
        soft = e * pl.reciprocal(jnp.sum(e, keepdims=True), approx=True)
        asg_rows.append(soft + soft.T)               # (S, S)
    asg_ref[...] = jnp.concatenate(asg_rows, axis=0)  # (B*S, S)


# ----------------------------------------------------------------------------
# Parameter construction (PyTorch layouts) and packing into kernel layouts.
# ----------------------------------------------------------------------------
def make_encoder_module_params(key, D, DFF):
    ks = jax.random.split(key, 8)
    return {
        "in_proj_w": jax.random.normal(ks[0], (3 * D, D), jnp.float32) * 0.1,
        "in_proj_b": jax.random.normal(ks[1], (3 * D,), jnp.float32) * 0.1,
        "out_proj_w": jax.random.normal(ks[2], (D, D), jnp.float32) * 0.1,
        "out_proj_b": jax.random.normal(ks[3], (D,), jnp.float32) * 0.1,
        "w1": jax.random.normal(ks[4], (DFF, D), jnp.float32) * 0.1,
        "b1": jax.random.normal(ks[5], (DFF,), jnp.float32) * 0.1,
        "w2": jax.random.normal(ks[6], (D, DFF), jnp.float32) * 0.1,
        "b2": jax.random.normal(ks[7], (D,), jnp.float32) * 0.1,
        "ln1_g": jnp.ones((D,), jnp.float32), "ln1_b": jnp.zeros((D,), jnp.float32),
        "ln2_g": jnp.ones((D,), jnp.float32), "ln2_b": jnp.zeros((D,), jnp.float32),
    }


def pack_encoder_params(module_params, num_heads, compute_dtype=jnp.bfloat16):
    """Torch-layout params -> stacked, per-head, kernel-friendly arrays."""
    wqkv_l, wo_l, bqkv_l, vecs_l, b1_l, w1_l, w2_l = [], [], [], [], [], [], []
    for p in module_params:
        D = p["out_proj_w"].shape[0]
        DFF = p["w1"].shape[0]
        H = num_heads
        Dh = D // H
        # Torch Linear computes x @ W.T; split the projection per head.
        wq = p["in_proj_w"][0:D].T                   # (D, D)
        wk = p["in_proj_w"][D:2 * D].T
        wv = p["in_proj_w"][2 * D:3 * D].T
        per_head = lambda w: w.reshape(D, H, Dh).transpose(1, 0, 2)   # (H, D, Dh)
        wqkv_l.append(jnp.stack([per_head(wq), per_head(wk), per_head(wv)], 0))
        wo_l.append(p["out_proj_w"].T.reshape(H, Dh, D))              # (H, Dh, D)
        bqkv_l.append(p["in_proj_b"].reshape(3, H, 1, Dh))            # (3, H, 1, Dh)
        vecs_l.append(jnp.stack([p["out_proj_b"], p["ln1_g"], p["ln1_b"],
                                 p["ln2_g"], p["ln2_b"], p["b2"]], 0))  # (6, D)
        b1_l.append(p["b1"].reshape(1, DFF))
        w1_l.append(p["w1"].T)                                        # (D, DFF)
        w2_l.append(p["w2"].T)                                        # (DFF, D)
    cd = compute_dtype
    return {
        "wqkv": jnp.stack(wqkv_l).astype(cd),   # (NE, 3, H, D, Dh)
        "wo":   jnp.stack(wo_l).astype(cd),     # (NE, H, Dh, D)
        "bqkv": jnp.stack(bqkv_l),              # (NE, 3, H, 1, Dh) f32
        "vecs": jnp.stack(vecs_l),              # (NE, 6, D) f32
        "b1":   jnp.stack(b1_l),                # (NE, 1, DFF) f32
        "w1":   jnp.stack(w1_l).astype(cd),     # (NE, D, DFF)
        "w2":   jnp.stack(w2_l).astype(cd),     # (NE, DFF, D)
    }


# ----------------------------------------------------------------------------
# Wrapper: one pallas_call for the whole ParticlePass forward.
# ----------------------------------------------------------------------------
def particle_pass_forward(x, module_params, ta_weights, num_heads,
                          layers_per_encoder, compute_dtype=jnp.bfloat16):
    B, S, D = x.shape
    NE = len(module_params)
    packed = pack_encoder_params(module_params, num_heads, compute_dtype)
    w_sym = (ta_weights + ta_weights.T) * 0.5        # symmetrize in plain-JAX glue

    x_flat = x.reshape(B * S, D)                     # fold batch into rows
    args = [x_flat, packed["wqkv"], packed["wo"], packed["bqkv"],
            packed["vecs"], packed["b1"], packed["w1"], packed["w2"], w_sym]

    def full_spec(a):
        nd = a.ndim
        return pl.BlockSpec(a.shape, lambda i, _nd=nd: (0,) * _nd)

    kernel = functools.partial(
        particle_pass_kernel, batch=B, seq=S, num_heads=num_heads,
        num_encoders=NE, layers_per_encoder=layers_per_encoder)

    enc_flat, asg_flat = pl.pallas_call(
        kernel,
        out_shape=(jax.ShapeDtypeStruct((B * S, D), jnp.float32),
                   jax.ShapeDtypeStruct((B * S, S), jnp.float32)),
        grid=(1,),
        in_specs=[full_spec(a) for a in args],
        out_specs=(pl.BlockSpec((B * S, D), lambda i: (0, 0)),
                   pl.BlockSpec((B * S, S), lambda i: (0, 0))),
        compiler_params=pltpu.CompilerParams(
            dimension_semantics=("arbitrary",)),
    )(*args)

    return enc_flat.reshape(B, S, D), asg_flat.reshape(B, S, S)


# ----------------------------------------------------------------------------
if __name__ == "__main__":
    # options_file equivalent
    MODEL_DIM = 32
    NUM_HEADS = 4
    NUM_ENCODERS = 1            # num_of_particle_encoders
    LAYERS_PER_ENCODER = 2      # num_of_particle_encoder_layers
    DIM_FEEDFORWARD = 2048      # PyTorch TransformerEncoderLayer default

    B, S = 2, 8                 # batch, number of particles (sequence length)

    key = jax.random.PRNGKey(0)
    key, kx = jax.random.split(key)
    x = jax.random.normal(kx, (B, S, MODEL_DIM), jnp.float32)

    module_params = []
    for _ in range(NUM_ENCODERS):
        key, kp = jax.random.split(key)
        module_params.append(make_encoder_module_params(kp, MODEL_DIM,
                                                        DIM_FEEDFORWARD))

    key, kw = jax.random.split(key)
    ta_weights = jax.random.uniform(kw, (MODEL_DIM, MODEL_DIM), jnp.float32)

    enc_out, assignment = particle_pass_forward(
        x, module_params, ta_weights, NUM_HEADS, LAYERS_PER_ENCODER)

    jax.block_until_ready((enc_out, assignment))
    assert enc_out.shape == (B, S, MODEL_DIM)
    assert assignment.shape == (B, S, S)
    assert bool(jnp.all(jnp.isfinite(enc_out)))
    assert bool(jnp.all(jnp.isfinite(assignment)))
    print("KERNEL_OK")
</pallas_src>

<mosaic_0001>
module attributes {stable_mosaic.version = 11 : i64} {
  func.func @particle_pass_kernel(%arg0: i32, %arg1: memref<16x32xf32, #tpu.memory_space<vmem>>, %arg2: memref<1x3x4x32x8xbf16, #tpu.memory_space<vmem>>, %arg3: memref<1x4x8x32xbf16, #tpu.memory_space<vmem>>, %arg4: memref<1x3x4x1x8xf32, #tpu.memory_space<vmem>>, %arg5: memref<1x6x32xf32, #tpu.memory_space<vmem>>, %arg6: memref<1x1x2048xf32, #tpu.memory_space<vmem>>, %arg7: memref<1x32x2048xbf16, #tpu.memory_space<vmem>>, %arg8: memref<1x2048x32xbf16, #tpu.memory_space<vmem>>, %arg9: memref<32x32xf32, #tpu.memory_space<vmem>>, %arg10: memref<16x32xf32, #tpu.memory_space<vmem>>, %arg11: memref<16x8xf32, #tpu.memory_space<vmem>>) attributes {dimension_semantics = [#tpu.dimension_semantics<arbitrary>], iteration_bounds = array<i64: 1>, scalar_prefetch = 0 : i64, scratch_operands = 0 : i64, tpu.core_type = #tpu.core_type<tc>, window_params = [{pipeline_mode = #tpu.pipeline_mode<synchronous>, transform_indices = @transform_0, window_bounds = array<i64: 16, 32>}, {pipeline_mode = #tpu.pipeline_mode<synchronous>, transform_indices = @transform_1, window_bounds = array<i64: 1, 3, 4, 32, 8>}, {pipeline_mode = #tpu.pipeline_mode<synchronous>, transform_indices = @transform_2, window_bounds = array<i64: 1, 4, 8, 32>}, {pipeline_mode = #tpu.pipeline_mode<synchronous>, transform_indices = @transform_3, window_bounds = array<i64: 1, 3, 4, 1, 8>}, {pipeline_mode = #tpu.pipeline_mode<synchronous>, transform_indices = @transform_4, window_bounds = array<i64: 1, 6, 32>}, {pipeline_mode = #tpu.pipeline_mode<synchronous>, transform_indices = @transform_5, window_bounds = array<i64: 1, 1, 2048>}, {pipeline_mode = #tpu.pipeline_mode<synchronous>, transform_indices = @transform_6, window_bounds = array<i64: 1, 32, 2048>}, {pipeline_mode = #tpu.pipeline_mode<synchronous>, transform_indices = @transform_7, window_bounds = array<i64: 1, 2048, 32>}, {pipeline_mode = #tpu.pipeline_mode<synchronous>, transform_indices = @transform_8, window_bounds = array<i64: 32, 32>}, {pipeline_mode = #tpu.pipeline_mode<synchronous>, transform_indices = @transform_9, window_bounds = array<i64: 16, 32>}, {pipeline_mode = #tpu.pipeline_mode<synchronous>, transform_indices = @transform_10, window_bounds = array<i64: 16, 8>}]} {
    %c0 = arith.constant 0 : index
    %c0_0 = arith.constant 0 : index
    %0 = vector.load %arg1[%c0, %c0_0] : memref<16x32xf32, #tpu.memory_space<vmem>>, vector<16x32xf32>
    %c0_1 = arith.constant 0 : index
    %c0_2 = arith.constant 0 : index
    %c0_3 = arith.constant 0 : index
    %c0_4 = arith.constant 0 : index
    %c0_5 = arith.constant 0 : index
    %1 = vector.load %arg2[%c0_1, %c0_2, %c0_3, %c0_4, %c0_5] : memref<1x3x4x32x8xbf16, #tpu.memory_space<vmem>>, vector<1x3x4x32x8xbf16>
    %2 = vector.shape_cast %1 : vector<1x3x4x32x8xbf16> to vector<3x4x32x8xbf16>
    %3 = vector.extract_strided_slice %2 {offsets = [0, 0, 0, 0], sizes = [1, 4, 32, 8], strides = [1, 1, 1, 1]} : vector<3x4x32x8xbf16> to vector<1x4x32x8xbf16>
    %4 = vector.shape_cast %3 : vector<1x4x32x8xbf16> to vector<4x32x8xbf16>
    %5 = vector.extract_strided_slice %2 {offsets = [1, 0, 0, 0], sizes = [1, 4, 32, 8], strides = [1, 1, 1, 1]} : vector<3x4x32x8xbf16> to vector<1x4x32x8xbf16>
    %6 = vector.shape_cast %5 : vector<1x4x32x8xbf16> to vector<4x32x8xbf16>
    %7 = vector.extract_strided_slice %2 {offsets = [2, 0, 0, 0], sizes = [1, 4, 32, 8], strides = [1, 1, 1, 1]} : vector<3x4x32x8xbf16> to vector<1x4x32x8xbf16>
    %8 = vector.shape_cast %7 : vector<1x4x32x8xbf16> to vector<4x32x8xbf16>
    %c0_6 = arith.constant 0 : index
    %c0_7 = arith.constant 0 : index
    %c0_8 = arith.constant 0 : index
    %c0_9 = arith.constant 0 : index
    %9 = vector.load %arg3[%c0_6, %c0_7, %c0_8, %c0_9] : memref<1x4x8x32xbf16, #tpu.memory_space<vmem>>, vector<1x4x8x32xbf16>
    %10 = vector.shape_cast %9 : vector<1x4x8x32xbf16> to vector<4x8x32xbf16>
    %c0_10 = arith.constant 0 : index
    %c0_11 = arith.constant 0 : index
    %c0_12 = arith.constant 0 : index
    %c0_13 = arith.constant 0 : index
    %c0_14 = arith.constant 0 : index
    %11 = vector.load %arg4[%c0_10, %c0_11, %c0_12, %c0_13, %c0_14] : memref<1x3x4x1x8xf32, #tpu.memory_space<vmem>>, vector<1x3x4x1x8xf32>
    %12 = vector.shape_cast %11 : vector<1x3x4x1x8xf32> to vector<3x4x1x8xf32>
    %13 = vector.extract_strided_slice %12 {offsets = [0, 0, 0, 0], sizes = [1, 4, 1, 8], strides = [1, 1, 1, 1]} : vector<3x4x1x8xf32> to vector<1x4x1x8xf32>
    %14 = vector.shape_cast %13 : vector<1x4x1x8xf32> to vector<4x1x8xf32>
    %15 = vector.extract_strided_slice %12 {offsets = [1, 0, 0, 0], sizes = [1, 4, 1, 8], strides = [1, 1, 1, 1]} : vector<3x4x1x8xf32> to vector<1x4x1x8xf32>
    %16 = vector.shape_cast %15 : vector<1x4x1x8xf32> to vector<4x1x8xf32>
    %17 = vector.extract_strided_slice %12 {offsets = [2, 0, 0, 0], sizes = [1, 4, 1, 8], strides = [1, 1, 1, 1]} : vector<3x4x1x8xf32> to vector<1x4x1x8xf32>
    %18 = vector.shape_cast %17 : vector<1x4x1x8xf32> to vector<4x1x8xf32>
    %c0_15 = arith.constant 0 : index
    %c0_16 = arith.constant 0 : index
    %c0_17 = arith.constant 0 : index
    %19 = vector.load %arg5[%c0_15, %c0_16, %c0_17] : memref<1x6x32xf32, #tpu.memory_space<vmem>>, vector<1x6x32xf32>
    %20 = vector.shape_cast %19 : vector<1x6x32xf32> to vector<6x32xf32>
    %21 = vector.extract_strided_slice %20 {offsets = [0, 0], sizes = [1, 32], strides = [1, 1]} : vector<6x32xf32> to vector<1x32xf32>
    %22 = vector.extract_strided_slice %20 {offsets = [1, 0], sizes = [1, 32], strides = [1, 1]} : vector<6x32xf32> to vector<1x32xf32>
    %23 = vector.extract_strided_slice %20 {offsets = [2, 0], sizes = [1, 32], strides = [1, 1]} : vector<6x32xf32> to vector<1x32xf32>
    %24 = vector.extract_strided_slice %20 {offsets = [3, 0], sizes = [1, 32], strides = [1, 1]} : vector<6x32xf32> to vector<1x32xf32>
    %25 = vector.extract_strided_slice %20 {offsets = [4, 0], sizes = [1, 32], strides = [1, 1]} : vector<6x32xf32> to vector<1x32xf32>
    %26 = vector.extract_strided_slice %20 {offsets = [5, 0], sizes = [1, 32], strides = [1, 1]} : vector<6x32xf32> to vector<1x32xf32>
    %c0_18 = arith.constant 0 : index
    %c0_19 = arith.constant 0 : index
    %c0_20 = arith.constant 0 : index
    %27 = vector.load %arg6[%c0_18, %c0_19, %c0_20] : memref<1x1x2048xf32, #tpu.memory_space<vmem>>, vector<1x1x2048xf32>
    %28 = vector.shape_cast %27 : vector<1x1x2048xf32> to vector<1x2048xf32>
    %c0_21 = arith.constant 0 : index
    %c0_22 = arith.constant 0 : index
    %c0_23 = arith.constant 0 : index
    %29 = vector.load %arg7[%c0_21, %c0_22, %c0_23] : memref<1x32x2048xbf16, #tpu.memory_space<vmem>>, vector<1x32x2048xbf16>
    %30 = vector.shape_cast %29 : vector<1x32x2048xbf16> to vector<32x2048xbf16>
    %c0_24 = arith.constant 0 : index
    %c0_25 = arith.constant 0 : index
    %c0_26 = arith.constant 0 : index
    %31 = vector.load %arg8[%c0_24, %c0_25, %c0_26] : memref<1x2048x32xbf16, #tpu.memory_space<vmem>>, vector<1x2048x32xbf16>
    %32 = vector.shape_cast %31 : vector<1x2048x32xbf16> to vector<2048x32xbf16>
    %33 = vector.extract_strided_slice %0 {offsets = [0, 0], sizes = [8, 32], strides = [1, 1]} : vector<16x32xf32> to vector<8x32xf32>
    %34 = arith.truncf %33 : vector<8x32xf32> to vector<8x32xbf16>
    %35 = vector.shape_cast %34 : vector<8x32xbf16> to vector<1x8x32xbf16>
    %36 = vector.shape_cast %35 : vector<1x8x32xbf16> to vector<1x8x32xbf16>
    %37 = vector.broadcast %36 : vector<1x8x32xbf16> to vector<4x8x32xbf16>
    "tpu.trace_start"() <{level = 10 : i32, message = "hsd,hde->hse"}> : () -> ()
    %cst = arith.constant dense<0.000000e+00> : vector<4x8x8xf32>
    %38 = tpu.matmul %37, %4, %cst {dimension_numbers = #tpu.dot_dimension_numbers<[2], [1], [1], [2], [0, 0, 0, 1, 1, 2], [0], [0]>} : vector<4x8x32xbf16>, vector<4x32x8xbf16>, vector<4x8x8xf32> -> vector<4x8x8xf32>
    "tpu.trace_stop"() : () -> ()
    %39 = vector.broadcast %14 : vector<4x1x8xf32> to vector<4x8x8xf32>
    %40 = arith.addf %38, %39 : vector<4x8x8xf32>
    "tpu.trace_start"() <{level = 10 : i32, message = "hsd,hde->hse"}> : () -> ()
    %cst_27 = arith.constant dense<0.000000e+00> : vector<4x8x8xf32>
    %41 = tpu.matmul %37, %6, %cst_27 {dimension_numbers = #tpu.dot_dimension_numbers<[2], [1], [1], [2], [0, 0, 0, 1, 1, 2], [0], [0]>} : vector<4x8x32xbf16>, vector<4x32x8xbf16>, vector<4x8x8xf32> -> vector<4x8x8xf32>
    "tpu.trace_stop"() : () -> ()
    %42 = vector.broadcast %16 : vector<4x1x8xf32> to vector<4x8x8xf32>
    %43 = arith.addf %41, %42 : vector<4x8x8xf32>
    "tpu.trace_start"() <{level = 10 : i32, message = "hsd,hde->hse"}> : () -> ()
    %cst_28 = arith.constant dense<0.000000e+00> : vector<4x8x8xf32>
    %44 = tpu.matmul %37, %8, %cst_28 {dimension_numbers = #tpu.dot_dimension_numbers<[2], [1], [1], [2], [0, 0, 0, 1, 1, 2], [0], [0]>} : vector<4x8x32xbf16>, vector<4x32x8xbf16>, vector<4x8x8xf32> -> vector<4x8x8xf32>
    "tpu.trace_stop"() : () -> ()
    %45 = vector.broadcast %18 : vector<4x1x8xf32> to vector<4x8x8xf32>
    %46 = arith.addf %44, %45 : vector<4x8x8xf32>
    %cst_29 = arith.constant 0.353553385 : f32
    %47 = vector.broadcast %cst_29 : f32 to vector<4x8x8xf32>
    %48 = arith.mulf %40, %47 : vector<4x8x8xf32>
    %49 = arith.truncf %48 : vector<4x8x8xf32> to vector<4x8x8xbf16>
    %50 = arith.truncf %43 : vector<4x8x8xf32> to vector<4x8x8xbf16>
    "tpu.trace_start"() <{level = 10 : i32, message = "hqd,hkd->hqk"}> : () -> ()
    %cst_30 = arith.constant dense<0.000000e+00> : vector<4x8x8xf32>
    %51 = tpu.matmul %49, %50, %cst_30 {dimension_numbers = #tpu.dot_dimension_numbers<[2], [2], [1], [1], [0, 0, 0, 1, 1, 1], [0], [0]>} : vector<4x8x8xbf16>, vector<4x8x8xbf16>, vector<4x8x8xf32> -> vector<4x8x8xf32>
    "tpu.trace_stop"() : () -> ()
    %cst_31 = arith.constant dense<0xFF800000> : vector<4x8xf32>
    %52 = vector.multi_reduction <maximumf>, %51, %cst_31 [2] : vector<4x8x8xf32> to vector<4x8xf32>
    %53 = vector.shape_cast %52 : vector<4x8xf32> to vector<4x8x1xf32>
    %54 = vector.broadcast %53 : vector<4x8x1xf32> to vector<4x8x8xf32>
    %55 = arith.subf %51, %54 : vector<4x8x8xf32>
    %56 = math.exp %55 : vector<4x8x8xf32>
    %cst_32 = arith.constant dense<0.000000e+00> : vector<4x8xf32>
    %57 = vector.multi_reduction <add>, %56, %cst_32 [2] : vector<4x8x8xf32> to vector<4x8xf32>
    %58 = vector.shape_cast %57 : vector<4x8xf32> to vector<4x8x1xf32>
    %59 = tpu.reciprocal %58 {approx = true} : vector<4x8x1xf32> -> vector<4x8x1xf32>
    %60 = vector.broadcast %59 : vector<4x8x1xf32> to vector<4x8x8xf32>
    %61 = arith.mulf %56, %60 : vector<4x8x8xf32>
    %62 = arith.truncf %61 : vector<4x8x8xf32> to vector<4x8x8xbf16>
    %63 = arith.truncf %46 : vector<4x8x8xf32> to vector<4x8x8xbf16>
    "tpu.trace_start"() <{level = 10 : i32, message = "hqk,hkd->hqd"}> : () -> ()
    %cst_33 = arith.constant dense<0.000000e+00> : vector<4x8x8xf32>
    %64 = tpu.matmul %62, %63, %cst_33 {dimension_numbers = #tpu.dot_dimension_numbers<[2], [1], [1], [2], [0, 0, 0, 1, 1, 2], [0], [0]>} : vector<4x8x8xbf16>, vector<4x8x8xbf16>, vector<4x8x8xf32> -> vector<4x8x8xf32>
    "tpu.trace_stop"() : () -> ()
    %65 = arith.truncf %64 : vector<4x8x8xf32> to vector<4x8x8xbf16>
    "tpu.trace_start"() <{level = 10 : i32, message = "hqd,hde->hqe"}> : () -> ()
    %cst_34 = arith.constant dense<0.000000e+00> : vector<4x8x32xf32>
    %66 = tpu.matmul %65, %10, %cst_34 {dimension_numbers = #tpu.dot_dimension_numbers<[2], [1], [1], [2], [0, 0, 0, 1, 1, 2], [0], [0]>} : vector<4x8x8xbf16>, vector<4x8x32xbf16>, vector<4x8x32xf32> -> vector<4x8x32xf32>
    "tpu.trace_stop"() : () -> ()
    %cst_35 = arith.constant dense<0.000000e+00> : vector<8x32xf32>
    %67 = vector.multi_reduction <add>, %66, %cst_35 [0] : vector<4x8x32xf32> to vector<8x32xf32>
    %68 = vector.broadcast %21 : vector<1x32xf32> to vector<8x32xf32>
    %69 = arith.addf %67, %68 : vector<8x32xf32>
    %70 = vector.extract_strided_slice %0 {offsets = [8, 0], sizes = [8, 32], strides = [1, 1]} : vector<16x32xf32> to vector<8x32xf32>
    %71 = arith.truncf %70 : vector<8x32xf32> to vector<8x32xbf16>
    %72 = vector.shape_cast %71 : vector<8x32xbf16> to vector<1x8x32xbf16>
    %73 = vector.shape_cast %72 : vector<1x8x32xbf16> to vector<1x8x32xbf16>
    %74 = vector.broadcast %73 : vector<1x8x32xbf16> to vector<4x8x32xbf16>
    "tpu.trace_start"() <{level = 10 : i32, message = "hsd,hde->hse"}> : () -> ()
    %cst_36 = arith.constant dense<0.000000e+00> : vector<4x8x8xf32>
    %75 = tpu.matmul %74, %4, %cst_36 {dimension_numbers = #tpu.dot_dimension_numbers<[2], [1], [1], [2], [0, 0, 0, 1, 1, 2], [0], [0]>} : vector<4x8x32xbf16>, vector<4x32x8xbf16>, vector<4x8x8xf32> -> vector<4x8x8xf32>
    "tpu.trace_stop"() : () -> ()
    %76 = vector.broadcast %14 : vector<4x1x8xf32> to vector<4x8x8xf32>
    %77 = arith.addf %75, %76 : vector<4x8x8xf32>
    "tpu.trace_start"() <{level = 10 : i32, message = "hsd,hde->hse"}> : () -> ()
    %cst_37 = arith.constant dense<0.000000e+00> : vector<4x8x8xf32>
    %78 = tpu.matmul %74, %6, %cst_37 {dimension_numbers = #tpu.dot_dimension_numbers<[2], [1], [1], [2], [0, 0, 0, 1, 1, 2], [0], [0]>} : vector<4x8x32xbf16>, vector<4x32x8xbf16>, vector<4x8x8xf32> -> vector<4x8x8xf32>
    "tpu.trace_stop"() : () -> ()
    %79 = vector.broadcast %16 : vector<4x1x8xf32> to vector<4x8x8xf32>
    %80 = arith.addf %78, %79 : vector<4x8x8xf32>
    "tpu.trace_start"() <{level = 10 : i32, message = "hsd,hde->hse"}> : () -> ()
    %cst_38 = arith.constant dense<0.000000e+00> : vector<4x8x8xf32>
    %81 = tpu.matmul %74, %8, %cst_38 {dimension_numbers = #tpu.dot_dimension_numbers<[2], [1], [1], [2], [0, 0, 0, 1, 1, 2], [0], [0]>} : vector<4x8x32xbf16>, vector<4x32x8xbf16>, vector<4x8x8xf32> -> vector<4x8x8xf32>
    "tpu.trace_stop"() : () -> ()
    %82 = vector.broadcast %18 : vector<4x1x8xf32> to vector<4x8x8xf32>
    %83 = arith.addf %81, %82 : vector<4x8x8xf32>
    %cst_39 = arith.constant 0.353553385 : f32
    %84 = vector.broadcast %cst_39 : f32 to vector<4x8x8xf32>
    %85 = arith.mulf %77, %84 : vector<4x8x8xf32>
    %86 = arith.truncf %85 : vector<4x8x8xf32> to vector<4x8x8xbf16>
    %87 = arith.truncf %80 : vector<4x8x8xf32> to vector<4x8x8xbf16>
    "tpu.trace_start"() <{level = 10 : i32, message = "hqd,hkd->hqk"}> : () -> ()
    %cst_40 = arith.constant dense<0.000000e+00> : vector<4x8x8xf32>
    %88 = tpu.matmul %86, %87, %cst_40 {dimension_numbers = #tpu.dot_dimension_numbers<[2], [2], [1], [1], [0, 0, 0, 1, 1, 1], [0], [0]>} : vector<4x8x8xbf16>, vector<4x8x8xbf16>, vector<4x8x8xf32> -> vector<4x8x8xf32>
    "tpu.trace_stop"() : () -> ()
    %cst_41 = arith.constant dense<0xFF800000> : vector<4x8xf32>
    %89 = vector.multi_reduction <maximumf>, %88, %cst_41 [2] : vector<4x8x8xf32> to vector<4x8xf32>
    %90 = vector.shape_cast %89 : vector<4x8xf32> to vector<4x8x1xf32>
    %91 = vector.broadcast %90 : vector<4x8x1xf32> to vector<4x8x8xf32>
    %92 = arith.subf %88, %91 : vector<4x8x8xf32>
    %93 = math.exp %92 : vector<4x8x8xf32>
    %cst_42 = arith.constant dense<0.000000e+00> : vector<4x8xf32>
    %94 = vector.multi_reduction <add>, %93, %cst_42 [2] : vector<4x8x8xf32> to vector<4x8xf32>
    %95 = vector.shape_cast %94 : vector<4x8xf32> to vector<4x8x1xf32>
    %96 = tpu.reciprocal %95 {approx = true} : vector<4x8x1xf32> -> vector<4x8x1xf32>
    %97 = vector.broadcast %96 : vector<4x8x1xf32> to vector<4x8x8xf32>
    %98 = arith.mulf %93, %97 : vector<4x8x8xf32>
    %99 = arith.truncf %98 : vector<4x8x8xf32> to vector<4x8x8xbf16>
    %100 = arith.truncf %83 : vector<4x8x8xf32> to vector<4x8x8xbf16>
    "tpu.trace_start"() <{level = 10 : i32, message = "hqk,hkd->hqd"}> : () -> ()
    %cst_43 = arith.constant dense<0.000000e+00> : vector<4x8x8xf32>
    %101 = tpu.matmul %99, %100, %cst_43 {dimension_numbers = #tpu.dot_dimension_numbers<[2], [1], [1], [2], [0, 0, 0, 1, 1, 2], [0], [0]>} : vector<4x8x8xbf16>, vector<4x8x8xbf16>, vector<4x8x8xf32> -> vector<4x8x8xf32>
    "tpu.trace_stop"() : () -> ()
    %102 = arith.truncf %101 : vector<4x8x8xf32> to vector<4x8x8xbf16>
    "tpu.trace_start"() <{level = 10 : i32, message = "hqd,hde->hqe"}> : () -> ()
    %cst_44 = arith.constant dense<0.000000e+00> : vector<4x8x32xf32>
    %103 = tpu.matmul %102, %10, %cst_44 {dimension_numbers = #tpu.dot_dimension_numbers<[2], [1], [1], [2], [0, 0, 0, 1, 1, 2], [0], [0]>} : vector<4x8x8xbf16>, vector<4x8x32xbf16>, vector<4x8x32xf32> -> vector<4x8x32xf32>
    "tpu.trace_stop"() : () -> ()
    %cst_45 = arith.constant dense<0.000000e+00> : vector<8x32xf32>
    %104 = vector.multi_reduction <add>, %103, %cst_45 [0] : vector<4x8x32xf32> to vector<8x32xf32>
    %105 = vector.broadcast %21 : vector<1x32xf32> to vector<8x32xf32>
    %106 = arith.addf %104, %105 : vector<8x32xf32>
    %107 = tpu.concatenate %69, %106 in 0 : vector<8x32xf32>, vector<8x32xf32> -> vector<16x32xf32>
    %108 = arith.addf %0, %107 : vector<16x32xf32>
    %cst_46 = arith.constant dense<0.000000e+00> : vector<16xf32>
    %109 = vector.multi_reduction <add>, %108, %cst_46 [1] : vector<16x32xf32> to vector<16xf32>
    %110 = vector.shape_cast %109 : vector<16xf32> to vector<16x1xf32>
    %cst_47 = arith.constant 3.200000e+01 : f32
    %111 = vector.broadcast %cst_47 : f32 to vector<16x1xf32>
    %112 = arith.divf %110, %111 : vector<16x1xf32>
    %113 = vector.broadcast %112 : vector<16x1xf32> to vector<16x32xf32>
    %114 = arith.subf %108, %113 : vector<16x32xf32>
    %115 = arith.mulf %114, %114 : vector<16x32xf32>
    %cst_48 = arith.constant dense<0.000000e+00> : vector<16xf32>
    %116 = vector.multi_reduction <add>, %115, %cst_48 [1] : vector<16x32xf32> to vector<16xf32>
    %117 = vector.shape_cast %116 : vector<16xf32> to vector<16x1xf32>
    %cst_49 = arith.constant 3.200000e+01 : f32
    %118 = vector.broadcast %cst_49 : f32 to vector<16x1xf32>
    %119 = arith.divf %117, %118 : vector<16x1xf32>
    %120 = vector.broadcast %112 : vector<16x1xf32> to vector<16x32xf32>
    %121 = arith.subf %108, %120 : vector<16x32xf32>
    %cst_50 = arith.constant 9.99999974E-6 : f32
    %122 = vector.broadcast %cst_50 : f32 to vector<16x1xf32>
    %123 = arith.addf %119, %122 : vector<16x1xf32>
    %124 = math.rsqrt %123 : vector<16x1xf32>
    %125 = vector.broadcast %124 : vector<16x1xf32> to vector<16x32xf32>
    %126 = arith.mulf %121, %125 : vector<16x32xf32>
    %127 = vector.broadcast %22 : vector<1x32xf32> to vector<16x32xf32>
    %128 = arith.mulf %126, %127 : vector<16x32xf32>
    %129 = vector.broadcast %23 : vector<1x32xf32> to vector<16x32xf32>
    %130 = arith.addf %128, %129 : vector<16x32xf32>
    %131 = arith.truncf %130 : vector<16x32xf32> to vector<16x32xbf16>
    %cst_51 = arith.constant dense<0.000000e+00> : vector<16x2048xf32>
    %132 = tpu.matmul %131, %30, %cst_51 {dimension_numbers = #tpu.dot_dimension_numbers<[1], [0], [0], [1], [0, 0, 1, 1], [], []>} : vector<16x32xbf16>, vector<32x2048xbf16>, vector<16x2048xf32> -> vector<16x2048xf32>
    %133 = vector.broadcast %28 : vector<1x2048xf32> to vector<16x2048xf32>
    %134 = arith.addf %132, %133 : vector<16x2048xf32>
    %cst_52 = arith.constant 0.000000e+00 : f32
    %135 = vector.broadcast %cst_52 : f32 to vector<16x2048xf32>
    %136 = arith.maximumf %134, %135 : vector<16x2048xf32>
    %137 = arith.truncf %136 : vector<16x2048xf32> to vector<16x2048xbf16>
    %cst_53 = arith.constant dense<0.000000e+00> : vector<16x32xf32>
    %138 = tpu.matmul %137, %32, %cst_53 {dimension_numbers = #tpu.dot_dimension_numbers<[1], [0], [0], [1], [0, 0, 1, 1], [], []>} : vector<16x2048xbf16>, vector<2048x32xbf16>, vector<16x32xf32> -> vector<16x32xf32>
    %139 = vector.broadcast %26 : vector<1x32xf32> to vector<16x32xf32>
    %140 = arith.addf %138, %139 : vector<16x32xf32>
    %141 = arith.addf %130, %140 : vector<16x32xf32>
    %cst_54 = arith.constant dense<0.000000e+00> : vector<16xf32>
    %142 = vector.multi_reduction <add>, %141, %cst_54 [1] : vector<16x32xf32> to vector<16xf32>
    %143 = vector.shape_cast %142 : vector<16xf32> to vector<16x1xf32>
    %cst_55 = arith.constant 3.200000e+01 : f32
    %144 = vector.broadcast %cst_55 : f32 to vector<16x1xf32>
    %145 = arith.divf %143, %144 : vector<16x1xf32>
    %146 = vector.broadcast %145 : vector<16x1xf32> to vector<16x32xf32>
    %147 = arith.subf %141, %146 : vector<16x32xf32>
    %148 = arith.mulf %147, %147 : vector<16x32xf32>
    %cst_56 = arith.constant dense<0.000000e+00> : vector<16xf32>
    %149 = vector.multi_reduction <add>, %148, %cst_56 [1] : vector<16x32xf32> to vector<16xf32>
    %150 = vector.shape_cast %149 : vector<16xf32> to vector<16x1xf32>
    %cst_57 = arith.constant 3.200000e+01 : f32
    %151 = vector.broadcast %cst_57 : f32 to vector<16x1xf32>
    %152 = arith.divf %150, %151 : vector<16x1xf32>
    %153 = vector.broadcast %145 : vector<16x1xf32> to vector<16x32xf32>
    %154 = arith.subf %141, %153 : vector<16x32xf32>
    %cst_58 = arith.constant 9.99999974E-6 : f32
    %155 = vector.broadcast %cst_58 : f32 to vector<16x1xf32>
    %156 = arith.addf %152, %155 : vector<16x1xf32>
    %157 = math.rsqrt %156 : vector<16x1xf32>
    %158 = vector.broadcast %157 : vector<16x1xf32> to vector<16x32xf32>
    %159 = arith.mulf %154, %158 : vector<16x32xf32>
    %160 = vector.broadcast %24 : vector<1x32xf32> to vector<16x32xf32>
    %161 = arith.mulf %159, %160 : vector<16x32xf32>
    %162 = vector.broadcast %25 : vector<1x32xf32> to vector<16x32xf32>
    %163 = arith.addf %161, %162 : vector<16x32xf32>
    %164 = vector.extract_strided_slice %163 {offsets = [0, 0], sizes = [8, 32], strides = [1, 1]} : vector<16x32xf32> to vector<8x32xf32>
    %165 = arith.truncf %164 : vector<8x32xf32> to vector<8x32xbf16>
    %166 = vector.shape_cast %165 : vector<8x32xbf16> to vector<1x8x32xbf16>
    %167 = vector.shape_cast %166 : vector<1x8x32xbf16> to vector<1x8x32xbf16>
    %168 = vector.broadcast %167 : vector<1x8x32xbf16> to vector<4x8x32xbf16>
    "tpu.trace_start"() <{level = 10 : i32, message = "hsd,hde->hse"}> : () -> ()
    %cst_59 = arith.constant dense<0.000000e+00> : vector<4x8x8xf32>
    %169 = tpu.matmul %168, %4, %cst_59 {dimension_numbers = #tpu.dot_dimension_numbers<[2], [1], [1], [2], [0, 0, 0, 1, 1, 2], [0], [0]>} : vector<4x8x32xbf16>, vector<4x32x8xbf16>, vector<4x8x8xf32> -> vector<4x8x8xf32>
    "tpu.trace_stop"() : () -> ()
    %170 = vector.broadcast %14 : vector<4x1x8xf32> to vector<4x8x8xf32>
    %171 = arith.addf %169, %170 : vector<4x8x8xf32>
    "tpu.trace_start"() <{level = 10 : i32, message = "hsd,hde->hse"}> : () -> ()
    %cst_60 = arith.constant dense<0.000000e+00> : vector<4x8x8xf32>
    %172 = tpu.matmul %168, %6, %cst_60 {dimension_numbers = #tpu.dot_dimension_numbers<[2], [1], [1], [2], [0, 0, 0, 1, 1, 2], [0], [0]>} : vector<4x8x32xbf16>, vector<4x32x8xbf16>, vector<4x8x8xf32> -> vector<4x8x8xf32>
    "tpu.trace_stop"() : () -> ()
    %173 = vector.broadcast %16 : vector<4x1x8xf32> to vector<4x8x8xf32>
    %174 = arith.addf %172, %173 : vector<4x8x8xf32>
    "tpu.trace_start"() <{level = 10 : i32, message = "hsd,hde->hse"}> : () -> ()
    %cst_61 = arith.constant dense<0.000000e+00> : vector<4x8x8xf32>
    %175 = tpu.matmul %168, %8, %cst_61 {dimension_numbers = #tpu.dot_dimension_numbers<[2], [1], [1], [2], [0, 0, 0, 1, 1, 2], [0], [0]>} : vector<4x8x32xbf16>, vector<4x32x8xbf16>, vector<4x8x8xf32> -> vector<4x8x8xf32>
    "tpu.trace_stop"() : () -> ()
    %176 = vector.broadcast %18 : vector<4x1x8xf32> to vector<4x8x8xf32>
    %177 = arith.addf %175, %176 : vector<4x8x8xf32>
    %cst_62 = arith.constant 0.353553385 : f32
    %178 = vector.broadcast %cst_62 : f32 to vector<4x8x8xf32>
    %179 = arith.mulf %171, %178 : vector<4x8x8xf32>
    %180 = arith.truncf %179 : vector<4x8x8xf32> to vector<4x8x8xbf16>
    %181 = arith.truncf %174 : vector<4x8x8xf32> to vector<4x8x8xbf16>
    "tpu.trace_start"() <{level = 10 : i32, message = "hqd,hkd->hqk"}> : () -> ()
    %cst_63 = arith.constant dense<0.000000e+00> : vector<4x8x8xf32>
    %182 = tpu.matmul %180, %181, %cst_63 {dimension_numbers = #tpu.dot_dimension_numbers<[2], [2], [1], [1], [0, 0, 0, 1, 1, 1], [0], [0]>} : vector<4x8x8xbf16>, vector<4x8x8xbf16>, vector<4x8x8xf32> -> vector<4x8x8xf32>
    "tpu.trace_stop"() : () -> ()
    %cst_64 = arith.constant dense<0xFF800000> : vector<4x8xf32>
    %183 = vector.multi_reduction <maximumf>, %182, %cst_64 [2] : vector<4x8x8xf32> to vector<4x8xf32>
    %184 = vector.shape_cast %183 : vector<4x8xf32> to vector<4x8x1xf32>
    %185 = vector.broadcast %184 : vector<4x8x1xf32> to vector<4x8x8xf32>
    %186 = arith.subf %182, %185 : vector<4x8x8xf32>
    %187 = math.exp %186 : vector<4x8x8xf32>
    %cst_65 = arith.constant dense<0.000000e+00> : vector<4x8xf32>
    %188 = vector.multi_reduction <add>, %187, %cst_65 [2] : vector<4x8x8xf32> to vector<4x8xf32>
    %189 = vector.shape_cast %188 : vector<4x8xf32> to vector<4x8x1xf32>
    %190 = tpu.reciprocal %189 {approx = true} : vector<4x8x1xf32> -> vector<4x8x1xf32>
    %191 = vector.broadcast %190 : vector<4x8x1xf32> to vector<4x8x8xf32>
    %192 = arith.mulf %187, %191 : vector<4x8x8xf32>
    %193 = arith.truncf %192 : vector<4x8x8xf32> to vector<4x8x8xbf16>
    %194 = arith.truncf %177 : vector<4x8x8xf32> to vector<4x8x8xbf16>
    "tpu.trace_start"() <{level = 10 : i32, message = "hqk,hkd->hqd"}> : () -> ()
    %cst_66 = arith.constant dense<0.000000e+00> : vector<4x8x8xf32>
    %195 = tpu.matmul %193, %194, %cst_66 {dimension_numbers = #tpu.dot_dimension_numbers<[2], [1], [1], [2], [0, 0, 0, 1, 1, 2], [0], [0]>} : vector<4x8x8xbf16>, vector<4x8x8xbf16>, vector<4x8x8xf32> -> vector<4x8x8xf32>
    "tpu.trace_stop"() : () -> ()
    %196 = arith.truncf %195 : vector<4x8x8xf32> to vector<4x8x8xbf16>
    "tpu.trace_start"() <{level = 10 : i32, message = "hqd,hde->hqe"}> : () -> ()
    %cst_67 = arith.constant dense<0.000000e+00> : vector<4x8x32xf32>
    %197 = tpu.matmul %196, %10, %cst_67 {dimension_numbers = #tpu.dot_dimension_numbers<[2], [1], [1], [2], [0, 0, 0, 1, 1, 2], [0], [0]>} : vector<4x8x8xbf16>, vector<4x8x32xbf16>, vector<4x8x32xf32> -> vector<4x8x32xf32>
    "tpu.trace_stop"() : () -> ()
    %cst_68 = arith.constant dense<0.000000e+00> : vector<8x32xf32>
    %198 = vector.multi_reduction <add>, %197, %cst_68 [0] : vector<4x8x32xf32> to vector<8x32xf32>
    %199 = vector.broadcast %21 : vector<1x32xf32> to vector<8x32xf32>
    %200 = arith.addf %198, %199 : vector<8x32xf32>
    %201 = vector.extract_strided_slice %163 {offsets = [8, 0], sizes = [8, 32], strides = [1, 1]} : vector<16x32xf32> to vector<8x32xf32>
    %202 = arith.truncf %201 : vector<8x32xf32> to vector<8x32xbf16>
    %203 = vector.shape_cast %202 : vector<8x32xbf16> to vector<1x8x32xbf16>
    %204 = vector.shape_cast %203 : vector<1x8x32xbf16> to vector<1x8x32xbf16>
    %205 = vector.broadcast %204 : vector<1x8x32xbf16> to vector<4x8x32xbf16>
    "tpu.trace_start"() <{level = 10 : i32, message = "hsd,hde->hse"}> : () -> ()
    %cst_69 = arith.constant dense<0.000000e+00> : vector<4x8x8xf32>
    %206 = tpu.matmul %205, %4, %cst_69 {dimension_numbers = #tpu.dot_dimension_numbers<[2], [1], [1], [2], [0, 0, 0, 1, 1, 2], [0], [0]>} : vector<4x8x32xbf16>, vector<4x32x8xbf16>, vector<4x8x8xf32> -> vector<4x8x8xf32>
    "tpu.trace_stop"() : () -> ()
    %207 = vector.broadcast %14 : vector<4x1x8xf32> to vector<4x8x8xf32>
    %208 = arith.addf %206, %207 : vector<4x8x8xf32>
    "tpu.trace_start"() <{level = 10 : i32, message = "hsd,hde->hse"}> : () -> ()
    %cst_70 = arith.constant dense<0.000000e+00> : vector<4x8x8xf32>
    %209 = tpu.matmul %205, %6, %cst_70 {dimension_numbers = #tpu.dot_dimension_numbers<[2], [1], [1], [2], [0, 0, 0, 1, 1, 2], [0], [0]>} : vector<4x8x32xbf16>, vector<4x32x8xbf16>, vector<4x8x8xf32> -> vector<4x8x8xf32>
    "tpu.trace_stop"() : () -> ()
    %210 = vector.broadcast %16 : vector<4x1x8xf32> to vector<4x8x8xf32>
    %211 = arith.addf %209, %210 : vector<4x8x8xf32>
    "tpu.trace_start"() <{level = 10 : i32, message = "hsd,hde->hse"}> : () -> ()
    %cst_71 = arith.constant dense<0.000000e+00> : vector<4x8x8xf32>
    %212 = tpu.matmul %205, %8, %cst_71 {dimension_numbers = #tpu.dot_dimension_numbers<[2], [1], [1], [2], [0, 0, 0, 1, 1, 2], [0], [0]>} : vector<4x8x32xbf16>, vector<4x32x8xbf16>, vector<4x8x8xf32> -> vector<4x8x8xf32>
    "tpu.trace_stop"() : () -> ()
    %213 = vector.broadcast %18 : vector<4x1x8xf32> to vector<4x8x8xf32>
    %214 = arith.addf %212, %213 : vector<4x8x8xf32>
    %cst_72 = arith.constant 0.353553385 : f32
    %215 = vector.broadcast %cst_72 : f32 to vector<4x8x8xf32>
    %216 = arith.mulf %208, %215 : vector<4x8x8xf32>
    %217 = arith.truncf %216 : vector<4x8x8xf32> to vector<4x8x8xbf16>
    %218 = arith.truncf %211 : vector<4x8x8xf32> to vector<4x8x8xbf16>
    "tpu.trace_start"() <{level = 10 : i32, message = "hqd,hkd->hqk"}> : () -> ()
    %cst_73 = arith.constant dense<0.000000e+00> : vector<4x8x8xf32>
    %219 = tpu.matmul %217, %218, %cst_73 {dimension_numbers = #tpu.dot_dimension_numbers<[2], [2], [1], [1], [0, 0, 0, 1, 1, 1], [0], [0]>} : vector<4x8x8xbf16>, vector<4x8x8xbf16>, vector<4x8x8xf32> -> vector<4x8x8xf32>
    "tpu.trace_stop"() : () -> ()
    %cst_74 = arith.constant dense<0xFF800000> : vector<4x8xf32>
    %220 = vector.multi_reduction <maximumf>, %219, %cst_74 [2] : vector<4x8x8xf32> to vector<4x8xf32>
    %221 = vector.shape_cast %220 : vector<4x8xf32> to vector<4x8x1xf32>
    %222 = vector.broadcast %221 : vector<4x8x1xf32> to vector<4x8x8xf32>
    %223 = arith.subf %219, %222 : vector<4x8x8xf32>
    %224 = math.exp %223 : vector<4x8x8xf32>
    %cst_75 = arith.constant dense<0.000000e+00> : vector<4x8xf32>
    %225 = vector.multi_reduction <add>, %224, %cst_75 [2] : vector<4x8x8xf32> to vector<4x8xf32>
    %226 = vector.shape_cast %225 : vector<4x8xf32> to vector<4x8x1xf32>
    %227 = tpu.reciprocal %226 {approx = true} : vector<4x8x1xf32> -> vector<4x8x1xf32>
    %228 = vector.broadcast %227 : vector<4x8x1xf32> to vector<4x8x8xf32>
    %229 = arith.mulf %224, %228 : vector<4x8x8xf32>
    %230 = arith.truncf %229 : vector<4x8x8xf32> to vector<4x8x8xbf16>
    %231 = arith.truncf %214 : vector<4x8x8xf32> to vector<4x8x8xbf16>
    "tpu.trace_start"() <{level = 10 : i32, message = "hqk,hkd->hqd"}> : () -> ()
    %cst_76 = arith.constant dense<0.000000e+00> : vector<4x8x8xf32>
    %232 = tpu.matmul %230, %231, %cst_76 {dimension_numbers = #tpu.dot_dimension_numbers<[2], [1], [1], [2], [0, 0, 0, 1, 1, 2], [0], [0]>} : vector<4x8x8xbf16>, vector<4x8x8xbf16>, vector<4x8x8xf32> -> vector<4x8x8xf32>
    "tpu.trace_stop"() : () -> ()
    %233 = arith.truncf %232 : vector<4x8x8xf32> to vector<4x8x8xbf16>
    "tpu.trace_start"() <{level = 10 : i32, message = "hqd,hde->hqe"}> : () -> ()
    %cst_77 = arith.constant dense<0.000000e+00> : vector<4x8x32xf32>
    %234 = tpu.matmul %233, %10, %cst_77 {dimension_numbers = #tpu.dot_dimension_numbers<[2], [1], [1], [2], [0, 0, 0, 1, 1, 2], [0], [0]>} : vector<4x8x8xbf16>, vector<4x8x32xbf16>, vector<4x8x32xf32> -> vector<4x8x32xf32>
    "tpu.trace_stop"() : () -> ()
    %cst_78 = arith.constant dense<0.000000e+00> : vector<8x32xf32>
    %235 = vector.multi_reduction <add>, %234, %cst_78 [0] : vector<4x8x32xf32> to vector<8x32xf32>
    %236 = vector.broadcast %21 : vector<1x32xf32> to vector<8x32xf32>
    %237 = arith.addf %235, %236 : vector<8x32xf32>
    %238 = tpu.concatenate %200, %237 in 0 : vector<8x32xf32>, vector<8x32xf32> -> vector<16x32xf32>
    %239 = arith.addf %163, %238 : vector<16x32xf32>
    %cst_79 = arith.constant dense<0.000000e+00> : vector<16xf32>
    %240 = vector.multi_reduction <add>, %239, %cst_79 [1] : vector<16x32xf32> to vector<16xf32>
    %241 = vector.shape_cast %240 : vector<16xf32> to vector<16x1xf32>
    %cst_80 = arith.constant 3.200000e+01 : f32
    %242 = vector.broadcast %cst_80 : f32 to vector<16x1xf32>
    %243 = arith.divf %241, %242 : vector<16x1xf32>
    %244 = vector.broadcast %243 : vector<16x1xf32> to vector<16x32xf32>
    %245 = arith.subf %239, %244 : vector<16x32xf32>
    %246 = arith.mulf %245, %245 : vector<16x32xf32>
    %cst_81 = arith.constant dense<0.000000e+00> : vector<16xf32>
    %247 = vector.multi_reduction <add>, %246, %cst_81 [1] : vector<16x32xf32> to vector<16xf32>
    %248 = vector.shape_cast %247 : vector<16xf32> to vector<16x1xf32>
    %cst_82 = arith.constant 3.200000e+01 : f32
    %249 = vector.broadcast %cst_82 : f32 to vector<16x1xf32>
    %250 = arith.divf %248, %249 : vector<16x1xf32>
    %251 = vector.broadcast %243 : vector<16x1xf32> to vector<16x32xf32>
    %252 = arith.subf %239, %251 : vector<16x32xf32>
    %cst_83 = arith.constant 9.99999974E-6 : f32
    %253 = vector.broadcast %cst_83 : f32 to vector<16x1xf32>
    %254 = arith.addf %250, %253 : vector<16x1xf32>
    %255 = math.rsqrt %254 : vector<16x1xf32>
    %256 = vector.broadcast %255 : vector<16x1xf32> to vector<16x32xf32>
    %257 = arith.mulf %252, %256 : vector<16x32xf32>
    %258 = vector.broadcast %22 : vector<1x32xf32> to vector<16x32xf32>
    %259 = arith.mulf %257, %258 : vector<16x32xf32>
    %260 = vector.broadcast %23 : vector<1x32xf32> to vector<16x32xf32>
    %261 = arith.addf %259, %260 : vector<16x32xf32>
    %262 = arith.truncf %261 : vector<16x32xf32> to vector<16x32xbf16>
    %cst_84 = arith.constant dense<0.000000e+00> : vector<16x2048xf32>
    %263 = tpu.matmul %262, %30, %cst_84 {dimension_numbers = #tpu.dot_dimension_numbers<[1], [0], [0], [1], [0, 0, 1, 1], [], []>} : vector<16x32xbf16>, vector<32x2048xbf16>, vector<16x2048xf32> -> vector<16x2048xf32>
    %264 = vector.broadcast %28 : vector<1x2048xf32> to vector<16x2048xf32>
    %265 = arith.addf %263, %264 : vector<16x2048xf32>
    %cst_85 = arith.constant 0.000000e+00 : f32
    %266 = vector.broadcast %cst_85 : f32 to vector<16x2048xf32>
    %267 = arith.maximumf %265, %266 : vector<16x2048xf32>
    %268 = arith.truncf %267 : vector<16x2048xf32> to vector<16x2048xbf16>
    %cst_86 = arith.constant dense<0.000000e+00> : vector<16x32xf32>
    %269 = tpu.matmul %268, %32, %cst_86 {dimension_numbers = #tpu.dot_dimension_numbers<[1], [0], [0], [1], [0, 0, 1, 1], [], []>} : vector<16x2048xbf16>, vector<2048x32xbf16>, vector<16x32xf32> -> vector<16x32xf32>
    %270 = vector.broadcast %26 : vector<1x32xf32> to vector<16x32xf32>
    %271 = arith.addf %269, %270 : vector<16x32xf32>
    %272 = arith.addf %261, %271 : vector<16x32xf32>
    %cst_87 = arith.constant dense<0.000000e+00> : vector<16xf32>
    %273 = vector.multi_reduction <add>, %272, %cst_87 [1] : vector<16x32xf32> to vector<16xf32>
    %274 = vector.shape_cast %273 : vector<16xf32> to vector<16x1xf32>
    %cst_88 = arith.constant 3.200000e+01 : f32
    %275 = vector.broadcast %cst_88 : f32 to vector<16x1xf32>
    %276 = arith.divf %274, %275 : vector<16x1xf32>
    %277 = vector.broadcast %276 : vector<16x1xf32> to vector<16x32xf32>
    %278 = arith.subf %272, %277 : vector<16x32xf32>
    %279 = arith.mulf %278, %278 : vector<16x32xf32>
    %cst_89 = arith.constant dense<0.000000e+00> : vector<16xf32>
    %280 = vector.multi_reduction <add>, %279, %cst_89 [1] : vector<16x32xf32> to vector<16xf32>
    %281 = vector.shape_cast %280 : vector<16xf32> to vector<16x1xf32>
    %cst_90 = arith.constant 3.200000e+01 : f32
    %282 = vector.broadcast %cst_90 : f32 to vector<16x1xf32>
    %283 = arith.divf %281, %282 : vector<16x1xf32>
    %284 = vector.broadcast %276 : vector<16x1xf32> to vector<16x32xf32>
    %285 = arith.subf %272, %284 : vector<16x32xf32>
    %cst_91 = arith.constant 9.99999974E-6 : f32
    %286 = vector.broadcast %cst_91 : f32 to vector<16x1xf32>
    %287 = arith.addf %283, %286 : vector<16x1xf32>
    %288 = math.rsqrt %287 : vector<16x1xf32>
    %289 = vector.broadcast %288 : vector<16x1xf32> to vector<16x32xf32>
    %290 = arith.mulf %285, %289 : vector<16x32xf32>
    %291 = vector.broadcast %24 : vector<1x32xf32> to vector<16x32xf32>
    %292 = arith.mulf %290, %291 : vector<16x32xf32>
    %293 = vector.broadcast %25 : vector<1x32xf32> to vector<16x32xf32>
    %294 = arith.addf %292, %293 : vector<16x32xf32>
    %c0_92 = arith.constant 0 : index
    %c0_93 = arith.constant 0 : index
    %295 = vector.load %arg10[%c0_92, %c0_93] : memref<16x32xf32, #tpu.memory_space<vmem>>, vector<16x32xf32>
    tpu.vector_store %arg10[%c0_92, %c0_93], %294 {strides = array<i32>} : memref<16x32xf32, #tpu.memory_space<vmem>>, vector<16x32xf32>,
    %c0_94 = arith.constant 0 : index
    %c0_95 = arith.constant 0 : index
    %296 = vector.load %arg9[%c0_94, %c0_95] : memref<32x32xf32, #tpu.memory_space<vmem>>, vector<32x32xf32>
    %297 = tpu.iota {dimensions = array<i32: 0>} : vector<8x8xi32>
    %298 = tpu.iota {dimensions = array<i32: 1>} : vector<8x8xi32>
    %299 = arith.cmpi sge, %297, %298 : vector<8x8xi32>
    %300 = vector.extract_strided_slice %294 {offsets = [0, 0], sizes = [8, 32], strides = [1, 1]} : vector<16x32xf32> to vector<8x32xf32>
    %cst_96 = arith.constant dense<0.000000e+00> : vector<8x32xf32>
    %301 = tpu.matmul %300, %296, %cst_96 {dimension_numbers = #tpu.dot_dimension_numbers<[1], [0], [0], [1], [0, 0, 1, 1], [], []>} : vector<8x32xf32>, vector<32x32xf32>, vector<8x32xf32> -> vector<8x32xf32>
    %302 = tpu.transpose %300, [1, 0] : vector<8x32xf32> -> vector<32x8xf32>
    %cst_97 = arith.constant dense<0.000000e+00> : vector<8x8xf32>
    %303 = tpu.matmul %301, %302, %cst_97 {dimension_numbers = #tpu.dot_dimension_numbers<[1], [0], [0], [1], [0, 0, 1, 1], [], []>} : vector<8x32xf32>, vector<32x8xf32>, vector<8x8xf32> -> vector<8x8xf32>
    %cst_98 = arith.constant 0xFF800000 : f32
    %304 = vector.broadcast %cst_98 : f32 to vector<8x8xf32>
    %305 = arith.select %299, %304, %303 : vector<8x8xi1>, vector<8x8xf32>
    %306 = vector.shape_cast %305 : vector<8x8xf32> to vector<1x8x8xf32>
    %cst_99 = arith.constant dense<0xFF800000> : vector<1xf32>
    %307 = vector.multi_reduction <maximumf>, %306, %cst_99 [1, 2] : vector<1x8x8xf32> to vector<1xf32>
    %308 = vector.shape_cast %307 : vector<1xf32> to vector<1x1x1xf32>
    %309 = vector.extract %308[0, 0, 0] : f32 from vector<1x1x1xf32>
    %310 = vector.broadcast %309 : f32 to vector<1x1xf32>
    %311 = vector.broadcast %310 : vector<1x1xf32> to vector<8x8xf32>
    %312 = arith.subf %305, %311 : vector<8x8xf32>
    %313 = math.exp %312 : vector<8x8xf32>
    %314 = vector.shape_cast %313 : vector<8x8xf32> to vector<1x8x8xf32>
    %cst_100 = arith.constant dense<0.000000e+00> : vector<1xf32>
    %315 = vector.multi_reduction <add>, %314, %cst_100 [1, 2] : vector<1x8x8xf32> to vector<1xf32>
    %316 = vector.shape_cast %315 : vector<1xf32> to vector<1x1x1xf32>
    %317 = vector.extract %316[0, 0, 0] : f32 from vector<1x1x1xf32>
    %318 = vector.broadcast %317 : f32 to vector<1x1xf32>
    %319 = tpu.reciprocal %318 {approx = true} : vector<1x1xf32> -> vector<1x1xf32>
    %320 = vector.broadcast %319 : vector<1x1xf32> to vector<8x8xf32>
    %321 = arith.mulf %313, %320 : vector<8x8xf32>
    %322 = tpu.transpose %321, [1, 0] : vector<8x8xf32> -> vector<8x8xf32>
    %323 = arith.addf %321, %322 : vector<8x8xf32>
    %324 = vector.extract_strided_slice %294 {offsets = [8, 0], sizes = [8, 32], strides = [1, 1]} : vector<16x32xf32> to vector<8x32xf32>
    %cst_101 = arith.constant dense<0.000000e+00> : vector<8x32xf32>
    %325 = tpu.matmul %324, %296, %cst_101 {dimension_numbers = #tpu.dot_dimension_numbers<[1], [0], [0], [1], [0, 0, 1, 1], [], []>} : vector<8x32xf32>, vector<32x32xf32>, vector<8x32xf32> -> vector<8x32xf32>
    %326 = tpu.transpose %324, [1, 0] : vector<8x32xf32> -> vector<32x8xf32>
    %cst_102 = arith.constant dense<0.000000e+00> : vector<8x8xf32>
    %327 = tpu.matmul %325, %326, %cst_102 {dimension_numbers = #tpu.dot_dimension_numbers<[1], [0], [0], [1], [0, 0, 1, 1], [], []>} : vector<8x32xf32>, vector<32x8xf32>, vector<8x8xf32> -> vector<8x8xf32>
    %cst_103 = arith.constant 0xFF800000 : f32
    %328 = vector.broadcast %cst_103 : f32 to vector<8x8xf32>
    %329 = arith.select %299, %328, %327 : vector<8x8xi1>, vector<8x8xf32>
    %330 = vector.shape_cast %329 : vector<8x8xf32> to vector<1x8x8xf32>
    %cst_104 = arith.constant dense<0xFF800000> : vector<1xf32>
    %331 = vector.multi_reduction <maximumf>, %330, %cst_104 [1, 2] : vector<1x8x8xf32> to vector<1xf32>
    %332 = vector.shape_cast %331 : vector<1xf32> to vector<1x1x1xf32>
    %333 = vector.extract %332[0, 0, 0] : f32 from vector<1x1x1xf32>
    %334 = vector.broadcast %333 : f32 to vector<1x1xf32>
    %335 = vector.broadcast %334 : vector<1x1xf32> to vector<8x8xf32>
    %336 = arith.subf %329, %335 : vector<8x8xf32>
    %337 = math.exp %336 : vector<8x8xf32>
    %338 = vector.shape_cast %337 : vector<8x8xf32> to vector<1x8x8xf32>
    %cst_105 = arith.constant dense<0.000000e+00> : vector<1xf32>
    %339 = vector.multi_reduction <add>, %338, %cst_105 [1, 2] : vector<1x8x8xf32> to vector<1xf32>
    %340 = vector.shape_cast %339 : vector<1xf32> to vector<1x1x1xf32>
    %341 = vector.extract %340[0, 0, 0] : f32 from vector<1x1x1xf32>
    %342 = vector.broadcast %341 : f32 to vector<1x1xf32>
    %343 = tpu.reciprocal %342 {approx = true} : vector<1x1xf32> -> vector<1x1xf32>
    %344 = vector.broadcast %343 : vector<1x1xf32> to vector<8x8xf32>
    %345 = arith.mulf %337, %344 : vector<8x8xf32>
    %346 = tpu.transpose %345, [1, 0] : vector<8x8xf32> -> vector<8x8xf32>
    %347 = arith.addf %345, %346 : vector<8x8xf32>
    %348 = tpu.concatenate %323, %347 in 0 : vector<8x8xf32>, vector<8x8xf32> -> vector<16x8xf32>
    %c0_106 = arith.constant 0 : index
    %c0_107 = arith.constant 0 : index
    %349 = vector.load %arg11[%c0_106, %c0_107] : memref<16x8xf32, #tpu.memory_space<vmem>>, vector<16x8xf32>
    tpu.vector_store %arg11[%c0_106, %c0_107], %348 {strides = array<i32>} : memref<16x8xf32, #tpu.memory_space<vmem>>, vector<16x8xf32>,
    return
  }
  func.func @transform_0(%arg0: i32) -> (i32, i32) {
    %c0_i32 = arith.constant 0 : i32
    %c0_i32_0 = arith.constant 0 : i32
    %c0_i32_1 = arith.constant 0 : i32
    return %c0_i32, %c0_i32_0 : i32, i32
  }
  func.func @transform_1(%arg0: i32) -> (i32, i32, i32, i32, i32) {
    %c0_i32 = arith.constant 0 : i32
    %c0_i32_0 = arith.constant 0 : i32
    %c0_i32_1 = arith.constant 0 : i32
    %c0_i32_2 = arith.constant 0 : i32
    %c0_i32_3 = arith.constant 0 : i32
    %c0_i32_4 = arith.constant 0 : i32
    return %c0_i32, %c0_i32_0, %c0_i32_1, %c0_i32_2, %c0_i32_3 : i32, i32, i32, i32, i32
  }
  func.func @transform_2(%arg0: i32) -> (i32, i32, i32, i32) {
    %c0_i32 = arith.constant 0 : i32
    %c0_i32_0 = arith.constant 0 : i32
    %c0_i32_1 = arith.constant 0 : i32
    %c0_i32_2 = arith.constant 0 : i32
    %c0_i32_3 = arith.constant 0 : i32
    return %c0_i32, %c0_i32_0, %c0_i32_1, %c0_i32_2 : i32, i32, i32, i32
  }
  func.func @transform_3(%arg0: i32) -> (i32, i32, i32, i32, i32) {
    %c0_i32 = arith.constant 0 : i32
    %c0_i32_0 = arith.constant 0 : i32
    %c0_i32_1 = arith.constant 0 : i32
    %c0_i32_2 = arith.constant 0 : i32
    %c0_i32_3 = arith.constant 0 : i32
    %c0_i32_4 = arith.constant 0 : i32
    return %c0_i32, %c0_i32_0, %c0_i32_1, %c0_i32_2, %c0_i32_3 : i32, i32, i32, i32, i32
  }
  func.func @transform_4(%arg0: i32) -> (i32, i32, i32) {
    %c0_i32 = arith.constant 0 : i32
    %c0_i32_0 = arith.constant 0 : i32
    %c0_i32_1 = arith.constant 0 : i32
    %c0_i32_2 = arith.constant 0 : i32
    return %c0_i32, %c0_i32_0, %c0_i32_1 : i32, i32, i32
  }
  func.func @transform_5(%arg0: i32) -> (i32, i32, i32) {
    %c0_i32 = arith.constant 0 : i32
    %c0_i32_0 = arith.constant 0 : i32
    %c0_i32_1 = arith.constant 0 : i32
    %c0_i32_2 = arith.constant 0 : i32
    return %c0_i32, %c0_i32_0, %c0_i32_1 : i32, i32, i32
  }
  func.func @transform_6(%arg0: i32) -> (i32, i32, i32) {
    %c0_i32 = arith.constant 0 : i32
    %c0_i32_0 = arith.constant 0 : i32
    %c0_i32_1 = arith.constant 0 : i32
    %c0_i32_2 = arith.constant 0 : i32
    return %c0_i32, %c0_i32_0, %c0_i32_1 : i32, i32, i32
  }
  func.func @transform_7(%arg0: i32) -> (i32, i32, i32) {
    %c0_i32 = arith.constant 0 : i32
    %c0_i32_0 = arith.constant 0 : i32
    %c0_i32_1 = arith.constant 0 : i32
    %c0_i32_2 = arith.constant 0 : i32
    return %c0_i32, %c0_i32_0, %c0_i32_1 : i32, i32, i32
  }
  func.func @transform_8(%arg0: i32) -> (i32, i32) {
    %c0_i32 = arith.constant 0 : i32
    %c0_i32_0 = arith.constant 0 : i32
    %c0_i32_1 = arith.constant 0 : i32
    return %c0_i32, %c0_i32_0 : i32, i32
  }
  func.func @transform_9(%arg0: i32) -> (i32, i32) {
    %c0_i32 = arith.constant 0 : i32
    %c0_i32_0 = arith.constant 0 : i32
    %c0_i32_1 = arith.constant 0 : i32
    return %c0_i32, %c0_i32_0 : i32, i32
  }
  func.func @transform_10(%arg0: i32) -> (i32, i32) {
    %c0_i32 = arith.constant 0 : i32
    %c0_i32_0 = arith.constant 0 : i32
    %c0_i32_1 = arith.constant 0 : i32
    return %c0_i32, %c0_i32_0 : i32, i32
  }
}

</mosaic_0001>

<bundles_post_ra>
// kernel: tpu_custom_call.1
= control target key start
LH: loop header
LB: loop body
LE: loop exit
PB: predicated region body
PF: predicated region fallthrough
CT: control target
= control target key end

     0   :  { %v12809_v1 = vmov 0.0   ;;  %vm10181_vm0 = vmmov 0   ;;  %vm430_vm1 = vcmask 261120   ;;  %s12795_s0 = inlined_call_operand.vmem [shape: f32[16,32], index: 0, kind: input, shape index: {}]   ;;  %s12796_s1 = inlined_call_operand.vmem [shape: bf16[1,3,4,32,8], index: 1, kind: input, shape index: {}]   ;;  %s12797_s2 = inlined_call_operand.vmem [shape: bf16[1,4,8,32], index: 2, kind: input, shape index: {}]   ;;  %s12798_s3 = inlined_call_operand.vmem [shape: f32[1,3,4,1,8], index: 3, kind: input, shape index: {}]   ;;  %s12799_s4 = inlined_call_operand.vmem [shape: f32[1,6,32], index: 4, kind: input, shape index: {}]   ;;  %s12800_s5 = inlined_call_operand.vmem [shape: f32[1,1,2048], index: 5, kind: input, shape index: {}]   ;;  %s12801_s6 = inlined_call_operand.vmem [shape: bf16[1,32,2048], index: 6, kind: input, shape index: {}]   ;;  %s12802_s7 = inlined_call_operand.vmem [shape: bf16[1,2048,32], index: 7, kind: input, shape index: {}]   ;;  %s12803_s8 = inlined_call_operand.vmem [shape: f32[32,32], index: 8, kind: input, shape index: {}]   ;;  %s12804_s9 = inlined_call_operand.hbm [shape: f32[16,32], index: 9, kind: output, shape index: {0}]   ;;  %s12805_s10 = inlined_call_operand.vmem [shape: f32[16,8], index: 10, kind: output, shape index: {1}]  }
   0x1   :  { %v9733_v0 = vld [vmem:[%s12796_s1] sm:$0xff]   ;;  %9002 = vmatprep.subr.bf16.mxu0 %v12809_v1  ;;  %9010 = vmatprep.subr.bf16.mxu1 %v12809_v1  ;;  %v9734_v2 = vld [vmem:[%s12796_s1 + $0x10] sm:$0xff]   ;;  %v9735_v3 = vld [vmem:[%s12796_s1 + $0x8] sm:$0xff]  }
   0x2   :  { %9003 = vmatpush3.bf16.msra.mxu0 %v9733_v0  ;;  %9006 = vmatprep.mubr.msk.bf16.mxu0 %vm10181_vm0, %v12809_v1  ;;  %v9736_v4 = vld [vmem:[%s12796_s1 + $0x18] sm:$0xff]   ;;  %v36_v5 = vld [vmem:[%s12795_s0] sm:$0xff]  ;;  %v9738_v8 = vld [vmem:[%s12796_s1 + $0x30] sm:$0xff]  }
   0x3   :  { %9011 = vmatpush3.bf16.msra.mxu1 %v9734_v2  ;;  %9004 = vmatprep.subr.bf16.mxu0 %v12809_v1  ;;  %v10265_v6 = vpack.c.bf16 %v36_v5, %v36_v5  ;;  %v9737_v7 = vld [vmem:[%s12796_s1 + $0x20] sm:$0xff]   ;;  %v9739_v9 = vld [vmem:[%s12796_s1 + $0x28] sm:$0xff]   ;;  %v9740_v10 = vld [vmem:[%s12796_s1 + $0x38] sm:$0xff]  }
   0x4   :  { %9012 = vmatprep.subr.bf16.mxu1 %v12809_v1  ;;  %9014 = vmatprep.mubr.msk.bf16.mxu1 %vm10181_vm0, %v12809_v1  ;;  %v9741_v11 = vld [vmem:[%s12796_s1 + $0x40] sm:$0xff]   ;;  %v9742_v12 = vld [vmem:[%s12796_s1 + $0x50] sm:$0xff]   ;;  %v9743_v13 = vld [vmem:[%s12796_s1 + $0x48] sm:$0xff]  }
   0x5   :  { %v9744_v14 = vld [vmem:[%s12796_s1 + $0x58] sm:$0xff]   ;;  %v9745_v15 = vld [vmem:[%s12796_s1 + $0x60] sm:$0xff]   ;;  %v9746_v16 = vld [vmem:[%s12796_s1 + $0x70] sm:$0xff]  }
   0x6   :  { %9005 = vmatpush3.bf16.msra.mxu0 %v9735_v3  ;;  %v9747_v17 = vld [vmem:[%s12796_s1 + $0x68] sm:$0xff]   ;;  %v9748_v18 = vld [vmem:[%s12796_s1 + $0x78] sm:$0xff]   ;;  %v9749_v19 = vld [vmem:[%s12796_s1 + $0x80] sm:$0xff]  }
   0x7   :  { %9013 = vmatpush3.bf16.msra.mxu1 %v9736_v4  ;;  %9018 = vmatprep.subr.bf16.mxu0 %v12809_v1  ;;  %v10356_v20 = vld [vmem:[%s12796_s1 + $0x90] sm:$0xff]   ;;  %v10362_v21 = vld [vmem:[%s12796_s1 + $0x88] sm:$0xff]   ;;  %v10369_v22 = vld [vmem:[%s12796_s1 + $0x98] sm:$0xff]  }
   0x8   :  { %9026 = vmatprep.subr.bf16.mxu1 %v12809_v1  ;;  %v10379_v23 = vld [vmem:[%s12796_s1 + $0xa0] sm:$0xff]   ;;  %v10384_v24 = vld [vmem:[%s12796_s1 + $0xb0] sm:$0xff]   ;;  %v10397_v25 = vld [vmem:[%s12796_s1 + $0xa8] sm:$0xff]  }
   0x9   :  { %9007 = vmatmul.mubr.msk.bf16.vlgmr.msra.gmra.mrb[0].mxu0 %vm430_vm1, %v10265_v6  ;;  %v10402_v26 = vld [vmem:[%s12796_s1 + $0xb8] sm:$0xff]  }
   0xa   :  { %9015 = vmatmul.mubr.msk.bf16.vlgmr.msra.gmra.mrb[0].mxu1 %vm430_vm1, %v10265_v6  ;;  %9019 = vmatpush3.bf16.msra.mxu0 %v9737_v7 }
   0xb   :  { %9027 = vmatpush3.bf16.msra.mxu1 %v9738_v8  ;;  %9020 = vmatprep.subr.bf16.mxu0 %v12809_v1 }
   0xc   :  { %9028 = vmatprep.subr.bf16.mxu1 %v12809_v1  ;;  %9022 = vmatprep.mubr.msk.bf16.mxu0 %vm10181_vm0, %v12809_v1 }
   0xd   :  { %9030 = vmatprep.mubr.msk.bf16.mxu1 %vm10181_vm0, %v12809_v1 }
   0xe   :  { %9021 = vmatpush3.bf16.msra.mxu0 %v9739_v9 }
   0xf   :  { %9029 = vmatpush3.bf16.msra.mxu1 %v9740_v10  ;;  %9034 = vmatprep.subr.bf16.mxu0 %v12809_v1 }
  0x10   :  { %9042 = vmatprep.subr.bf16.mxu1 %v12809_v1 }
  0x11   :  { %9023 = vmatmul.mubr.msk.bf16.vlgmr.msra.gmra.mrb[4].mxu0 %vm430_vm1, %v10265_v6 }
  0x12   :  { %9031 = vmatmul.mubr.msk.bf16.vlgmr.msra.gmra.mrb[4].mxu1 %vm430_vm1, %v10265_v6  ;;  %9035 = vmatpush3.bf16.msra.mxu0 %v9741_v11 }
  0x13   :  { %9043 = vmatpush3.bf16.msra.mxu1 %v9742_v12  ;;  %9036 = vmatprep.subr.bf16.mxu0 %v12809_v1 }
  0x14   :  { %9044 = vmatprep.subr.bf16.mxu1 %v12809_v1  ;;  %9038 = vmatprep.mubr.msk.bf16.mxu0 %vm10181_vm0, %v12809_v1 }
  0x15   :  { %9046 = vmatprep.mubr.msk.bf16.mxu1 %vm10181_vm0, %v12809_v1 }
  0x16   :  { %9037 = vmatpush3.bf16.msra.mxu0 %v9743_v13 }
  0x17   :  { %9045 = vmatpush3.bf16.msra.mxu1 %v9744_v14  ;;  %9050 = vmatprep.subr.bf16.mxu0 %v12809_v1 }
  0x18   :  { %9058 = vmatprep.subr.bf16.mxu1 %v12809_v1 }
  0x19   :  { %9039 = vmatmul.mubr.msk.bf16.vlgmr.msra.gmra.mrb[8].mxu0 %vm430_vm1, %v10265_v6 }
  0x1a   :  { %9047 = vmatmul.mubr.msk.bf16.vlgmr.msra.gmra.mrb[8].mxu1 %vm430_vm1, %v10265_v6  ;;  %9051 = vmatpush3.bf16.msra.mxu0 %v9745_v15 }
  0x1b   :  { %9059 = vmatpush3.bf16.msra.mxu1 %v9746_v16  ;;  %9052 = vmatprep.subr.bf16.mxu0 %v12809_v1 }
  0x1c   :  { %9060 = vmatprep.subr.bf16.mxu1 %v12809_v1  ;;  %9054 = vmatprep.mubr.msk.bf16.mxu0 %vm10181_vm0, %v12809_v1 }
  0x1d   :  { %9062 = vmatprep.mubr.msk.bf16.mxu1 %vm10181_vm0, %v12809_v1 }
  0x1e   :  { %9053 = vmatpush3.bf16.msra.mxu0 %v9747_v17 }
  0x1f   :  { %9061 = vmatpush3.bf16.msra.mxu1 %v9748_v18  ;;  %9066 = vmatprep.subr.bf16.mxu0 %v12809_v1 }
  0x20   :  { %9074 = vmatprep.subr.bf16.mxu1 %v12809_v1 }
  0x21   :  { %9055 = vmatmul.mubr.msk.bf16.vlgmr.msra.gmra.mrb[12].mxu0 %vm430_vm1, %v10265_v6 }
  0x22   :  { %9063 = vmatmul.mubr.msk.bf16.vlgmr.msra.gmra.mrb[12].mxu1 %vm430_vm1, %v10265_v6  ;;  %9067 = vmatpush3.bf16.msra.mxu0 %v9749_v19 }
  0x23   :  { %9068 = vmatprep.subr.bf16.mxu0 %v12809_v1  ;;  %9070 = vmatprep.mubr.msk.bf16.mxu0 %vm10181_vm0, %v12809_v1 }
  0x24   :  { %9078 = vmatprep.mubr.msk.bf16.mxu1 %vm10181_vm0, %v12809_v1  ;;  %9075 = vmatpush3.bf16.msra.mxu1 %v10356_v20 }
  0x25   :  { %9076 = vmatprep.subr.bf16.mxu1 %v12809_v1 }
  0x26   :  { %9069 = vmatpush3.bf16.msra.mxu0 %v10362_v21 }
  0x27   :  { %9082 = vmatprep.subr.bf16.mxu0 %v12809_v1 }
  0x28   :  { %9077 = vmatpush3.bf16.msra.mxu1 %v10369_v22 }
  0x29   :  { %9071 = vmatmul.mubr.msk.bf16.vlgmr.msra.gmra.mrb[16].mxu0 %vm430_vm1, %v10265_v6  ;;  %9090 = vmatprep.subr.bf16.mxu1 %v12809_v1 }
  0x2a   :  { %9086 = vmatprep.mubr.msk.bf16.mxu0 %vm10181_vm0, %v12809_v1  ;;  %9083 = vmatpush3.bf16.msra.mxu0 %v10379_v23 }
  0x2b   :  { %9079 = vmatmul.mubr.msk.bf16.vlgmr.msra.gmra.mrb[16].mxu1 %vm430_vm1, %v10265_v6  ;;  %9084 = vmatprep.subr.bf16.mxu0 %v12809_v1 }
  0x2c   :  { %9091 = vmatpush3.bf16.msra.mxu1 %v10384_v24  ;;  %9094 = vmatprep.mubr.msk.bf16.mxu1 %vm10181_vm0, %v12809_v1 }
  0x2d   :  { %9092 = vmatprep.subr.bf16.mxu1 %v12809_v1 }
  0x2e   :  { %9085 = vmatpush3.bf16.msra.mxu0 %v10397_v25 }
  0x2f   :  { %9098 = vmatprep.subr.bf16.mxu0 %v12809_v1 }
  0x30   :  { %9093 = vmatpush3.bf16.msra.mxu1 %v10402_v26 }
  0x31   :  { %9104 = vmatprep.subr.bf16.mxu1 %v12809_v1  ;;  %9087 = vmatmul.mubr.msk.bf16.vlgmr.msra.gmra.mrb[20].mxu0 %vm430_vm1, %v10265_v6 }
  0x32   :  { %9100 = vmatprep.mubr.msk.bf16.mxu0 %vm10181_vm0, %v12809_v1 }
  0x33   :  { %9095 = vmatmul.mubr.msk.bf16.vlgmr.msra.gmra.mrb[20].mxu1 %vm430_vm1, %v10265_v6 }
  0x34   :  { %9106 = vmatprep.mubr.msk.bf16.mxu1 %vm10181_vm0, %v12809_v1 }
  0x35   :  { %16 = vsyncpa [#allocation3], 0  ;;  %v10421_v43 = vld [vmem:[%s12798_s3 + $0x4] ss:$0 sm:$0xff]  ;;  %v10426_v44 = vld [vmem:[%s12798_s3 + $0x5] ss:$0 sm:$0xff] }
  0x36   :  { %v10431_v45 = vld [vmem:[%s12798_s3] ss:$0 sm:$0xff]  ;;  %v10436_v47 = vld [vmem:[%s12798_s3 + $0x1] ss:$0 sm:$0xff]  ;;  %vm1106_vm2 = vcmask 64512   ;;  %vm1346_vm3 = vcmask 1043456  }
  0x37   :  { %v10447_v63 = vld [vmem:[%s12798_s3 + $0x6] ss:$0 sm:$0xff]  ;;  %v10452_v2 = vld [vmem:[%s12798_s3 + $0x7] ss:$0 sm:$0xff]  ;;  %v10458_v4 = vld [vmem:[%s12798_s3 + $0x2] ss:$0 sm:$0xff] }
  0x38   :  { %v10464_v6 = vld [vmem:[%s12798_s3 + $0x3] ss:$0 sm:$0xff]  ;;  %s10184_s26 = smov [#allocation2]  }
  0x39   :  { %s8067_s27 = sshll.u32 %s10184_s26, 4  ;;  %s8068_s27 = int_to_ptr.vmem [resolvable:$true] %s8067_s27 }
  0x3a   :  { %p10161_p1 = scmp.lt.s32.totalorder %s8068_s27, %s8068_s27 }
  0xdc   :  { %v468_v27 = vpop.f32.mrb[0].mxu0 }
  0xdd   :  { %v9008_v28 = vpop.f32.mrb[1].mxu0  ;;  %v520_v29 = vpop.f32.mrb[0].mxu1  ;;  %v469_v54 = vadd.f32 %v10431_v45, %v468_v27 }
  0xde   :  { %v471_v30 = vpop.f32.mrb[2].mxu0  ;;  %v9016_v31 = vpop.f32.mrb[1].mxu1  ;;  %v521_v58 = vadd.f32 %v10436_v47, %v520_v29 }
  0xdf   :  { %v9009_v32 = vpop.f32.mrb[3].mxu0  ;;  %v523_v33 = vpop.f32.mrb[2].mxu1  ;;  %v1094_v0 = vmul.f32 0.35355338, %v469_v54 }
  0xe0   :  { %v9017_v34 = vpop.f32.mrb[3].mxu1  ;;  %v1095_v3 = vmul.f32 0.35355338, %v521_v58 }
  0xe1   :  { %v1098_v13 = vpack.c.bf16 %v1094_v0, %v1094_v0 }
  0xe2   :  { %v1099_v18 = vpack.c.bf16 %v1095_v3, %v1095_v3 }
  0xe4   :  { %v572_v35 = vpop.f32.mrb[4].mxu0 }
  0xe5   :  { %v9024_v36 = vpop.f32.mrb[5].mxu0  ;;  %v624_v37 = vpop.f32.mrb[4].mxu1  ;;  %v573_v14 = vadd.f32 %v10458_v4, %v572_v35  ;;  %v10489_v35 = vld [vmem:[%s12798_s3 + $0x8] ss:$0 sm:$0xff] }
  0xe6   :  { %v575_v38 = vpop.f32.mrb[6].mxu0  ;;  %v9032_v39 = vpop.f32.mrb[5].mxu1  ;;  %v625_v19 = vadd.f32 %v10464_v6, %v624_v37  ;;  %v10494_v37 = vld [vmem:[%s12798_s3 + $0x9] ss:$0 sm:$0xff] }
  0xe7   :  { %v9025_v40 = vpop.f32.mrb[7].mxu0  ;;  %v627_v41 = vpop.f32.mrb[6].mxu1  ;;  %v1096_v31 = vmul.f32 0.35355338, %v573_v14 }
  0xe8   :  { %v9033_v42 = vpop.f32.mrb[7].mxu1  ;;  %v1097_v32 = vmul.f32 0.35355338, %v625_v19 }
  0xe9   :  { %v1100_v33 = vpack.c.bf16 %v1096_v31, %v1096_v31 }
  0xea   :  { %v1101_v34 = vpack.c.bf16 %v1097_v32, %v1097_v32 }
  0xec   :  { %v700_v46 = vpop.f32.mrb[8].mxu0 }
  0xed   :  { %v701_v48 = vadd.f32 %v10421_v43, %v700_v46  ;;  %v752_v49 = vpop.f32.mrb[8].mxu1  ;;  %v9040_v50 = vpop.f32.mrb[9].mxu0 }
  0xee   :  { %v753_v51 = vadd.f32 %v10426_v44, %v752_v49  ;;  %v703_v52 = vpop.f32.mrb[10].mxu0  ;;  %v9048_v53 = vpop.f32.mrb[9].mxu1 }
  0xef   :  { %v1102_v55 = vpack.c.bf16 %v701_v48, %v701_v48  ;;  %v9041_v56 = vpop.f32.mrb[11].mxu0  ;;  %v755_v57 = vpop.f32.mrb[10].mxu1 }
  0xf0   :  { %v1103_v59 = vpack.c.bf16 %v753_v51, %v753_v51  ;;  %v9049_v60 = vpop.f32.mrb[11].mxu1 }
  0xf1   :  { %v1111_v61 = vsel %vm1106_vm2, %v1102_v55, 0 }
  0xf2   :  { %v1157_v62 = vsel %vm1106_vm2, %v1103_v59, 0  ;;  %9099 = vmatpush3.bf16.xpose.msra.mxu0 %v1111_v61 }
  0xf3   :  { %9105 = vmatpush3.bf16.xpose.msra.mxu1 %v1157_v62  ;;  %9110 = vmatprep.subr.bf16.mxu0 %v12809_v1 }
  0xf4   :  { %v804_v5 = vpop.f32.mrb[12].mxu0  ;;  %9116 = vmatprep.subr.bf16.mxu1 %v12809_v1 }
  0xf5   :  { %v805_v7 = vadd.f32 %v10447_v63, %v804_v5  ;;  %v856_v8 = vpop.f32.mrb[12].mxu1  ;;  %v9056_v9 = vpop.f32.mrb[13].mxu0 }
  0xf6   :  { %v857_v10 = vadd.f32 %v10452_v2, %v856_v8  ;;  %v807_v11 = vpop.f32.mrb[14].mxu0  ;;  %v9064_v12 = vpop.f32.mrb[13].mxu1 }
  0xf7   :  { %v1104_v15 = vpack.c.bf16 %v805_v7, %v805_v7  ;;  %v9057_v16 = vpop.f32.mrb[15].mxu0  ;;  %v859_v17 = vpop.f32.mrb[14].mxu1 }
  0xf8   :  { %v1105_v27 = vpack.c.bf16 %v857_v10, %v857_v10  ;;  %v9065_v28 = vpop.f32.mrb[15].mxu1 }
  0xf9   :  { %v1203_v29 = vsel %vm1106_vm2, %v1104_v15, 0  ;;  %9101 = vmatmul.mubr.msk.bf16.vlgmr.msra.gmra.mrb[24].mxu0 %vm1106_vm2, %v1098_v13 }
  0xfa   :  { %v1249_v30 = vsel %vm1106_vm2, %v1105_v27, 0  ;;  %9107 = vmatmul.mubr.msk.bf16.vlgmr.msra.gmra.mrb[24].mxu1 %vm1106_vm2, %v1099_v18  ;;  %9111 = vmatpush3.bf16.xpose.msra.mxu0 %v1203_v29 }
  0xfb   :  { %9117 = vmatpush3.bf16.xpose.msra.mxu1 %v1249_v30  ;;  %9112 = vmatprep.mubr.msk.bf16.mxu0 %vm10181_vm0, %v12809_v1 }
  0xfc   :  { %9118 = vmatprep.mubr.msk.bf16.mxu1 %vm10181_vm0, %v12809_v1  ;;  %9122 = vmatprep.subr.bf16.mxu0 %v12809_v1  ;;  %v932_v36 = vpop.f32.mrb[16].mxu0 }
  0xfd   :  { %9128 = vmatprep.subr.bf16.mxu1 %v12809_v1  ;;  %v933_v38 = vadd.f32 %v10489_v35, %v932_v36  ;;  %v9072_v39 = vpop.f32.mrb[17].mxu0 }
  0xfe   :  { %v935_v40 = vpop.f32.mrb[18].mxu0  ;;  %v984_v41 = vpop.f32.mrb[16].mxu1 }
  0xff   :  { %v1339_v42 = vpack.c.bf16 %v933_v38, %v933_v38  ;;  %v9073_v46 = vpop.f32.mrb[19].mxu0  ;;  %v985_v48 = vadd.f32 %v10494_v37, %v984_v41  ;;  %v9080_v49 = vpop.f32.mrb[17].mxu1 }
 0x100   :  { %v987_v50 = vpop.f32.mrb[18].mxu1 }
 0x101   :  { %9113 = vmatmul.mubr.msk.bf16.vlgmr.msra.gmra.mrb[28].mxu0 %vm1106_vm2, %v1100_v33  ;;  %v1348_v51 = vsel %vm1346_vm3, %v1339_v42, 0  ;;  %v1340_v52 = vpack.c.bf16 %v985_v48, %v985_v48  ;;  %v9081_v53 = vpop.f32.mrb[19].mxu1 }
 0x102   :  { %9119 = vmatmul.mubr.msk.bf16.vlgmr.msra.gmra.mrb[28].mxu1 %vm1106_vm2, %v1101_v34  ;;  %9124 = vmatprep.mubr.msk.bf16.mxu0 %vm10181_vm0, %v12809_v1 }
 0x103   :  { %9130 = vmatprep.mubr.msk.bf16.mxu1 %vm10181_vm0, %v12809_v1  ;;  %9123 = vmatpush3.bf16.msra.mxu0 %v1348_v51  ;;  %v1394_v54 = vsel %vm1346_vm3, %v1340_v52, 0 }
 0x104   :  { %9134 = vmatprep.subr.bf16.mxu0 %v12809_v1  ;;  %9129 = vmatpush3.bf16.msra.mxu1 %v1394_v54  ;;  %v10502_v55 = vpop.f32.mrb[20].mxu0 }
 0x105   :  { %9140 = vmatprep.subr.bf16.mxu1 %v12809_v1  ;;  %v9088_v57 = vpop.f32.mrb[21].mxu0 }
 0x106   :  { %v10504_v56 = vpop.f32.mrb[20].mxu1  ;;  %v1039_v59 = vpop.f32.mrb[22].mxu0 }
 0x107   :  { %v9096_v58 = vpop.f32.mrb[21].mxu1  ;;  %v9089_v61 = vpop.f32.mrb[23].mxu0 }
 0x108   :  { %v1091_v60 = vpop.f32.mrb[22].mxu1  ;;  %v10517_v61 = vld [vmem:[%s12798_s3 + $0xa] ss:$0 sm:$0xff] }
 0x109   :  { %v9097_v62 = vpop.f32.mrb[23].mxu1 }
 0x10a   :  { %v1037_v62 = vadd.f32 %v10517_v61, %v10502_v55 }
 0x1cc   :  { %v1147_v0 = vpop.f32.mrb[24].mxu0 }
 0x1cd   :  { %v1193_v3 = vpop.f32.mrb[24].mxu1  ;;  %v9102_v5 = vpop.f32.mrb[25].mxu0  ;;  %v1291_v7 = vsel %vm1106_vm2, %v1147_v0, -inf }
 0x1ce   :  { %v9108_v8 = vpop.f32.mrb[25].mxu1  ;;  %1292 = vmax.xlane.f32.xlu0 %v1291_v7  ;;  %v1150_v9 = vpop.f32.mrb[26].mxu0  ;;  %v1294_v13 = vsel %vm1106_vm2, %v1193_v3, -inf  ;;  %v1341_v7 = vpack.c.bf16 %v1037_v62, %v1037_v62  ;;  %v9973_v62 = vld [vmem:[%s12796_s1] sm:$0xff]  }
 0x1cf   :  { %v1196_v10 = vpop.f32.mrb[26].mxu1  ;;  %v9103_v11 = vpop.f32.mrb[27].mxu0 }
 0x1d0   :  { %v9109_v12 = vpop.f32.mrb[27].mxu1 }
 0x1d2   :  { %1295 = vmax.xlane.f32.xlu0 %v1294_v13  ;;  %v1440_v13 = vsel %vm1346_vm3, %v1341_v7, 0 }
 0x1d4   :  { %v1239_v14 = vpop.f32.mrb[28].mxu0 }
 0x1d5   :  { %v1285_v15 = vpop.f32.mrb[28].mxu1  ;;  %v9114_v16 = vpop.f32.mrb[29].mxu0  ;;  %v1297_v17 = vsel %vm1106_vm2, %v1239_v14, -inf }
 0x1d6   :  { %v9120_v18 = vpop.f32.mrb[29].mxu1  ;;  %1298 = vmax.xlane.f32.xlu1 %v1297_v17  ;;  %v1242_v19 = vpop.f32.mrb[30].mxu0  ;;  %v1300_v30 = vsel %vm1106_vm2, %v1285_v15, -inf }
 0x1d7   :  { %v1288_v27 = vpop.f32.mrb[30].mxu1  ;;  %v9115_v28 = vpop.f32.mrb[31].mxu0 }
 0x1d8   :  { %v9121_v29 = vpop.f32.mrb[31].mxu1 }
 0x1da   :  { %1301 = vmax.xlane.f32.xlu1 %v1300_v30 }
 0x25b   :  { %v1293_v31 = vpop.xlane.xlu0 %1292 }
 0x25c   :  { %v1303_v32 = vsub.f32 %v1147_v0, %v1293_v31  ;;  %v87_v31 = vld [vmem:[%s12797_s2 + $0x4] sm:$0xf] }
 0x25e   :  { %v1307_v33 = vmul.f32 1.442695, %v1303_v32  ;;  %v10556_v32 = vsel %vm1346_vm3, %v87_v31, 0  ;;  %v9988_v31 = vld [vmem:[%s12796_s1 + $0x78] sm:$0xff]  }
 0x25f   :  { %v1296_v34 = vpop.xlane.xlu0 %1295 }
 0x260   :  { %9885 = vpow2.f32 %v1307_v33  ;;  %v1304_v36 = vsub.f32 %v1193_v3, %v1296_v34  ;;  %v10524_v3 = vld [vmem:[%s12798_s3 + $0xb] ss:$0 sm:$0xff] }
 0x261   :  { %v1089_v8 = vadd.f32 %v10524_v3, %v10504_v56  ;;  %v86_v56 = vld [vmem:[%s12797_s2] sm:$0xf]  ;;  %v88_v33 = vld [vmem:[%s12797_s2 + $0x8] sm:$0xf] }
 0x262   :  { %v1309_v38 = vmul.f32 1.442695, %v1304_v36  ;;  %v10541_v27 = vsel %vm1346_vm3, %v86_v56, 0  ;;  %v9981_v56 = vld [vmem:[%s12796_s1 + $0x40] sm:$0xff]  }
 0x263   :  { %v1299_v39 = vpop.xlane.xlu1 %1298  ;;  %v1342_v55 = vpack.c.bf16 %v1089_v8, %v1089_v8 }
 0x264   :  { %9887 = vpow2.f32 %v1309_v38  ;;  %v1305_v40 = vsub.f32 %v1239_v14, %v1299_v39  ;;  %v10564_v39 = vsel %vm1346_vm3, %v88_v33, 0  ;;  %v9989_v33 = vld [vmem:[%s12796_s1 + $0x80] sm:$0xff]  }
 0x265   :  { %v1486_v17 = vsel %vm1346_vm3, %v1342_v55, 0  ;;  %v9977_v55 = vld [vmem:[%s12796_s1 + $0x20] sm:$0xff]  }
 0x266   :  { %v1311_v41 = vmul.f32 1.442695, %v1305_v40 }
 0x267   :  { %v1302_v42 = vpop.xlane.xlu1 %1301 }
 0x268   :  { %9889 = vpow2.f32 %v1311_v41  ;;  %v1306_v46 = vsub.f32 %v1285_v15, %v1302_v42  ;;  %v89_v41 = vld [vmem:[%s12797_s2 + $0xc] sm:$0xf] }
 0x26a   :  { %v9886_v48 = vpop.eup %9885  ;;  %v1313_v49 = vmul.f32 1.442695, %v1306_v46 }
 0x26b   :  { %v1315_v50 = vsel %vm1106_vm2, %v9886_v48, 0.0 }
 0x26c   :  { %9891 = vpow2.f32 %v1313_v49  ;;  %1316 = vadd.xlane.f32.xlu0 %v1315_v50  ;;  %v10574_v50 = vsel %vm1346_vm3, %v89_v41, 0 }
 0x26e   :  { %v9888_v51 = vpop.eup %9887 }
 0x26f   :  { %v1318_v52 = vsel %vm1106_vm2, %v9888_v51, 0.0 }
 0x270   :  { %1319 = vadd.xlane.f32.xlu1 %v1318_v52 }
 0x272   :  { %v9890_v53 = vpop.eup %9889 }
 0x273   :  { %v1321_v54 = vsel %vm1106_vm2, %v9890_v53, 0.0 }
 0x274   :  { %1322 = vadd.xlane.f32.xlu0 %v1321_v54 }
 0x276   :  { %v9892_v57 = vpop.eup %9891 }
 0x277   :  { %v1324_v58 = vsel %vm1106_vm2, %v9892_v57, 0.0 }
 0x278   :  { %1325 = vadd.xlane.f32.xlu1 %v1324_v58 }
 0x2f9   :  { %v1317_v59 = vpop.xlane.xlu0 %1316 }
 0x2fa   :  { %9893 = vrcp.f32 %v1317_v59 }
 0x2fd   :  { %v1320_v60 = vpop.xlane.xlu1 %1319 }
 0x2fe   :  { %9895 = vrcp.f32 %v1320_v60 }
 0x301   :  { %v1323_v0 = vpop.xlane.xlu0 %1322 }
 0x302   :  { %9897 = vrcp.f32 %v1323_v0  ;;  %v10591_v0 = vld [vmem:[%s12795_s0 + $0x8] sm:$0xff] }
 0x304   :  { %v9894_v5 = vpop.eup %9893 }
 0x305   :  { %v1331_v9 = vmul.f32 %v9894_v5, %v9886_v48  ;;  %v1326_v10 = vpop.xlane.xlu1 %1325 }
 0x306   :  { %9899 = vrcp.f32 %v1326_v10  ;;  %v10597_v10 = vpack.c.bf16 %v10591_v0, %v10591_v0 }
 0x307   :  { %v1335_v11 = vpack.c.bf16 %v1331_v9, %v1331_v9 }
 0x308   :  { %v9896_v12 = vpop.eup %9895 }
 0x309   :  { %v1332_v14 = vmul.f32 %v9896_v12, %v9888_v51  ;;  %9125 = vmatmul.mubr.msk.bf16.vlgmr.msra.gmra.mrb[32].mxu0 %vm1106_vm2, %v1335_v11  ;;  %v9974_v11 = vld [vmem:[%s12796_s1 + $0x8] sm:$0xff]   ;;  %v9975_v12 = vld [vmem:[%s12796_s1 + $0x10] sm:$0xff]  }
 0x30a   :  { %9135 = vmatpush3.bf16.msra.mxu0 %v1440_v13  ;;  %9136 = vmatprep.mubr.msk.bf16.mxu0 %vm10181_vm0, %v12809_v1  ;;  %v9976_v13 = vld [vmem:[%s12796_s1 + $0x18] sm:$0xff]  }
 0x30b   :  { %v1336_v15 = vpack.c.bf16 %v1332_v14, %v1332_v14  ;;  %9146 = vmatprep.subr.bf16.mxu0 %v12809_v1  ;;  %v9978_v14 = vld [vmem:[%s12796_s1 + $0x28] sm:$0xff]  }
 0x30c   :  { %v9898_v16 = vpop.eup %9897 }
 0x30d   :  { %v1333_v18 = vmul.f32 %v9898_v16, %v9890_v53  ;;  %9131 = vmatmul.mubr.msk.bf16.vlgmr.msra.gmra.mrb[32].mxu1 %vm1106_vm2, %v1336_v15  ;;  %v9979_v15 = vld [vmem:[%s12796_s1 + $0x30] sm:$0xff]   ;;  %v9980_v16 = vld [vmem:[%s12796_s1 + $0x38] sm:$0xff]  }
 0x30e   :  { %9141 = vmatpush3.bf16.msra.mxu1 %v1486_v17  ;;  %9142 = vmatprep.mubr.msk.bf16.mxu1 %vm10181_vm0, %v12809_v1  ;;  %v9982_v17 = vld [vmem:[%s12796_s1 + $0x48] sm:$0xff]  }
 0x30f   :  { %v1337_v19 = vpack.c.bf16 %v1333_v18, %v1333_v18  ;;  %9152 = vmatprep.subr.bf16.mxu1 %v12809_v1  ;;  %v9983_v18 = vld [vmem:[%s12796_s1 + $0x50] sm:$0xff]  }
 0x310   :  { %v9900_v28 = vpop.eup %9899 }
 0x311   :  { %v1334_v29 = vmul.f32 %v9900_v28, %v9892_v57  ;;  %9137 = vmatmul.mubr.msk.bf16.vlgmr.msra.gmra.mrb[36].mxu0 %vm1106_vm2, %v1337_v19  ;;  %v9984_v19 = vld [vmem:[%s12796_s1 + $0x58] sm:$0xff]   ;;  %v9985_v28 = vld [vmem:[%s12796_s1 + $0x60] sm:$0xff]  }
 0x312   :  { %9147 = vmatpush3.bf16.msra.mxu0 %v10541_v27  ;;  %9148 = vmatprep.mubr.msk.bf16.mxu0 %vm10181_vm0, %v12809_v1 }
 0x313   :  { %v1338_v30 = vpack.c.bf16 %v1334_v29, %v1334_v29  ;;  %9158 = vmatprep.subr.bf16.mxu0 %v12809_v1  ;;  %v9986_v29 = vld [vmem:[%s12796_s1 + $0x68] sm:$0xff]  }
 0x315   :  { %9143 = vmatmul.mubr.msk.bf16.vlgmr.msra.gmra.mrb[36].mxu1 %vm1106_vm2, %v1338_v30  ;;  %v9987_v30 = vld [vmem:[%s12796_s1 + $0x70] sm:$0xff]  }
 0x316   :  { %9154 = vmatprep.mubr.msk.bf16.mxu1 %vm10181_vm0, %v12809_v1  ;;  %9153 = vmatpush3.bf16.msra.mxu1 %v10556_v32 }
 0x317   :  { %9164 = vmatprep.subr.bf16.mxu1 %v12809_v1 }
 0x3dc   :  { %v1384_v34 = vpop.f32.mrb[32].mxu0 }
 0x3dd   :  { %v1528_v36 = vpack.c.bf16 %v1384_v34, %v1384_v34  ;;  %v9126_v38 = vpop.f32.mrb[33].mxu0 }
 0x3de   :  { %v1387_v40 = vpop.f32.mrb[34].mxu0 }
 0x3df   :  { %v9127_v42 = vpop.f32.mrb[35].mxu0  ;;  %9149 = vmatmul.mubr.msk.bf16.vlgmr.msra.gmra.mrb[40].mxu0 %vm1106_vm2, %v1528_v36 }
 0x3e0   :  { %v1430_v46 = vpop.f32.mrb[32].mxu1  ;;  %9159 = vmatpush3.bf16.msra.mxu0 %v10564_v39  ;;  %9160 = vmatprep.mubr.msk.bf16.mxu0 %vm10181_vm0, %v12809_v1 }
 0x3e1   :  { %v1529_v48 = vpack.c.bf16 %v1430_v46, %v1430_v46  ;;  %v9132_v49 = vpop.f32.mrb[33].mxu1  ;;  %9170 = vmatprep.subr.bf16.mxu0 %v12809_v1 }
 0x3e2   :  { %v1433_v51 = vpop.f32.mrb[34].mxu1 }
 0x3e3   :  { %v9133_v52 = vpop.f32.mrb[35].mxu1  ;;  %9155 = vmatmul.mubr.msk.bf16.vlgmr.msra.gmra.mrb[40].mxu1 %vm1106_vm2, %v1529_v48 }
 0x3e4   :  { %v1476_v53 = vpop.f32.mrb[36].mxu0  ;;  %9165 = vmatpush3.bf16.msra.mxu1 %v10574_v50  ;;  %9166 = vmatprep.mubr.msk.bf16.mxu1 %vm10181_vm0, %v12809_v1 }
 0x3e5   :  { %v1530_v54 = vpack.c.bf16 %v1476_v53, %v1476_v53  ;;  %v9138_v57 = vpop.f32.mrb[37].mxu0  ;;  %9178 = vmatprep.subr.bf16.mxu1 %v12809_v1 }
 0x3e6   :  { %v1479_v58 = vpop.f32.mrb[38].mxu0 }
 0x3e7   :  { %v9139_v59 = vpop.f32.mrb[39].mxu0  ;;  %9161 = vmatmul.mubr.msk.bf16.vlgmr.msra.gmra.mrb[44].mxu0 %vm1106_vm2, %v1530_v54 }
 0x3e8   :  { %v1522_v60 = vpop.f32.mrb[36].mxu1  ;;  %9171 = vmatpush3.bf16.msra.mxu0 %v9973_v62  ;;  %9174 = vmatprep.mubr.msk.bf16.mxu0 %vm10181_vm0, %v12809_v1 }
 0x3e9   :  { %v1531_v5 = vpack.c.bf16 %v1522_v60, %v1522_v60  ;;  %v9144_v7 = vpop.f32.mrb[37].mxu1  ;;  %9172 = vmatprep.subr.bf16.mxu0 %v12809_v1 }
 0x3ea   :  { %v1525_v8 = vpop.f32.mrb[38].mxu1 }
 0x3eb   :  { %v9145_v9 = vpop.f32.mrb[39].mxu1  ;;  %9167 = vmatmul.mubr.msk.bf16.vlgmr.msra.gmra.mrb[44].mxu1 %vm1106_vm2, %v1531_v5 }
 0x3ec   :  { %9173 = vmatpush3.bf16.msra.mxu0 %v9974_v11  ;;  %9179 = vmatpush3.bf16.msra.mxu1 %v9975_v12 }
 0x3ed   :  { %9180 = vmatprep.subr.bf16.mxu1 %v12809_v1  ;;  %9186 = vmatprep.subr.bf16.mxu0 %v12809_v1 }
 0x3ee   :  { %9182 = vmatprep.mubr.msk.bf16.mxu1 %vm10181_vm0, %v12809_v1 }
 0x3ef   :  { %9175 = vmatmul.mubr.msk.bf16.vlgmr.msra.gmra.mrb[48].mxu0 %vm430_vm1, %v10597_v10 }
 0x3f0   :  { %9181 = vmatpush3.bf16.msra.mxu1 %v9976_v13  ;;  %9187 = vmatpush3.bf16.msra.mxu0 %v9977_v55 }
 0x3f1   :  { %9188 = vmatprep.subr.bf16.mxu0 %v12809_v1  ;;  %9194 = vmatprep.subr.bf16.mxu1 %v12809_v1 }
 0x3f2   :  { %9190 = vmatprep.mubr.msk.bf16.mxu0 %vm10181_vm0, %v12809_v1 }
 0x3f3   :  { %9183 = vmatmul.mubr.msk.bf16.vlgmr.msra.gmra.mrb[48].mxu1 %vm430_vm1, %v10597_v10 }
 0x3f4   :  { %9189 = vmatpush3.bf16.msra.mxu0 %v9978_v14  ;;  %9195 = vmatpush3.bf16.msra.mxu1 %v9979_v15 }
 0x3f5   :  { %9196 = vmatprep.subr.bf16.mxu1 %v12809_v1  ;;  %9202 = vmatprep.subr.bf16.mxu0 %v12809_v1 }
 0x3f6   :  { %9198 = vmatprep.mubr.msk.bf16.mxu1 %vm10181_vm0, %v12809_v1 }
 0x3f7   :  { %9191 = vmatmul.mubr.msk.bf16.vlgmr.msra.gmra.mrb[52].mxu0 %vm430_vm1, %v10597_v10 }
 0x3f8   :  { %9197 = vmatpush3.bf16.msra.mxu1 %v9980_v16  ;;  %9203 = vmatpush3.bf16.msra.mxu0 %v9981_v56 }
 0x3f9   :  { %9204 = vmatprep.subr.bf16.mxu0 %v12809_v1  ;;  %9210 = vmatprep.subr.bf16.mxu1 %v12809_v1 }
 0x3fa   :  { %9206 = vmatprep.mubr.msk.bf16.mxu0 %vm10181_vm0, %v12809_v1 }
 0x3fb   :  { %9199 = vmatmul.mubr.msk.bf16.vlgmr.msra.gmra.mrb[52].mxu1 %vm430_vm1, %v10597_v10 }
 0x3fc   :  { %9205 = vmatpush3.bf16.msra.mxu0 %v9982_v17  ;;  %9211 = vmatpush3.bf16.msra.mxu1 %v9983_v18 }
 0x3fd   :  { %9212 = vmatprep.subr.bf16.mxu1 %v12809_v1  ;;  %9218 = vmatprep.subr.bf16.mxu0 %v12809_v1 }
 0x3fe   :  { %9214 = vmatprep.mubr.msk.bf16.mxu1 %vm10181_vm0, %v12809_v1 }
 0x3ff   :  { %9207 = vmatmul.mubr.msk.bf16.vlgmr.msra.gmra.mrb[56].mxu0 %vm430_vm1, %v10597_v10 }
 0x400   :  { %9213 = vmatpush3.bf16.msra.mxu1 %v9984_v19  ;;  %9219 = vmatpush3.bf16.msra.mxu0 %v9985_v28 }
 0x401   :  { %9220 = vmatprep.subr.bf16.mxu0 %v12809_v1  ;;  %9226 = vmatprep.subr.bf16.mxu1 %v12809_v1 }
 0x402   :  { %9222 = vmatprep.mubr.msk.bf16.mxu0 %vm10181_vm0, %v12809_v1 }
 0x403   :  { %9215 = vmatmul.mubr.msk.bf16.vlgmr.msra.gmra.mrb[56].mxu1 %vm430_vm1, %v10597_v10 }
 0x404   :  { %9221 = vmatpush3.bf16.msra.mxu0 %v9986_v29  ;;  %9227 = vmatpush3.bf16.msra.mxu1 %v9987_v30 }
 0x405   :  { %9228 = vmatprep.subr.bf16.mxu1 %v12809_v1  ;;  %9230 = vmatprep.mubr.msk.bf16.mxu1 %vm10181_vm0, %v12809_v1 }
 0x406   :  { %9234 = vmatprep.subr.bf16.mxu0 %v12809_v1 }
 0x407   :  { %9223 = vmatmul.mubr.msk.bf16.vlgmr.msra.gmra.mrb[60].mxu0 %vm430_vm1, %v10597_v10 }
 0x408   :  { %9229 = vmatpush3.bf16.msra.mxu1 %v9988_v31  ;;  %9235 = vmatpush3.bf16.msra.mxu0 %v9989_v33 }
 0x409   :  { %9242 = vmatprep.subr.bf16.mxu1 %v12809_v1  ;;  %9236 = vmatprep.subr.bf16.mxu0 %v12809_v1 }
 0x40a   :  { %9238 = vmatprep.mubr.msk.bf16.mxu0 %vm10181_vm0, %v12809_v1 }
 0x40b   :  { %9231 = vmatmul.mubr.msk.bf16.vlgmr.msra.gmra.mrb[60].mxu1 %vm430_vm1, %v10597_v10 }
 0x40c   :  { %9243 = vmatpush3.bf16.msra.mxu1 %v10356_v20  ;;  %9237 = vmatpush3.bf16.msra.mxu0 %v10362_v21 }
 0x40d   :  { %9244 = vmatprep.subr.bf16.mxu1 %v12809_v1  ;;  %9250 = vmatprep.subr.bf16.mxu0 %v12809_v1 }
 0x40e   :  { %9246 = vmatprep.mubr.msk.bf16.mxu1 %vm10181_vm0, %v12809_v1 }
 0x40f   :  { %9239 = vmatmul.mubr.msk.bf16.vlgmr.msra.gmra.mrb[64].mxu0 %vm430_vm1, %v10597_v10 }
 0x410   :  { %9245 = vmatpush3.bf16.msra.mxu1 %v10369_v22  ;;  %9251 = vmatpush3.bf16.msra.mxu0 %v10379_v23 }
 0x411   :  { %9252 = vmatprep.subr.bf16.mxu0 %v12809_v1  ;;  %9258 = vmatprep.subr.bf16.mxu1 %v12809_v1 }
 0x412   :  { %9254 = vmatprep.mubr.msk.bf16.mxu0 %vm10181_vm0, %v12809_v1 }
 0x413   :  { %9247 = vmatmul.mubr.msk.bf16.vlgmr.msra.gmra.mrb[64].mxu1 %vm430_vm1, %v10597_v10 }
 0x414   :  { %9253 = vmatpush3.bf16.msra.mxu0 %v10397_v25  ;;  %9259 = vmatpush3.bf16.msra.mxu1 %v10384_v24 }
 0x415   :  { %9260 = vmatprep.subr.bf16.mxu1 %v12809_v1  ;;  %9262 = vmatprep.mubr.msk.bf16.mxu1 %vm10181_vm0, %v12809_v1 }
 0x416   :  { %9266 = vmatprep.subr.bf16.mxu0 %v12809_v1 }
 0x417   :  { %9255 = vmatmul.mubr.msk.bf16.vlgmr.msra.gmra.mrb[68].mxu0 %vm430_vm1, %v10597_v10 }
 0x418   :  { %9261 = vmatpush3.bf16.msra.mxu1 %v10402_v26  ;;  %9268 = vmatprep.mubr.msk.bf16.mxu0 %vm10181_vm0, %v12809_v1 }
 0x419   :  { %9272 = vmatprep.subr.bf16.mxu1 %v12809_v1 }
 0x41b   :  { %9263 = vmatmul.mubr.msk.bf16.vlgmr.msra.gmra.mrb[68].mxu1 %vm430_vm1, %v10597_v10 }
 0x41c   :  { %9274 = vmatprep.mubr.msk.bf16.mxu1 %vm10181_vm0, %v12809_v1 }
 0x4b2   :  { %v1572_v20 = vpop.f32.mrb[40].mxu0 }
 0x4b3   :  { %v9150_v21 = vpop.f32.mrb[41].mxu0  ;;  %v1716_v25 = vsel %vm430_vm1, %v1572_v20, 0.0 }
 0x4b4   :  { %v1575_v22 = vpop.f32.mrb[42].mxu0 }
 0x4b5   :  { %v9151_v23 = vpop.f32.mrb[43].mxu0 }
 0x4b6   :  { %v1618_v24 = vpop.f32.mrb[40].mxu1 }
 0x4b7   :  { %v1717_v26 = vsel %vm430_vm1, %v1618_v24, 0.0  ;;  %v9156_v34 = vpop.f32.mrb[41].mxu1 }
 0x4b8   :  { %v1718_v36 = vadd.f32 %v1717_v26, %v1716_v25  ;;  %v1621_v38 = vpop.f32.mrb[42].mxu1 }
 0x4b9   :  { %v9157_v40 = vpop.f32.mrb[43].mxu1 }
 0x4ba   :  { %v1664_v41 = vpop.f32.mrb[44].mxu0 }
 0x4bb   :  { %v1719_v42 = vsel %vm430_vm1, %v1664_v41, 0.0  ;;  %v9162_v46 = vpop.f32.mrb[45].mxu0 }
 0x4bc   :  { %v1720_v48 = vadd.f32 %v1719_v42, %v1718_v36  ;;  %v1667_v49 = vpop.f32.mrb[46].mxu0 }
 0x4bd   :  { %v9163_v51 = vpop.f32.mrb[47].mxu0 }
 0x4be   :  { %v1710_v52 = vpop.f32.mrb[44].mxu1 }
 0x4bf   :  { %v1721_v53 = vsel %vm430_vm1, %v1710_v52, 0.0  ;;  %v9168_v54 = vpop.f32.mrb[45].mxu1 }
 0x4c0   :  { %v10731_v57 = vadd.f32 %v1721_v53, %v1720_v48  ;;  %v1713_v58 = vpop.f32.mrb[46].mxu1 }
 0x4c1   :  { %v9169_v59 = vpop.f32.mrb[47].mxu1 }
 0x4c2   :  { %v1766_v60 = vpop.f32.mrb[48].mxu0 }
 0x4c3   :  { %v9176_v62 = vpop.f32.mrb[49].mxu0  ;;  %v1767_v30 = vadd.f32 %v10431_v45, %v1766_v60 }
 0x4c4   :  { %v1769_v5 = vpop.f32.mrb[50].mxu0 }
 0x4c5   :  { %v9177_v7 = vpop.f32.mrb[51].mxu0  ;;  %v2212_v25 = vmul.f32 0.35355338, %v1767_v30 }
 0x4c6   :  { %v1806_v8 = vpop.f32.mrb[48].mxu1 }
 0x4c7   :  { %v9184_v9 = vpop.f32.mrb[49].mxu1  ;;  %v1807_v26 = vadd.f32 %v10436_v47, %v1806_v8  ;;  %v2216_v42 = vpack.c.bf16 %v2212_v25, %v2212_v25 }
 0x4c8   :  { %v1809_v10 = vpop.f32.mrb[50].mxu1 }
 0x4c9   :  { %v9185_v11 = vpop.f32.mrb[51].mxu1 }
 0x4ca   :  { %v1846_v12 = vpop.f32.mrb[52].mxu0 }
 0x4cb   :  { %v9192_v13 = vpop.f32.mrb[53].mxu0  ;;  %v1847_v46 = vadd.f32 %v10458_v4, %v1846_v12 }
 0x4cc   :  { %v1849_v55 = vpop.f32.mrb[54].mxu0 }
 0x4cd   :  { %v9193_v14 = vpop.f32.mrb[55].mxu0  ;;  %v2214_v58 = vmul.f32 0.35355338, %v1847_v46 }
 0x4ce   :  { %v1886_v15 = vpop.f32.mrb[52].mxu1 }
 0x4cf   :  { %v9200_v16 = vpop.f32.mrb[53].mxu1  ;;  %v1887_v4 = vadd.f32 %v10464_v6, %v1886_v15  ;;  %v2218_v9 = vpack.c.bf16 %v2214_v58, %v2214_v58 }
 0x4d0   :  { %v1889_v56 = vpop.f32.mrb[54].mxu1 }
 0x4d1   :  { %v9201_v17 = vpop.f32.mrb[55].mxu1  ;;  %v2215_v10 = vmul.f32 0.35355338, %v1887_v4 }
 0x4d2   :  { %v1926_v18 = vpop.f32.mrb[56].mxu0 }
 0x4d3   :  { %v1927_v19 = vadd.f32 %v10421_v43, %v1926_v18  ;;  %v9208_v28 = vpop.f32.mrb[57].mxu0  ;;  %v2219_v15 = vpack.c.bf16 %v2215_v10, %v2215_v10 }
 0x4d4   :  { %v1929_v29 = vpop.f32.mrb[58].mxu0 }
 0x4d5   :  { %v2220_v31 = vpack.c.bf16 %v1927_v19, %v1927_v19  ;;  %v9209_v33 = vpop.f32.mrb[59].mxu0 }
 0x4d6   :  { %v1966_v20 = vpop.f32.mrb[56].mxu1 }
 0x4d7   :  { %v2228_v21 = vsel %vm1106_vm2, %v2220_v31, 0  ;;  %v1967_v22 = vadd.f32 %v10426_v44, %v1966_v20  ;;  %v9216_v23 = vpop.f32.mrb[57].mxu1  ;;  %v2213_v44 = vmul.f32 0.35355338, %v1807_v26 }
 0x4d8   :  { %v1969_v24 = vpop.f32.mrb[58].mxu1  ;;  %9267 = vmatpush3.bf16.xpose.msra.mxu0 %v2228_v21 }
 0x4d9   :  { %v2221_v34 = vpack.c.bf16 %v1967_v22, %v1967_v22  ;;  %v9217_v36 = vpop.f32.mrb[59].mxu1  ;;  %9278 = vmatprep.subr.bf16.mxu0 %v12809_v1  ;;  %v2217_v54 = vpack.c.bf16 %v2213_v44, %v2213_v44 }
 0x4da   :  { %v2006_v43 = vpop.f32.mrb[60].mxu0 }
 0x4db   :  { %v2274_v45 = vsel %vm1106_vm2, %v2221_v34, 0  ;;  %v2007_v38 = vadd.f32 %v10447_v63, %v2006_v43  ;;  %v9224_v40 = vpop.f32.mrb[61].mxu0 }
 0x4dc   :  { %v2009_v41 = vpop.f32.mrb[62].mxu0  ;;  %9273 = vmatpush3.bf16.xpose.msra.mxu1 %v2274_v45 }
 0x4dd   :  { %v2222_v48 = vpack.c.bf16 %v2007_v38, %v2007_v38  ;;  %v9225_v49 = vpop.f32.mrb[63].mxu0  ;;  %9284 = vmatprep.subr.bf16.mxu1 %v12809_v1 }
 0x4de   :  { %v2046_v47 = vpop.f32.mrb[60].mxu1 }
 0x4df   :  { %v2320_v51 = vsel %vm1106_vm2, %v2222_v48, 0  ;;  %v2047_v52 = vadd.f32 %v10452_v2, %v2046_v47  ;;  %v9232_v53 = vpop.f32.mrb[61].mxu1  ;;  %9269 = vmatmul.mubr.msk.bf16.vlgmr.msra.gmra.mrb[72].mxu0 %vm1106_vm2, %v2216_v42 }
 0x4e0   :  { %v2049_v63 = vpop.f32.mrb[62].mxu1  ;;  %9279 = vmatpush3.bf16.xpose.msra.mxu0 %v2320_v51  ;;  %9280 = vmatprep.mubr.msk.bf16.mxu0 %vm10181_vm0, %v12809_v1 }
 0x4e1   :  { %v2223_v59 = vpack.c.bf16 %v2047_v52, %v2047_v52  ;;  %v9233_v60 = vpop.f32.mrb[63].mxu1  ;;  %9290 = vmatprep.subr.bf16.mxu0 %v12809_v1  ;;  %v12806_v63 = vlaneseq }
 0x4e2   :  { %v2086_v62 = vpop.f32.mrb[64].mxu0 }
 0x4e3   :  { %v2366_v5 = vsel %vm1106_vm2, %v2223_v59, 0  ;;  %9275 = vmatmul.mubr.msk.bf16.vlgmr.msra.gmra.mrb[72].mxu1 %vm1106_vm2, %v2217_v54  ;;  %v2087_v2 = vadd.f32 %v10489_v35, %v2086_v62  ;;  %v9240_v7 = vpop.f32.mrb[65].mxu0  ;;  %v10776_v59 = vshrl.u32 %v12806_v63, 7 }
 0x4e4   :  { %9285 = vmatpush3.bf16.xpose.msra.mxu1 %v2366_v5  ;;  %9286 = vmatprep.mubr.msk.bf16.mxu1 %vm10181_vm0, %v12809_v1  ;;  %v2089_v8 = vpop.f32.mrb[66].mxu0 }
 0x4e5   :  { %v2456_v6 = vpack.c.bf16 %v2087_v2, %v2087_v2  ;;  %v9241_v11 = vpop.f32.mrb[67].mxu0  ;;  %9296 = vmatprep.subr.bf16.mxu1 %v12809_v1  ;;  %12888 = vst [vmem:[#allocation5_spill] sm:$0xff] %v10776_v59  ;;  %v10779_v2 = vsub.s32 0, %v10776_v59  ;;  %v10784_v8 = vld [vmem:[%s12799_s4] sm:$0x3f] }
 0x4e6   :  { %v2126_v12 = vpop.f32.mrb[64].mxu1 }
 0x4e7   :  { %9281 = vmatmul.mubr.msk.bf16.vlgmr.msra.gmra.mrb[76].mxu0 %vm1106_vm2, %v2218_v9  ;;  %v2464_v13 = vsel %vm1346_vm3, %v2456_v6, 0  ;;  %v2127_v55 = vadd.f32 %v10494_v37, %v2126_v12  ;;  %v9248_v35 = vpop.f32.mrb[65].mxu1  ;;  %v10788_v11 = vrot.slane %v10784_v8, %v10779_v2 }
 0x4e8   :  { %v2129_v14 = vpop.f32.mrb[66].mxu1  ;;  %9291 = vmatpush3.bf16.msra.mxu0 %v2464_v13  ;;  %9292 = vmatprep.mubr.msk.bf16.mxu0 %vm10181_vm0, %v12809_v1 }
 0x4e9   :  { %v2457_v16 = vpack.c.bf16 %v2127_v55, %v2127_v55  ;;  %v9249_v56 = vpop.f32.mrb[67].mxu1  ;;  %9302 = vmatprep.subr.bf16.mxu0 %v12809_v1  ;;  %12889 = vst [vmem:[#allocation6_spill] sm:$0xff] %v10788_v11  ;;  %v1727_v55 = vadd.f32 %v10788_v11, %v10731_v57 }
 0x4ea   :  { %v10762_v17 = vpop.f32.mrb[68].mxu0 }
 0x4eb   :  { %9287 = vmatmul.mubr.msk.bf16.vlgmr.msra.gmra.mrb[76].mxu1 %vm1106_vm2, %v2219_v15  ;;  %v2510_v18 = vsel %vm1346_vm3, %v2457_v16, 0  ;;  %v9256_v19 = vpop.f32.mrb[69].mxu0  ;;  %v9990_v16 = vld [vmem:[%s12795_s0] sm:$0xff] }
 0x4ec   :  { %9297 = vmatpush3.bf16.msra.mxu1 %v2510_v18  ;;  %v2169_v37 = vpop.f32.mrb[70].mxu0  ;;  %9298 = vmatprep.mubr.msk.bf16.mxu1 %vm10181_vm0, %v12809_v1  ;;  %v2828_v56 = vadd.f32 %v9990_v16, %v1727_v55 }
 0x4ed   :  { %v9257_v28 = vpop.f32.mrb[71].mxu0  ;;  %9308 = vmatprep.subr.bf16.mxu1 %v12809_v1 }
 0x4ee   :  { %v10769_v29 = vpop.f32.mrb[68].mxu1  ;;  %v2830_v37 = vsel %vm430_vm1, %v2828_v56, 0.0 }
 0x4ef   :  { %v9264_v30 = vpop.f32.mrb[69].mxu1 }
 0x4f0   :  { %v2209_v31 = vpop.f32.mrb[70].mxu1  ;;  %v2167_v30 = vadd.f32 %v10517_v61, %v10762_v17 }
 0x4f1   :  { %v9265_v33 = vpop.f32.mrb[71].mxu1 }
 0x5b2   :  { %v2264_v20 = vpop.f32.mrb[72].mxu0 }
 0x5b3   :  { %v9270_v21 = vpop.f32.mrb[73].mxu0  ;;  %v2408_v22 = vsel %vm1106_vm2, %v2264_v20, -inf }
 0x5b4   :  { %2409 = vmax.xlane.f32.xlu0 %v2408_v22  ;;  %v2267_v23 = vpop.f32.mrb[74].mxu0  ;;  %v2207_v21 = vadd.f32 %v10524_v3, %v10769_v29 }
 0x5b5   :  { %v9271_v24 = vpop.f32.mrb[75].mxu0 }
 0x5b6   :  { %v2310_v25 = vpop.f32.mrb[72].mxu1 }
 0x5b7   :  { %v9276_v26 = vpop.f32.mrb[73].mxu1  ;;  %v2411_v34 = vsel %vm1106_vm2, %v2310_v25, -inf }
 0x5b8   :  { %2412 = vmax.xlane.f32.xlu1 %v2411_v34  ;;  %v2313_v36 = vpop.f32.mrb[74].mxu1 }
 0x5b9   :  { %v9277_v43 = vpop.f32.mrb[75].mxu1 }
 0x5ba   :  { %v2356_v45 = vpop.f32.mrb[76].mxu0 }
 0x5bb   :  { %v9282_v38 = vpop.f32.mrb[77].mxu0  ;;  %v2414_v40 = vsel %vm1106_vm2, %v2356_v45, -inf }
 0x5bc   :  { %2415 = vmax.xlane.f32.xlu0 %v2414_v40  ;;  %v2359_v41 = vpop.f32.mrb[78].mxu0 }
 0x5bd   :  { %v9283_v42 = vpop.f32.mrb[79].mxu0 }
 0x5be   :  { %v2402_v44 = vpop.f32.mrb[76].mxu1 }
 0x5bf   :  { %v9288_v46 = vpop.f32.mrb[77].mxu1  ;;  %v2417_v48 = vsel %vm1106_vm2, %v2402_v44, -inf }
 0x5c0   :  { %2418 = vmax.xlane.f32.xlu1 %v2417_v48  ;;  %v2405_v49 = vpop.f32.mrb[78].mxu1 }
 0x5c1   :  { %v9289_v47 = vpop.f32.mrb[79].mxu1 }
 0x641   :  { %v2410_v51 = vpop.xlane.xlu0 %2409 }
 0x642   :  { %v2420_v52 = vsub.f32 %v2264_v20, %v2410_v51  ;;  %v2458_v20 = vpack.c.bf16 %v2167_v30, %v2167_v30 }
 0x644   :  { %v2424_v53 = vmul.f32 1.442695, %v2420_v52  ;;  %v2556_v43 = vsel %vm1346_vm3, %v2458_v20, 0 }
 0x645   :  { %v2413_v54 = vpop.xlane.xlu1 %2412 }
 0x646   :  { %9901 = vpow2.f32 %v2424_v53  ;;  %v2421_v58 = vsub.f32 %v2310_v25, %v2413_v54 }
 0x648   :  { %v2426_v4 = vmul.f32 1.442695, %v2421_v58 }
 0x649   :  { %v2416_v60 = vpop.xlane.xlu0 %2415 }
 0x64a   :  { %9903 = vpow2.f32 %v2426_v4  ;;  %v2422_v62 = vsub.f32 %v2356_v45, %v2416_v60  ;;  %v2459_v45 = vpack.c.bf16 %v2207_v21, %v2207_v21 }
 0x64c   :  { %v2428_v5 = vmul.f32 1.442695, %v2422_v62  ;;  %v2602_v40 = vsel %vm1346_vm3, %v2459_v45, 0 }
 0x64d   :  { %v2419_v7 = vpop.xlane.xlu1 %2418 }
 0x64e   :  { %9905 = vpow2.f32 %v2428_v5  ;;  %v2423_v9 = vsub.f32 %v2402_v44, %v2419_v7 }
 0x650   :  { %v9902_v10 = vpop.eup %9901  ;;  %v2430_v6 = vmul.f32 1.442695, %v2423_v9 }
 0x651   :  { %v2432_v12 = vsel %vm1106_vm2, %v9902_v10, 0.0 }
 0x652   :  { %9907 = vpow2.f32 %v2430_v6  ;;  %2433 = vadd.xlane.f32.xlu0 %v2432_v12 }
 0x654   :  { %v9904_v13 = vpop.eup %9903 }
 0x655   :  { %v2435_v35 = vsel %vm1106_vm2, %v9904_v13, 0.0 }
 0x656   :  { %2436 = vadd.xlane.f32.xlu1 %v2435_v35 }
 0x658   :  { %v9906_v14 = vpop.eup %9905 }
 0x659   :  { %v2438_v15 = vsel %vm1106_vm2, %v9906_v14, 0.0 }
 0x65a   :  { %2439 = vadd.xlane.f32.xlu0 %v2438_v15 }
 0x65c   :  { %v9908_v18 = vpop.eup %9907 }
 0x65d   :  { %v2441_v19 = vsel %vm1106_vm2, %v9908_v18, 0.0 }
 0x65e   :  { %2442 = vadd.xlane.f32.xlu1 %v2441_v19  ;;  %2831 = vadd.xlane.f32.xlu0 %v2830_v37 }
 0x6df   :  { %v2434_v57 = vpop.xlane.xlu0 %2433 }
 0x6e0   :  { %9909 = vrcp.f32 %v2434_v57 }
 0x6e3   :  { %v2437_v28 = vpop.xlane.xlu1 %2436 }
 0x6e4   :  { %9911 = vrcp.f32 %v2437_v28 }
 0x6e7   :  { %v2440_v31 = vpop.xlane.xlu0 %2439 }
 0x6e8   :  { %9913 = vrcp.f32 %v2440_v31 }
 0x6ea   :  { %v9910_v33 = vpop.eup %9909 }
 0x6eb   :  { %v2448_v22 = vmul.f32 %v9910_v33, %v9902_v10  ;;  %v2443_v23 = vpop.xlane.xlu1 %2442  ;;  %v2832_v24 = vpop.xlane.xlu0 %2831 }
 0x6ec   :  { %9915 = vrcp.f32 %v2443_v23  ;;  %v2837_v25 = vmul.f32 0.03125, %v2832_v24 }
 0x6ed   :  { %v2452_v26 = vpack.c.bf16 %v2448_v22, %v2448_v22 }
 0x6ee   :  { %v9912_v34 = vpop.eup %9911  ;;  %v10804_v36 = vsub.f32 %v2828_v56, %v2837_v25 }
 0x6ef   :  { %v2449_v61 = vmul.f32 %v9912_v34, %v9904_v13  ;;  %9293 = vmatmul.mubr.msk.bf16.vlgmr.msra.gmra.mrb[80].mxu0 %vm1106_vm2, %v2452_v26 }
 0x6f0   :  { %9303 = vmatpush3.bf16.msra.mxu0 %v2556_v43  ;;  %v2841_v17 = vmul.f32 %v10804_v36, %v10804_v36  ;;  %9304 = vmatprep.mubr.msk.bf16.mxu0 %vm10181_vm0, %v12809_v1 }
 0x6f1   :  { %v2453_v3 = vpack.c.bf16 %v2449_v61, %v2449_v61  ;;  %9314 = vmatprep.subr.bf16.mxu0 %v12809_v1 }
 0x6f2   :  { %v9914_v29 = vpop.eup %9913  ;;  %v2843_v38 = vsel %vm430_vm1, %v2841_v17, 0.0 }
 0x6f3   :  { %v2450_v41 = vmul.f32 %v9914_v29, %v9906_v14  ;;  %9299 = vmatmul.mubr.msk.bf16.vlgmr.msra.gmra.mrb[80].mxu1 %vm1106_vm2, %v2453_v3  ;;  %2844 = vadd.xlane.f32.xlu0 %v2843_v38 }
 0x6f4   :  { %9309 = vmatpush3.bf16.msra.mxu1 %v2602_v40  ;;  %9310 = vmatprep.mubr.msk.bf16.mxu1 %vm10181_vm0, %v12809_v1 }
 0x6f5   :  { %v2454_v42 = vpack.c.bf16 %v2450_v41, %v2450_v41  ;;  %9320 = vmatprep.subr.bf16.mxu1 %v12809_v1 }
 0x6f6   :  { %v9916_v44 = vpop.eup %9915 }
 0x6f7   :  { %v2451_v46 = vmul.f32 %v9916_v44, %v9908_v18  ;;  %9305 = vmatmul.mubr.msk.bf16.vlgmr.msra.gmra.mrb[84].mxu0 %vm1106_vm2, %v2454_v42 }
 0x6f8   :  { %9315 = vmatpush3.bf16.msra.mxu0 %v10541_v27  ;;  %9316 = vmatprep.mubr.msk.bf16.mxu0 %vm10181_vm0, %v12809_v1 }
 0x6f9   :  { %v2455_v48 = vpack.c.bf16 %v2451_v46, %v2451_v46  ;;  %9326 = vmatprep.subr.bf16.mxu0 %v12809_v1 }
 0x6fb   :  { %9311 = vmatmul.mubr.msk.bf16.vlgmr.msra.gmra.mrb[84].mxu1 %vm1106_vm2, %v2455_v48  ;;  %v105_v48 = vld [vmem:[%s12801_s6] sm:$0xff] }
 0x6fc   :  { %9321 = vmatpush3.bf16.msra.mxu1 %v10556_v32  ;;  %9322 = vmatprep.mubr.msk.bf16.mxu1 %vm10181_vm0, %v12809_v1 }
 0x6fd   :  { %9332 = vmatprep.subr.bf16.mxu1 %v12809_v1 }
 0x7c2   :  { %v2500_v49 = vpop.f32.mrb[80].mxu0 }
 0x7c3   :  { %v2644_v47 = vpack.c.bf16 %v2500_v49, %v2500_v49  ;;  %v9294_v51 = vpop.f32.mrb[81].mxu0  ;;  %v113_v49 = vld [vmem:[%s12801_s6 + $0x40] sm:$0xff] }
 0x7c4   :  { %v2503_v52 = vpop.f32.mrb[82].mxu0  ;;  %v114_v51 = vld [vmem:[%s12801_s6 + $0x48] sm:$0xff] }
 0x7c5   :  { %v9295_v53 = vpop.f32.mrb[83].mxu0  ;;  %9317 = vmatmul.mubr.msk.bf16.vlgmr.msra.gmra.mrb[88].mxu0 %vm1106_vm2, %v2644_v47  ;;  %v10856_v47 = vcombine.high %v105_v48, %v113_v49  ;;  %v10861_v52 = vcombine.low %v105_v48, %v113_v49 }
 0x7c6   :  { %v2546_v54 = vpop.f32.mrb[80].mxu1  ;;  %9327 = vmatpush3.bf16.msra.mxu0 %v10564_v39  ;;  %9328 = vmatprep.mubr.msk.bf16.mxu0 %vm10181_vm0, %v12809_v1 }
 0x7c7   :  { %v2645_v58 = vpack.c.bf16 %v2546_v54, %v2546_v54  ;;  %v9300_v4 = vpop.f32.mrb[81].mxu1  ;;  %12890 = vst [vmem:[#allocation7_spill] sm:$0xff] %v10856_v47  ;;  %12891 = vst [vmem:[#allocation8_spill] sm:$0xff] %v10861_v52  ;;  %3115 = vmatprep.subr.bf16.mxu0 %v10856_v47 }
 0x7c8   :  { %v2549_v60 = vpop.f32.mrb[82].mxu1  ;;  %v129_v4 = vld [vmem:[%s12801_s6 + $0xc0] sm:$0xff] }
 0x7c9   :  { %v9301_v62 = vpop.f32.mrb[83].mxu1  ;;  %9323 = vmatmul.mubr.msk.bf16.vlgmr.msra.gmra.mrb[88].mxu1 %vm1106_vm2, %v2645_v58  ;;  %v121_v58 = vld [vmem:[%s12801_s6 + $0x80] sm:$0xff]  ;;  %v122_v60 = vld [vmem:[%s12801_s6 + $0x88] sm:$0xff] }
 0x7ca   :  { %v2592_v5 = vpop.f32.mrb[84].mxu0  ;;  %9333 = vmatpush3.bf16.msra.mxu1 %v10574_v50  ;;  %9334 = vmatprep.mubr.msk.bf16.mxu1 %vm10181_vm0, %v12809_v1  ;;  %v10880_v62 = vcombine.high %v121_v58, %v129_v4 }
 0x7cb   :  { %v2646_v7 = vpack.c.bf16 %v2592_v5, %v2592_v5  ;;  %v9306_v9 = vpop.f32.mrb[85].mxu0  ;;  %v130_v5 = vld [vmem:[%s12801_s6 + $0xc8] sm:$0xff] }
 0x7cc   :  { %v2595_v10 = vpop.f32.mrb[86].mxu0  ;;  %12894 = vst [vmem:[#allocation11_spill] sm:$0xff] %v10880_v62  ;;  %v10887_v9 = vcombine.low %v122_v60, %v130_v5 }
 0x7cd   :  { %v9307_v6 = vpop.f32.mrb[87].mxu0  ;;  %9329 = vmatmul.mubr.msk.bf16.vlgmr.msra.gmra.mrb[92].mxu0 %vm1106_vm2, %v2646_v7  ;;  %v10885_v7 = vcombine.low %v121_v58, %v129_v4  ;;  %v10889_v10 = vcombine.high %v122_v60, %v130_v5  ;;  %v133_v58 = vld [vmem:[%s12801_s6 + $0xe0] sm:$0xff]  ;;  %v126_v4 = vld [vmem:[%s12801_s6 + $0xa8] sm:$0xff] }
 0x7ce   :  { %v2638_v12 = vpop.f32.mrb[84].mxu1  ;;  %3116 = vmatpush1.bf16.msra.mxu0 %v10861_v52  ;;  %12896 = vst [vmem:[#allocation13_spill] sm:$0xff] %v10887_v9  ;;  %v107_v6 = vld [vmem:[%s12801_s6 + $0x10] sm:$0xff]  ;;  %v134_v60 = vld [vmem:[%s12801_s6 + $0xe8] sm:$0xff] }
 0x7cf   :  { %v2647_v13 = vpack.c.bf16 %v2638_v12, %v2638_v12  ;;  %v9312_v55 = vpop.f32.mrb[85].mxu1  ;;  %12895 = vst [vmem:[#allocation12_spill] sm:$0xff] %v10885_v7  ;;  %12897 = vst [vmem:[#allocation14_spill] sm:$0xff] %v10889_v10  ;;  %3117 = vmatprep.subr.bf16.mxu0 %v10880_v62  ;;  %v115_v12 = vld [vmem:[%s12801_s6 + $0x50] sm:$0xff] }
 0x7d0   :  { %v2641_v35 = vpop.f32.mrb[86].mxu1  ;;  %v12807_v55 = vmov 0  }
 0x7d1   :  { %v9313_v14 = vpop.f32.mrb[87].mxu1  ;;  %9335 = vmatmul.mubr.msk.bf16.vlgmr.msra.gmra.mrb[92].mxu1 %vm1106_vm2, %v2647_v13  ;;  %v108_v13 = vld [vmem:[%s12801_s6 + $0x18] sm:$0xff]  ;;  %3147 = vmatprep.mubr.bf16.mxu0 %v12807_v55  ;;  %v10905_v35 = vcombine.high %v107_v6, %v115_v12 }
 0x7d2   :  { %3118 = vmatpush1.bf16.msra.mxu0 %v10885_v7  ;;  %v116_v14 = vld [vmem:[%s12801_s6 + $0x58] sm:$0xff]  ;;  %3190 = vmatprep.mubr.bf16.mxu1 %v12807_v55 }
 0x7d3   :  { %12898 = vst [vmem:[#allocation15_spill] sm:$0xff] %v10905_v35  ;;  %3201 = vmatprep.subr.bf16.mxu0 %v10905_v35 }
 0x898   :  { %v2685_v15 = vpop.f32.mrb[88].mxu0 }
 0x899   :  { %v9318_v16 = vpop.f32.mrb[89].mxu0  ;;  %v2820_v37 = vsel %vm430_vm1, %v2685_v15, 0.0  ;;  %v10911_v15 = vcombine.low %v107_v6, %v115_v12 }
 0x89a   :  { %v2688_v56 = vpop.f32.mrb[90].mxu0  ;;  %v10913_v16 = vcombine.low %v108_v13, %v116_v14 }
 0x89b   :  { %v9319_v18 = vpop.f32.mrb[91].mxu0  ;;  %12899 = vst [vmem:[#allocation16_spill] sm:$0xff] %v10911_v15  ;;  %v10915_v56 = vcombine.high %v108_v13, %v116_v14  ;;  %v11014_v13 = vcombine.high %v126_v4, %v134_v60  ;;  %v111_v14 = vld [vmem:[%s12801_s6 + $0x30] sm:$0xff] }
 0x89c   :  { %v2728_v19 = vpop.f32.mrb[88].mxu1  ;;  %12900 = vst [vmem:[#allocation17_spill] sm:$0xff] %v10913_v16  ;;  %v2845_v18 = vpop.xlane.xlu0 %2844 }
 0x89d   :  { %v2821_v57 = vsel %vm430_vm1, %v2728_v19, 0.0  ;;  %v9324_v28 = vpop.f32.mrb[89].mxu1  ;;  %12901 = vst [vmem:[#allocation18_spill] sm:$0xff] %v10915_v56  ;;  %v2849_v19 = vmul.f32 0.03125, %v2845_v18  ;;  %12913 = vst [vmem:[#allocation30_spill] sm:$0xff] %v11014_v13  ;;  %v119_v18 = vld [vmem:[%s12801_s6 + $0x70] sm:$0xff] }
 0x89e   :  { %v2822_v30 = vadd.f32 %v2821_v57, %v2820_v37  ;;  %v2731_v31 = vpop.f32.mrb[90].mxu1 }
 0x89f   :  { %v9325_v33 = vpop.f32.mrb[91].mxu1  ;;  %v2851_v37 = vadd.f32 1e-05, %v2849_v19  ;;  %v10920_v31 = vsub.s32 1, %v10776_v59  ;;  %v112_v19 = vld [vmem:[%s12801_s6 + $0x38] sm:$0xff] }
 0x8a0   :  { %v2771_v20 = vpop.f32.mrb[92].mxu0 }
 0x8a1   :  { %v2823_v21 = vsel %vm430_vm1, %v2771_v20, 0.0  ;;  %v9330_v22 = vpop.f32.mrb[93].mxu0  ;;  %9917 = vrsqrt.f32 %v2851_v37  ;;  %v10924_v20 = vrot.slane %v10784_v8, %v10920_v31  ;;  %v120_v37 = vld [vmem:[%s12801_s6 + $0x78] sm:$0xff] }
 0x8a2   :  { %v2824_v23 = vadd.f32 %v2823_v21, %v2822_v30  ;;  %v2774_v24 = vpop.f32.mrb[94].mxu0  ;;  %v10927_v21 = vsub.s32 2, %v10776_v59 }
 0x8a3   :  { %v9331_v25 = vpop.f32.mrb[95].mxu0  ;;  %12902 = vst [vmem:[#allocation19_spill] sm:$0xff] %v10924_v20 }
 0x8a4   :  { %v2814_v26 = vpop.f32.mrb[92].mxu1  ;;  %v10932_v24 = vrot.slane %v10784_v8, %v10927_v21  ;;  %v132_v8 = vld [vmem:[%s12801_s6 + $0xd8] sm:$0xff] }
 0x8a5   :  { %v2825_v34 = vsel %vm430_vm1, %v2814_v26, 0.0  ;;  %v9336_v43 = vpop.f32.mrb[93].mxu1 }
 0x8a6   :  { %v2826_v45 = vadd.f32 %v2825_v34, %v2824_v23  ;;  %v2817_v61 = vpop.f32.mrb[94].mxu1  ;;  %12903 = vst [vmem:[#allocation20_spill] sm:$0xff] %v10932_v24  ;;  %v123_v43 = vld [vmem:[%s12801_s6 + $0x90] sm:$0xff] }
 0x8a7   :  { %v9337_v17 = vpop.f32.mrb[95].mxu1 }
 0x8a8   :  { %v2827_v3 = vadd.f32 %v2826_v45, %v10788_v11  ;;  %v131_v45 = vld [vmem:[%s12801_s6 + $0xd0] sm:$0xff] }
 0x8aa   :  { %v2829_v29 = vadd.f32 %v2827_v3, %v10591_v0  ;;  %v106_v0 = vld [vmem:[%s12801_s6 + $0x8] sm:$0xff] }
 0x8ab   :  { %v10863_v53 = vcombine.low %v106_v0, %v114_v51  ;;  %v10865_v54 = vcombine.high %v106_v0, %v114_v51  ;;  %v9918_v33 = vpop.eup %9917  ;;  %v125_v51 = vld [vmem:[%s12801_s6 + $0xa0] sm:$0xff] }
 0x8ac   :  { %v2833_v38 = vsel %vm430_vm1, %v2829_v29, 0.0  ;;  %v2855_v22 = vmul.f32 %v9918_v33, %v10804_v36  ;;  %v124_v36 = vld [vmem:[%s12801_s6 + $0x98] sm:$0xff]  ;;  %v11012_v12 = vcombine.high %v125_v51, %v133_v58  ;;  %v11042_v33 = vcombine.high %v112_v19, %v120_v37 }
 0x8ad   :  { %2834 = vadd.xlane.f32.xlu1 %v2833_v38  ;;  %12892 = vst [vmem:[#allocation9_spill] sm:$0xff] %v10863_v53  ;;  %12893 = vst [vmem:[#allocation10_spill] sm:$0xff] %v10865_v54  ;;  %3158 = vmatprep.subr.bf16.mxu1 %v10865_v54  ;;  %v10960_v38 = vcombine.high %v124_v36, %v132_v8  ;;  %v10982_v48 = vcombine.low %v124_v36, %v132_v8 }
 0x8ae   :  { %3159 = vmatpush1.bf16.msra.mxu1 %v10863_v53  ;;  %v2861_v25 = vmul.f32 %v10924_v20, %v2855_v22  ;;  %12912 = vst [vmem:[#allocation29_spill] sm:$0xff] %v11012_v12  ;;  %12917 = vst [vmem:[#allocation34_spill] sm:$0xff] %v11042_v33  ;;  %v127_v22 = vld [vmem:[%s12801_s6 + $0xb0] sm:$0xff] }
 0x8af   :  { %3160 = vmatprep.subr.bf16.mxu1 %v10889_v10  ;;  %12905 = vst [vmem:[#allocation22_spill] sm:$0xff] %v10960_v38  ;;  %12907 = vst [vmem:[#allocation24_spill] sm:$0xff] %v10982_v48 }
 0x8b0   :  { %v10949_v61 = vadd.f32 %v10932_v24, %v2861_v25  ;;  %v128_v25 = vld [vmem:[%s12801_s6 + $0xb8] sm:$0xff] }
 0x8b2   :  { %3161 = vmatpush1.bf16.msra.mxu1 %v10887_v9 }
 0x8b3   :  { %3244 = vmatprep.subr.bf16.mxu1 %v10915_v56 }
 0x93a   :  { %v2835_v40 = vpop.xlane.xlu1 %2834 }
 0x93b   :  { %v2838_v41 = vmul.f32 0.03125, %v2835_v40  ;;  %v109_v40 = vld [vmem:[%s12801_s6 + $0x20] sm:$0xff] }
 0x93d   :  { %v2840_v42 = vsub.f32 %v2829_v29, %v2838_v41  ;;  %v10958_v29 = vcombine.high %v123_v43, %v131_v45  ;;  %v117_v41 = vld [vmem:[%s12801_s6 + $0x60] sm:$0xff] }
 0x93e   :  { %v10986_v49 = vcombine.high %v109_v40, %v117_v41  ;;  %v11006_v5 = vcombine.low %v109_v40, %v117_v41  ;;  %v9757_v41 = vld [vmem:[%s12802_s7 + $0x40] sm:$0xff]  }
 0x93f   :  { %v2842_v44 = vmul.f32 %v2840_v42, %v2840_v42  ;;  %12904 = vst [vmem:[#allocation21_spill] sm:$0xff] %v10958_v29 }
 0x940   :  { %12908 = vst [vmem:[#allocation25_spill] sm:$0xff] %v10986_v49  ;;  %12910 = vst [vmem:[#allocation27_spill] sm:$0xff] %v11006_v5 }
 0x941   :  { %v2846_v46 = vsel %vm430_vm1, %v2842_v44, 0.0  ;;  %v118_v44 = vld [vmem:[%s12801_s6 + $0x68] sm:$0xff] }
 0x942   :  { %2847 = vadd.xlane.f32.xlu1 %v2846_v46  ;;  %v10980_v46 = vcombine.low %v123_v43, %v131_v45  ;;  %v11062_v43 = vcombine.low %v112_v19, %v120_v37  ;;  %v9767_v19 = vld [vmem:[%s12802_s7 + $0x10] sm:$0xff]  }
 0x943   :  { %v9768_v37 = vld [vmem:[%s12802_s7 + $0x90] sm:$0xff]  }
 0x944   :  { %12906 = vst [vmem:[#allocation23_spill] sm:$0xff] %v10980_v46  ;;  %12919 = vst [vmem:[#allocation36_spill] sm:$0xff] %v11062_v43 }
 0x9cf   :  { %v2848_v57 = vpop.xlane.xlu1 %2847 }
 0x9d0   :  { %v2850_v28 = vmul.f32 0.03125, %v2848_v57  ;;  %v11034_v57 = vcombine.low %v125_v51, %v133_v58  ;;  %v9760_v51 = vld [vmem:[%s12802_s7 + $0x80] sm:$0xff]   ;;  %v9761_v58 = vld [vmem:[%s12802_s7 + $0x48] sm:$0xff]  }
 0x9d2   :  { %v2852_v30 = vadd.f32 1e-05, %v2850_v28  ;;  %12914 = vst [vmem:[#allocation31_spill] sm:$0xff] %v11034_v57  ;;  %v11036_v28 = vcombine.low %v126_v4, %v134_v60  ;;  %v9762_v4 = vld [vmem:[%s12802_s7 + $0xc8] sm:$0xff]  }
 0x9d3   :  { %v9763_v60 = vld [vmem:[%s12802_s7 + $0x8] sm:$0xff]  }
 0x9d4   :  { %9919 = vrsqrt.f32 %v2852_v30  ;;  %12915 = vst [vmem:[#allocation32_spill] sm:$0xff] %v11036_v28  ;;  %v11040_v30 = vcombine.high %v111_v14, %v119_v18 }
 0x9d6   :  { %12916 = vst [vmem:[#allocation33_spill] sm:$0xff] %v11040_v30 }
 0x9de   :  { %v9920_v23 = vpop.eup %9919 }
 0x9df   :  { %v2856_v26 = vmul.f32 %v9920_v23, %v2840_v42  ;;  %v110_v42 = vld [vmem:[%s12801_s6 + $0x28] sm:$0xff]  ;;  %v135_v23 = vld [vmem:[%s12801_s6 + $0xf0] sm:$0xff] }
 0x9e0   :  { %v10988_v0 = vcombine.high %v110_v42, %v118_v44  ;;  %v11008_v6 = vcombine.low %v110_v42, %v118_v44  ;;  %v11066_v45 = vcombine.high %v127_v22, %v135_v23  ;;  %v11076_v8 = vcombine.low %v127_v22, %v135_v23  ;;  %v9758_v42 = vld [vmem:[%s12802_s7 + $0xc0] sm:$0xff]   ;;  %v9769_v22 = vld [vmem:[%s12802_s7 + $0x58] sm:$0xff]  }
 0x9e1   :  { %v2862_v34 = vmul.f32 %v10924_v20, %v2856_v26  ;;  %v136_v26 = vld [vmem:[%s12801_s6 + $0xf8] sm:$0xff]  ;;  %v9759_v44 = vld [vmem:[%s12802_s7] sm:$0xff]  }
 0x9e2   :  { %12909 = vst [vmem:[#allocation26_spill] sm:$0xff] %v10988_v0  ;;  %12911 = vst [vmem:[#allocation28_spill] sm:$0xff] %v11008_v6  ;;  %v11068_v36 = vcombine.high %v128_v25, %v136_v26  ;;  %v11078_v40 = vcombine.low %v128_v25, %v136_v26  ;;  %v9770_v23 = vld [vmem:[%s12802_s7 + $0xd8] sm:$0xff]   ;;  %v11868_v20 = vld [vmem:[%s12798_s3 + $0x4] ss:$0 sm:$0xff] }
 0x9e3   :  { %v10952_v17 = vadd.f32 %v10932_v24, %v2862_v34  ;;  %v11060_v34 = vcombine.low %v111_v14, %v119_v18  ;;  %12920 = vst [vmem:[#allocation37_spill] sm:$0xff] %v11066_v45  ;;  %12922 = vst [vmem:[#allocation39_spill] sm:$0xff] %v11076_v8  ;;  %v9764_v14 = vld [vmem:[%s12802_s7 + $0x88] sm:$0xff]   ;;  %v9765_v18 = vld [vmem:[%s12802_s7 + $0x50] sm:$0xff]  }
 0x9e4   :  { %12921 = vst [vmem:[#allocation38_spill] sm:$0xff] %v11068_v36  ;;  %12923 = vst [vmem:[#allocation40_spill] sm:$0xff] %v11078_v40  ;;  %v9771_v25 = vld [vmem:[%s12802_s7 + $0x18] sm:$0xff]  }
 0x9e5   :  { %v10956_v3 = vpack.c.bf16 %v10952_v17, %v10949_v61  ;;  %12918 = vst [vmem:[#allocation35_spill] sm:$0xff] %v11060_v34  ;;  %v9772_v26 = vld [vmem:[%s12802_s7 + $0x98] sm:$0xff]  }
 0x9e7   :  { %8198 = vmatmul.mubr.msk.bf16.vlgmr.msra.gmra.mrb[96].mxu0 %vm430_vm1, %v10956_v3  ;;  %8199 = vmatmul.mubr.msk.bf16.vlgmr.msra.gmra.mrb[96].mxu1 %vm430_vm1, %v10956_v3 }
 0x9e8   :  { %3202 = vmatpush1.bf16.msra.mxu0 %v10911_v15  ;;  %3245 = vmatpush1.bf16.msra.mxu1 %v10913_v16 }
 0x9e9   :  { %3203 = vmatprep.subr.bf16.mxu0 %v10958_v29  ;;  %3246 = vmatprep.subr.bf16.mxu1 %v10960_v38 }
 0x9ea   :  { %3233 = vmatprep.mubr.bf16.mxu0 %v12807_v55  ;;  %3276 = vmatprep.mubr.bf16.mxu1 %v12807_v55 }
 0x9ec   :  { %3204 = vmatpush1.bf16.msra.mxu0 %v10980_v46  ;;  %3247 = vmatpush1.bf16.msra.mxu1 %v10982_v48 }
 0x9ed   :  { %3287 = vmatprep.subr.bf16.mxu0 %v10986_v49  ;;  %3330 = vmatprep.subr.bf16.mxu1 %v10988_v0  ;;  %v9791_v0 = vld [vmem:[%s12802_s7 + $0x100] sm:$0xff]  }
 0x9ef   :  { %8200 = vmatmul.mubr.msk.bf16.vlgmr.msra.gmra.mrb[100].mxu0 %vm430_vm1, %v10956_v3  ;;  %8201 = vmatmul.mubr.msk.bf16.vlgmr.msra.gmra.mrb[100].mxu1 %vm430_vm1, %v10956_v3 }
 0x9f0   :  { %3288 = vmatpush1.bf16.msra.mxu0 %v11006_v5  ;;  %3331 = vmatpush1.bf16.msra.mxu1 %v11008_v6 }
 0x9f1   :  { %3289 = vmatprep.subr.bf16.mxu0 %v11012_v12  ;;  %3332 = vmatprep.subr.bf16.mxu1 %v11014_v13 }
 0x9f2   :  { %3319 = vmatprep.mubr.bf16.mxu0 %v12807_v55  ;;  %3362 = vmatprep.mubr.bf16.mxu1 %v12807_v55 }
 0x9f4   :  { %3290 = vmatpush1.bf16.msra.mxu0 %v11034_v57  ;;  %3333 = vmatpush1.bf16.msra.mxu1 %v11036_v28 }
 0x9f5   :  { %3373 = vmatprep.subr.bf16.mxu0 %v11040_v30  ;;  %3416 = vmatprep.subr.bf16.mxu1 %v11042_v33 }
 0x9f7   :  { %8202 = vmatmul.mubr.msk.bf16.vlgmr.msra.gmra.mrb[104].mxu0 %vm430_vm1, %v10956_v3  ;;  %8203 = vmatmul.mubr.msk.bf16.vlgmr.msra.gmra.mrb[104].mxu1 %vm430_vm1, %v10956_v3 }
 0x9f8   :  { %3374 = vmatpush1.bf16.msra.mxu0 %v11060_v34  ;;  %3417 = vmatpush1.bf16.msra.mxu1 %v11062_v43 }
 0x9f9   :  { %3375 = vmatprep.subr.bf16.mxu0 %v11066_v45  ;;  %3418 = vmatprep.subr.bf16.mxu1 %v11068_v36 }
 0x9fa   :  { %3405 = vmatprep.mubr.bf16.mxu0 %v12807_v55  ;;  %3448 = vmatprep.mubr.bf16.mxu1 %v12807_v55 }
 0x9fc   :  { %3376 = vmatpush1.bf16.msra.mxu0 %v11076_v8  ;;  %3419 = vmatpush1.bf16.msra.mxu1 %v11078_v40 }
 0x9fd   :  { %8516 = vmatprep.subr.bf16.mxu0 %v9757_v41  ;;  %8538 = vmatprep.subr.bf16.mxu1 %v9758_v42  ;;  %v9773_v41 = vld [vmem:[%s12802_s7 + $0x60] sm:$0xff]  }
 0x9fe   :  { %v9774_v42 = vld [vmem:[%s12802_s7 + $0xe0] sm:$0xff]  }
 0x9ff   :  { %8204 = vmatmul.mubr.msk.bf16.vlgmr.msra.gmra.mrb[108].mxu0 %vm430_vm1, %v10956_v3  ;;  %8205 = vmatmul.mubr.msk.bf16.vlgmr.msra.gmra.mrb[108].mxu1 %vm430_vm1, %v10956_v3  ;;  %v9766_v3 = vld [vmem:[%s12802_s7 + $0xd0] sm:$0xff]  }
 0xa00   :  { %8517 = vmatpush3.bf16.msra.mxu0 %v9759_v44  ;;  %8539 = vmatpush3.bf16.msra.mxu1 %v9760_v51  ;;  %v9775_v44 = vld [vmem:[%s12802_s7 + $0x20] sm:$0xff]  }
 0xa01   :  { %8518 = vmatprep.subr.bf16.mxu0 %v9761_v58  ;;  %8540 = vmatprep.subr.bf16.mxu1 %v9762_v4  ;;  %v9776_v51 = vld [vmem:[%s12802_s7 + $0xa0] sm:$0xff]   ;;  %v9777_v58 = vld [vmem:[%s12802_s7 + $0x68] sm:$0xff]  }
 0xa02   :  { %v9778_v4 = vld [vmem:[%s12802_s7 + $0xe8] sm:$0xff]  }
 0xa04   :  { %8519 = vmatpush3.bf16.msra.mxu0 %v9763_v60  ;;  %8541 = vmatpush3.bf16.msra.mxu1 %v9764_v14  ;;  %v9779_v60 = vld [vmem:[%s12802_s7 + $0x28] sm:$0xff]  }
 0xa05   :  { %8520 = vmatprep.subr.bf16.mxu0 %v9765_v18  ;;  %8542 = vmatprep.subr.bf16.mxu1 %v9766_v3  ;;  %v9780_v14 = vld [vmem:[%s12802_s7 + $0xa8] sm:$0xff]   ;;  %v9781_v18 = vld [vmem:[%s12802_s7 + $0x70] sm:$0xff]  }
 0xa06   :  { %v9782_v3 = vld [vmem:[%s12802_s7 + $0xf0] sm:$0xff]  }
 0xa08   :  { %8521 = vmatpush3.bf16.msra.mxu0 %v9767_v19  ;;  %8543 = vmatpush3.bf16.msra.mxu1 %v9768_v37  ;;  %v9783_v19 = vld [vmem:[%s12802_s7 + $0x30] sm:$0xff]  }
 0xa09   :  { %8522 = vmatprep.subr.bf16.mxu0 %v9769_v22  ;;  %8544 = vmatprep.subr.bf16.mxu1 %v9770_v23  ;;  %v9784_v37 = vld [vmem:[%s12802_s7 + $0xb0] sm:$0xff]   ;;  %v9785_v22 = vld [vmem:[%s12802_s7 + $0x78] sm:$0xff]  }
 0xa0a   :  { %v9786_v23 = vld [vmem:[%s12802_s7 + $0xf8] sm:$0xff]  }
 0xa0c   :  { %8523 = vmatpush3.bf16.msra.mxu0 %v9771_v25  ;;  %8545 = vmatpush3.bf16.msra.mxu1 %v9772_v26  ;;  %v9787_v25 = vld [vmem:[%s12802_s7 + $0x38] sm:$0xff]  }
 0xa0d   :  { %8524 = vmatprep.subr.bf16.mxu0 %v9773_v41  ;;  %8546 = vmatprep.subr.bf16.mxu1 %v9774_v42  ;;  %v9788_v26 = vld [vmem:[%s12802_s7 + $0xb8] sm:$0xff]   ;;  %v9789_v41 = vld [vmem:[%s12802_s7 + $0x140] sm:$0xff]  }
 0xa0e   :  { %v9790_v42 = vld [vmem:[%s12802_s7 + $0x1c0] sm:$0xff]  }
 0xa10   :  { %8525 = vmatpush3.bf16.msra.mxu0 %v9775_v44  ;;  %8547 = vmatpush3.bf16.msra.mxu1 %v9776_v51  ;;  %v2898_v44 = vsub.s32 6, %v10776_v59  ;;  %v11196_v51 = vld [vmem:[%s12800_s5 + $0x8] sm:$0xff] }
 0xa11   :  { %8526 = vmatprep.subr.bf16.mxu0 %v9777_v58  ;;  %8548 = vmatprep.subr.bf16.mxu1 %v9778_v4  ;;  %v103_v4 = vld [vmem:[%s12800_s5] sm:$0xff] }
 0xa12   :  { %v11199_v58 = vrot.slane %v11196_v51, %v2898_v44 }
 0xa14   :  { %8527 = vmatpush3.bf16.msra.mxu0 %v9779_v60  ;;  %8549 = vmatpush3.bf16.msra.mxu1 %v9780_v14  ;;  %12924 = vst [vmem:[#allocation41_spill] sm:$0xff] %v11199_v58  ;;  %v11205_v60 = vsub.s32 3, %v10776_v59  ;;  %v11208_v14 = vrot.slane %v103_v4, %v10779_v2 }
 0xa15   :  { %8528 = vmatprep.subr.bf16.mxu0 %v9781_v18  ;;  %8550 = vmatprep.subr.bf16.mxu1 %v9782_v3  ;;  %v11211_v18 = vrot.slane %v103_v4, %v10927_v21  ;;  %v11214_v3 = vrot.slane %v103_v4, %v10920_v31 }
 0xa16   :  { %12925 = vst [vmem:[#allocation42_spill] sm:$0xff] %v11208_v14 }
 0xa17   :  { %12926 = vst [vmem:[#allocation43_spill] sm:$0xff] %v11211_v18  ;;  %12927 = vst [vmem:[#allocation44_spill] sm:$0xff] %v11214_v3 }
 0xa18   :  { %8529 = vmatpush3.bf16.msra.mxu0 %v9783_v19  ;;  %8551 = vmatpush3.bf16.msra.mxu1 %v9784_v37  ;;  %v11217_v19 = vrot.slane %v103_v4, %v11205_v60  ;;  %v11220_v37 = vsub.s32 4, %v10776_v59 }
 0xa19   :  { %8530 = vmatprep.subr.bf16.mxu0 %v9785_v22  ;;  %8552 = vmatprep.subr.bf16.mxu1 %v9786_v23 }
 0xa1a   :  { %12928 = vst [vmem:[#allocation45_spill] sm:$0xff] %v11217_v19 }
 0xa1c   :  { %8531 = vmatpush3.bf16.msra.mxu0 %v9787_v25  ;;  %8553 = vmatpush3.bf16.msra.mxu1 %v9788_v26  ;;  %v11223_v25 = vsub.s32 5, %v10776_v59  ;;  %v11233_v26 = vrot.slane %v103_v4, %v11220_v37 }
 0xa1d   :  { %8560 = vmatprep.subr.bf16.mxu0 %v9789_v41  ;;  %8582 = vmatprep.subr.bf16.mxu1 %v9790_v42 }
 0xa1e   :  { %12929 = vst [vmem:[#allocation46_spill] sm:$0xff] %v11233_v26 }
 0xaba   :  { %v3149_v22 = vpop.f32.mrb[96].mxu0  ;;  %v3192_v23 = vpop.f32.mrb[96].mxu1 }
 0xabb   :  { %v3150_v41 = vadd.f32 %v3149_v22, %v11208_v14  ;;  %v3193_v42 = vadd.f32 %v3192_v23, %v11211_v18  ;;  %v3151_v63 = vpop.f32.mrb[97].mxu0  ;;  %v3194_v55 = vpop.f32.mrb[97].mxu1  ;;  %v11235_v22 = vrot.slane %v103_v4, %v2898_v44 }
 0xabc   :  { %v3152_v1 = vadd.f32 %v3151_v63, %v11214_v3  ;;  %v3195_v40 = vadd.f32 %v3194_v55, %v11217_v19  ;;  %v3153_v8 = vpop.f32.mrb[98].mxu0  ;;  %v3196_v36 = vpop.f32.mrb[98].mxu1  ;;  %v11240_v63 = vrot.slane %v103_v4, %v11223_v25  ;;  %v12932_v55 = vsub.s32 7, %v10776_v59 }
 0xabd   :  { %v3154_v45 = vadd.f32 %v3153_v8, %v11208_v14  ;;  %v3197_v43 = vadd.f32 %v3196_v36, %v11211_v18  ;;  %v3155_v34 = vpop.f32.mrb[99].mxu0  ;;  %v3198_v33 = vpop.f32.mrb[99].mxu1  ;;  %12930 = vst [vmem:[#allocation47_spill] sm:$0xff] %v11235_v22  ;;  %v3459_v8 = vmax.f32 %v3150_v41, 0.0  ;;  %v3461_v36 = vmax.f32 %v3193_v42, 0.0 }
 0xabe   :  { %v3156_v23 = vadd.f32 %v3155_v34, %v11214_v3  ;;  %v3199_v30 = vadd.f32 %v3198_v33, %v11217_v19  ;;  %12931 = vst [vmem:[#allocation48_spill] sm:$0xff] %v11240_v63  ;;  %v11244_v28 = vrot.slane %v103_v4, %v12932_v55  ;;  %v3460_v57 = vmax.f32 %v3152_v1, 0.0  ;;  %v9792_v4 = vld [vmem:[%s12802_s7 + $0x180] sm:$0xff]  }
 0xabf   :  { %v3475_v18 = vmax.f32 %v3154_v45, 0.0  ;;  %v3477_v14 = vmax.f32 %v3197_v43, 0.0  ;;  %v3462_v13 = vmax.f32 %v3195_v40, 0.0  ;;  %v11268_v41 = vrot.slane %v11196_v51, %v10927_v21  ;;  %v9795_v21 = vld [vmem:[%s12802_s7 + $0x108] sm:$0xff]  }
 0xac0   :  { %12933 = vst [vmem:[#allocation49_spill] sm:$0xff] %v11244_v28  ;;  %v3476_v12 = vmax.f32 %v3156_v23, 0.0  ;;  %v3478_v44 = vmax.f32 %v3199_v30, 0.0 }
 0xac1   :  { %v3491_v6 = vpack.c.bf16 %v3475_v18, %v3459_v8  ;;  %v3493_v5 = vpack.c.bf16 %v3477_v14, %v3461_v36  ;;  %12935 = vst [vmem:[#allocation51_spill] sm:$0xff] %v11268_v41 }
 0xac2   :  { %v3492_v34 = vpack.c.bf16 %v3476_v12, %v3460_v57  ;;  %v3494_v3 = vpack.c.bf16 %v3478_v44, %v3462_v13  ;;  %v3235_v33 = vpop.f32.mrb[100].mxu0  ;;  %v3278_v19 = vpop.f32.mrb[100].mxu1  ;;  %v9793_v12 = vld [vmem:[%s12802_s7 + $0x148] sm:$0xff]   ;;  %v11262_v57 = vrot.slane %v11196_v51, %v10779_v2  ;;  %v11274_v2 = vrot.slane %v11196_v51, %v10920_v31 }
 0xac3   :  { %v3236_v43 = vadd.f32 %v3235_v33, %v11233_v26  ;;  %v3279_v1 = vadd.f32 %v3278_v19, %v11235_v22  ;;  %v3237_v45 = vpop.f32.mrb[101].mxu0  ;;  %v3280_v30 = vpop.f32.mrb[101].mxu1  ;;  %v9794_v13 = vld [vmem:[%s12802_s7 + $0x1c8] sm:$0xff]  }
 0xac4   :  { %12934 = vst [vmem:[#allocation50_spill] sm:$0xff] %v11262_v57  ;;  %v3238_v40 = vadd.f32 %v3237_v45, %v11240_v63  ;;  %v3281_v14 = vadd.f32 %v3280_v30, %v11244_v28  ;;  %v3239_v18 = vpop.f32.mrb[102].mxu0  ;;  %v3282_v19 = vpop.f32.mrb[102].mxu1  ;;  %4311 = vmatprep.mubr.bf16.mxu0 %v3492_v34  ;;  %4352 = vmatprep.mubr.bf16.mxu1 %v3494_v3  ;;  %12936 = vst [vmem:[#allocation52_spill] sm:$0xff] %v11274_v2  ;;  %v9796_v44 = vld [vmem:[%s12802_s7 + $0x188] sm:$0xff]  }
 0xac5   :  { %v3240_v42 = vadd.f32 %v3239_v18, %v11233_v26  ;;  %v3283_v23 = vadd.f32 %v3282_v19, %v11235_v22  ;;  %v3241_v55 = vpop.f32.mrb[103].mxu0  ;;  %v3284_v8 = vpop.f32.mrb[103].mxu1  ;;  %4312 = vmatmul.mubr.bf16.vlgmr.msra.gmra.mrb[112].mxu0 %v3491_v6  ;;  %4353 = vmatmul.mubr.bf16.vlgmr.msra.gmra.mrb[112].mxu1 %v3493_v5  ;;  %v11286_v5 = vrot.slane %v11196_v51, %v11205_v60  ;;  %v3463_v31 = vmax.f32 %v3236_v43, 0.0 }
 0xac6   :  { %v3242_v36 = vadd.f32 %v3241_v55, %v11240_v63  ;;  %v3285_v3 = vadd.f32 %v3284_v8, %v11244_v28  ;;  %8561 = vmatpush3.bf16.msra.mxu0 %v9791_v0  ;;  %8583 = vmatpush3.bf16.msra.mxu1 %v9792_v4  ;;  %v3465_v6 = vmax.f32 %v3279_v1, 0.0  ;;  %v9797_v0 = vld [vmem:[%s12802_s7 + $0x150] sm:$0xff]   ;;  %v3464_v45 = vmax.f32 %v3238_v40, 0.0 }
 0xac7   :  { %12937 = vst [vmem:[#allocation53_spill] sm:$0xff] %v11286_v5  ;;  %v3479_v34 = vmax.f32 %v3240_v42, 0.0  ;;  %v3481_v33 = vmax.f32 %v3283_v23, 0.0  ;;  %8562 = vmatprep.subr.bf16.mxu0 %v9793_v12  ;;  %8584 = vmatprep.subr.bf16.mxu1 %v9794_v13  ;;  %v9798_v4 = vld [vmem:[%s12802_s7 + $0x1d0] sm:$0xff]   ;;  %v3466_v30 = vmax.f32 %v3281_v14, 0.0 }
 0xac8   :  { %v3480_v18 = vmax.f32 %v3242_v36, 0.0  ;;  %v3482_v19 = vmax.f32 %v3285_v3, 0.0  ;;  %v9799_v23 = vld [vmem:[%s12802_s7 + $0x110] sm:$0xff]  }
 0xac9   :  { %v11294_v55 = vpack.c.bf16 %v3479_v34, %v3463_v31  ;;  %v11296_v43 = vpack.c.bf16 %v3481_v33, %v3465_v6  ;;  %v9800_v40 = vld [vmem:[%s12802_s7 + $0x190] sm:$0xff]  }
 0xaca   :  { %v3496_v1 = vpack.c.bf16 %v3480_v18, %v3464_v45  ;;  %v3498_v42 = vpack.c.bf16 %v3482_v19, %v3466_v30  ;;  %8563 = vmatpush3.bf16.msra.mxu0 %v9795_v21  ;;  %8585 = vmatpush3.bf16.msra.mxu1 %v9796_v44  ;;  %v3321_v12 = vpop.f32.mrb[104].mxu0  ;;  %v3364_v13 = vpop.f32.mrb[104].mxu1  ;;  %v9801_v21 = vld [vmem:[%s12802_s7 + $0x158] sm:$0xff]   ;;  %v11318_v18 = vrot.slane %v11196_v51, %v11220_v37 }
 0xacb   :  { %v3322_v14 = vadd.f32 %v3321_v12, %v11262_v57  ;;  %v3365_v8 = vadd.f32 %v3364_v13, %v11268_v41  ;;  %v3323_v36 = vpop.f32.mrb[105].mxu0  ;;  %v3366_v3 = vpop.f32.mrb[105].mxu1  ;;  %8564 = vmatprep.subr.bf16.mxu0 %v9797_v0  ;;  %8586 = vmatprep.subr.bf16.mxu1 %v9798_v4  ;;  %v9802_v44 = vld [vmem:[%s12802_s7 + $0x1d8] sm:$0xff]   ;;  %v11322_v19 = vrot.slane %v11196_v51, %v11223_v25 }
 0xacc   :  { %v3324_v31 = vadd.f32 %v3323_v36, %v11274_v2  ;;  %v3367_v6 = vadd.f32 %v3366_v3, %v11286_v5  ;;  %v3325_v34 = vpop.f32.mrb[106].mxu0  ;;  %v3368_v33 = vpop.f32.mrb[106].mxu1  ;;  %4393 = vmatprep.mubr.bf16.mxu0 %v3496_v1  ;;  %4434 = vmatprep.mubr.bf16.mxu1 %v3498_v42  ;;  %12938 = vst [vmem:[#allocation54_spill] sm:$0xff] %v11318_v18  ;;  %v9803_v1 = vld [vmem:[%s12802_s7 + $0x118] sm:$0xff]   ;;  %v12940_v36 = vsub.s32 7, %v10776_v59 }
 0xacd   :  { %v3326_v45 = vadd.f32 %v3325_v34, %v11262_v57  ;;  %v3369_v0 = vadd.f32 %v3368_v33, %v11268_v41  ;;  %v3327_v4 = vpop.f32.mrb[107].mxu0  ;;  %v3370_v30 = vpop.f32.mrb[107].mxu1  ;;  %12939 = vst [vmem:[#allocation55_spill] sm:$0xff] %v11322_v19  ;;  %v9804_v42 = vld [vmem:[%s12802_s7 + $0x198] sm:$0xff]   ;;  %v3467_v34 = vmax.f32 %v3322_v14, 0.0  ;;  %v3469_v33 = vmax.f32 %v3365_v8, 0.0 }
 0xace   :  { %v3328_v12 = vadd.f32 %v3327_v4, %v11274_v2  ;;  %v3371_v13 = vadd.f32 %v3370_v30, %v11286_v5  ;;  %8565 = vmatpush3.bf16.msra.mxu0 %v9799_v23  ;;  %8587 = vmatpush3.bf16.msra.mxu1 %v9800_v40  ;;  %v11335_v3 = vrot.slane %v11196_v51, %v12940_v36  ;;  %v9805_v23 = vld [vmem:[%s12802_s7 + $0x160] sm:$0xff]   ;;  %v3468_v30 = vmax.f32 %v3324_v31, 0.0 }
 0xacf   :  { %v3483_v4 = vmax.f32 %v3326_v45, 0.0  ;;  %v3485_v2 = vmax.f32 %v3369_v0, 0.0  ;;  %8566 = vmatprep.subr.bf16.mxu0 %v9801_v21  ;;  %8588 = vmatprep.subr.bf16.mxu1 %v9802_v44  ;;  %v9806_v40 = vld [vmem:[%s12802_s7 + $0x1e0] sm:$0xff]   ;;  %v3470_v5 = vmax.f32 %v3367_v6, 0.0 }
 0xad0   :  { %12941 = vst [vmem:[#allocation56_spill] sm:$0xff] %v11335_v3  ;;  %v3484_v59 = vmax.f32 %v3328_v12, 0.0  ;;  %v3486_v41 = vmax.f32 %v3371_v13, 0.0  ;;  %v9807_v0 = vld [vmem:[%s12802_s7 + $0x120] sm:$0xff]  }
 0xad1   :  { %v11343_v51 = vpack.c.bf16 %v3483_v4, %v3467_v34  ;;  %v11345_v14 = vpack.c.bf16 %v3485_v2, %v3469_v33  ;;  %v9808_v31 = vld [vmem:[%s12802_s7 + $0x1a0] sm:$0xff]  }
 0xad2   :  { %v11347_v8 = vpack.c.bf16 %v3484_v59, %v3468_v30  ;;  %v11349_v21 = vpack.c.bf16 %v3486_v41, %v3470_v5  ;;  %8567 = vmatpush3.bf16.msra.mxu0 %v9803_v1  ;;  %8589 = vmatpush3.bf16.msra.mxu1 %v9804_v42  ;;  %v3407_v44 = vpop.f32.mrb[108].mxu0  ;;  %v3450_v45 = vpop.f32.mrb[108].mxu1  ;;  %v9809_v41 = vld [vmem:[%s12802_s7 + $0x168] sm:$0xff]  }
 0xad3   :  { %v3408_v6 = vadd.f32 %v3407_v44, %v11318_v18  ;;  %v3451_v2 = vadd.f32 %v3450_v45, %v11199_v58  ;;  %v3409_v59 = vpop.f32.mrb[109].mxu0  ;;  %v3452_v12 = vpop.f32.mrb[109].mxu1  ;;  %8568 = vmatprep.subr.bf16.mxu0 %v9805_v23  ;;  %8590 = vmatprep.subr.bf16.mxu1 %v9806_v40  ;;  %v9810_v5 = vld [vmem:[%s12802_s7 + $0x1e8] sm:$0xff]  }
 0xad4   :  { %v3410_v13 = vadd.f32 %v3409_v59, %v11322_v19  ;;  %v3453_v1 = vadd.f32 %v3452_v12, %v11335_v3  ;;  %v3411_v42 = vpop.f32.mrb[110].mxu0  ;;  %v3454_v36 = vpop.f32.mrb[110].mxu1  ;;  %v9811_v44 = vld [vmem:[%s12802_s7 + $0x128] sm:$0xff]  }
 0xad5   :  { %v3412_v34 = vadd.f32 %v3411_v42, %v11318_v18  ;;  %v3455_v33 = vadd.f32 %v3454_v36, %v11199_v58  ;;  %v3413_v4 = vpop.f32.mrb[111].mxu0  ;;  %v3456_v23 = vpop.f32.mrb[111].mxu1  ;;  %v9812_v45 = vld [vmem:[%s12802_s7 + $0x1a8] sm:$0xff]   ;;  %v3471_v59 = vmax.f32 %v3408_v6, 0.0  ;;  %v3473_v12 = vmax.f32 %v3451_v2, 0.0 }
 0xad6   :  { %v3414_v40 = vadd.f32 %v3413_v4, %v11322_v19  ;;  %v3457_v30 = vadd.f32 %v3456_v23, %v11335_v3  ;;  %8569 = vmatpush3.bf16.msra.mxu0 %v9807_v0  ;;  %8591 = vmatpush3.bf16.msra.mxu1 %v9808_v31  ;;  %v9813_v4 = vld [vmem:[%s12802_s7 + $0x170] sm:$0xff]   ;;  %v3472_v31 = vmax.f32 %v3410_v13, 0.0  ;;  %v3474_v23 = vmax.f32 %v3453_v1, 0.0  ;;  %v9817_v1 = vld [vmem:[%s12802_s7 + $0x178] sm:$0xff]  }
 0xad7   :  { %v3487_v42 = vmax.f32 %v3412_v34, 0.0  ;;  %v3489_v36 = vmax.f32 %v3455_v33, 0.0  ;;  %8570 = vmatprep.subr.bf16.mxu0 %v9809_v41  ;;  %8592 = vmatprep.subr.bf16.mxu1 %v9810_v5  ;;  %v9814_v0 = vld [vmem:[%s12802_s7 + $0x1f0] sm:$0xff]   ;;  %v9820_v34 = vld [vmem:[%s12802_s7 + $0x1b8] sm:$0xff]   ;;  %v9821_v33 = vld [vmem:[%s12802_s7 + $0x240] sm:$0xff]  }
 0xad8   :  { %v3488_v3 = vmax.f32 %v3414_v40, 0.0  ;;  %v3490_v19 = vmax.f32 %v3457_v30, 0.0  ;;  %v9815_v5 = vld [vmem:[%s12802_s7 + $0x130] sm:$0xff]   ;;  %v9822_v40 = vld [vmem:[%s12802_s7 + $0x2c0] sm:$0xff]  }
 0xad9   :  { %v11383_v58 = vpack.c.bf16 %v3487_v42, %v3471_v59  ;;  %v11385_v6 = vpack.c.bf16 %v3489_v36, %v3473_v12  ;;  %v9816_v13 = vld [vmem:[%s12802_s7 + $0x1b0] sm:$0xff]   ;;  %v9823_v30 = vld [vmem:[%s12802_s7 + $0x200] sm:$0xff]   ;;  %v9826_v59 = vld [vmem:[%s12802_s7 + $0x2c8] sm:$0xff]  }
 0xada   :  { %v11387_v2 = vpack.c.bf16 %v3488_v3, %v3472_v31  ;;  %v11389_v41 = vpack.c.bf16 %v3490_v19, %v3474_v23  ;;  %8571 = vmatpush3.bf16.msra.mxu0 %v9811_v44  ;;  %8593 = vmatpush3.bf16.msra.mxu1 %v9812_v45  ;;  %v9818_v19 = vld [vmem:[%s12802_s7 + $0x1f8] sm:$0xff]   ;;  %v9824_v44 = vld [vmem:[%s12802_s7 + $0x280] sm:$0xff]   ;;  %v9825_v45 = vld [vmem:[%s12802_s7 + $0x248] sm:$0xff]  }
 0xadb   :  { %8572 = vmatprep.subr.bf16.mxu0 %v9813_v4  ;;  %8594 = vmatprep.subr.bf16.mxu1 %v9814_v0  ;;  %v9819_v3 = vld [vmem:[%s12802_s7 + $0x138] sm:$0xff]   ;;  %v9827_v12 = vld [vmem:[%s12802_s7 + $0x208] sm:$0xff]   ;;  %v9837_v23 = vld [vmem:[%s12802_s7 + $0x260] sm:$0xff]  }
 0xadc   :  { %v9828_v42 = vld [vmem:[%s12802_s7 + $0x288] sm:$0xff]   ;;  %v9833_v36 = vld [vmem:[%s12802_s7 + $0x258] sm:$0xff]  }
 0xadd   :  { %v9834_v4 = vld [vmem:[%s12802_s7 + $0x2d8] sm:$0xff]  }
 0xade   :  { %8573 = vmatpush3.bf16.msra.mxu0 %v9815_v5  ;;  %8595 = vmatpush3.bf16.msra.mxu1 %v9816_v13  ;;  %v9835_v0 = vld [vmem:[%s12802_s7 + $0x218] sm:$0xff]   ;;  %v9838_v5 = vld [vmem:[%s12802_s7 + $0x2e0] sm:$0xff]  }
 0xadf   :  { %8574 = vmatprep.subr.bf16.mxu0 %v9817_v1  ;;  %8596 = vmatprep.subr.bf16.mxu1 %v9818_v19  ;;  %v9836_v31 = vld [vmem:[%s12802_s7 + $0x298] sm:$0xff]   ;;  %v9839_v13 = vld [vmem:[%s12802_s7 + $0x220] sm:$0xff]   ;;  %v9841_v19 = vld [vmem:[%s12802_s7 + $0x268] sm:$0xff]  }
 0xae0   :  { %v9840_v1 = vld [vmem:[%s12802_s7 + $0x2a0] sm:$0xff]  }
 0xae2   :  { %8575 = vmatpush3.bf16.msra.mxu0 %v9819_v3  ;;  %8597 = vmatpush3.bf16.msra.mxu1 %v9820_v34  ;;  %v9842_v3 = vld [vmem:[%s12802_s7 + $0x2e8] sm:$0xff]  }
 0xae3   :  { %8604 = vmatprep.subr.bf16.mxu0 %v9821_v33  ;;  %8626 = vmatprep.subr.bf16.mxu1 %v9822_v40  ;;  %v9843_v34 = vld [vmem:[%s12802_s7 + $0x228] sm:$0xff]   ;;  %v9845_v40 = vld [vmem:[%s12802_s7 + $0x270] sm:$0xff]  }
 0xae4   :  { %v9844_v33 = vld [vmem:[%s12802_s7 + $0x2a8] sm:$0xff]  }
 0xae5   :  { %4394 = vmatmul.mubr.bf16.vlgmr.msra.gmra.mrb[116].mxu0 %v11294_v55  ;;  %4435 = vmatmul.mubr.bf16.vlgmr.msra.gmra.mrb[116].mxu1 %v11296_v43  ;;  %v9829_v55 = vld [vmem:[%s12802_s7 + $0x250] sm:$0xff]  }
 0xae6   :  { %8605 = vmatpush3.bf16.msra.mxu0 %v9823_v30  ;;  %4475 = vmatprep.mubr.bf16.mxu0 %v11347_v8  ;;  %v9830_v43 = vld [vmem:[%s12802_s7 + $0x2d0] sm:$0xff]  }
 0xae7   :  { %8627 = vmatpush3.bf16.msra.mxu1 %v9824_v44  ;;  %4516 = vmatprep.mubr.bf16.mxu1 %v11349_v21  ;;  %v9831_v8 = vld [vmem:[%s12802_s7 + $0x210] sm:$0xff]  }
 0xae8   :  { %8606 = vmatprep.subr.bf16.mxu0 %v9825_v45  ;;  %8628 = vmatprep.subr.bf16.mxu1 %v9826_v59  ;;  %v9832_v21 = vld [vmem:[%s12802_s7 + $0x290] sm:$0xff]   ;;  %v9849_v59 = vld [vmem:[%s12802_s7 + $0x278] sm:$0xff]  }
 0xae9   :  { %v9846_v30 = vld [vmem:[%s12802_s7 + $0x2f0] sm:$0xff]  }
 0xaea   :  { %8607 = vmatpush3.bf16.msra.mxu0 %v9827_v12  ;;  %v9847_v44 = vld [vmem:[%s12802_s7 + $0x230] sm:$0xff]   ;;  %v9850_v12 = vld [vmem:[%s12802_s7 + $0x2f8] sm:$0xff]  }
 0xaeb   :  { %8629 = vmatpush3.bf16.msra.mxu1 %v9828_v42  ;;  %8608 = vmatprep.subr.bf16.mxu0 %v9829_v55  ;;  %v9848_v45 = vld [vmem:[%s12802_s7 + $0x2b0] sm:$0xff]   ;;  %v9851_v42 = vld [vmem:[%s12802_s7 + $0x238] sm:$0xff]  }
 0xaec   :  { %8630 = vmatprep.subr.bf16.mxu1 %v9830_v43  ;;  %v9852_v55 = vld [vmem:[%s12802_s7 + $0x2b8] sm:$0xff]   ;;  %v9853_v43 = vld [vmem:[%s12802_s7 + $0x340] sm:$0xff]  }
 0xaee   :  { %8609 = vmatpush3.bf16.msra.mxu0 %v9831_v8  ;;  %v9854_v8 = vld [vmem:[%s12802_s7 + $0x3c0] sm:$0xff]  }
 0xaef   :  { %8631 = vmatpush3.bf16.msra.mxu1 %v9832_v21  ;;  %8610 = vmatprep.subr.bf16.mxu0 %v9833_v36  ;;  %v9855_v21 = vld [vmem:[%s12802_s7 + $0x300] sm:$0xff]  }
 0xaf0   :  { %8632 = vmatprep.subr.bf16.mxu1 %v9834_v4  ;;  %v9856_v36 = vld [vmem:[%s12802_s7 + $0x380] sm:$0xff]   ;;  %v9857_v4 = vld [vmem:[%s12802_s7 + $0x348] sm:$0xff]  }
 0xaf2   :  { %8611 = vmatpush3.bf16.msra.mxu0 %v9835_v0  ;;  %v9858_v0 = vld [vmem:[%s12802_s7 + $0x3c8] sm:$0xff]  }
 0xaf3   :  { %8633 = vmatpush3.bf16.msra.mxu1 %v9836_v31  ;;  %8612 = vmatprep.subr.bf16.mxu0 %v9837_v23  ;;  %v9859_v31 = vld [vmem:[%s12802_s7 + $0x308] sm:$0xff]  }
 0xaf4   :  { %8634 = vmatprep.subr.bf16.mxu1 %v9838_v5  ;;  %v9860_v23 = vld [vmem:[%s12802_s7 + $0x388] sm:$0xff]   ;;  %v9864_v5 = vld [vmem:[%s12802_s7 + $0x390] sm:$0xff]  }
 0xaf6   :  { %8613 = vmatpush3.bf16.msra.mxu0 %v9839_v13  ;;  %v9866_v13 = vld [vmem:[%s12802_s7 + $0x3d8] sm:$0xff]  }
 0xaf7   :  { %8635 = vmatpush3.bf16.msra.mxu1 %v9840_v1  ;;  %8614 = vmatprep.subr.bf16.mxu0 %v9841_v19  ;;  %v9867_v1 = vld [vmem:[%s12802_s7 + $0x318] sm:$0xff]  }
 0xaf8   :  { %8636 = vmatprep.subr.bf16.mxu1 %v9842_v3  ;;  %v9868_v19 = vld [vmem:[%s12802_s7 + $0x398] sm:$0xff]   ;;  %v9869_v3 = vld [vmem:[%s12802_s7 + $0x360] sm:$0xff]  }
 0xafa   :  { %8615 = vmatpush3.bf16.msra.mxu0 %v9843_v34  ;;  %v9870_v34 = vld [vmem:[%s12802_s7 + $0x3e0] sm:$0xff]  }
 0xafb   :  { %8637 = vmatpush3.bf16.msra.mxu1 %v9844_v33  ;;  %8616 = vmatprep.subr.bf16.mxu0 %v9845_v40  ;;  %v9871_v33 = vld [vmem:[%s12802_s7 + $0x320] sm:$0xff]  }
 0xafc   :  { %8638 = vmatprep.subr.bf16.mxu1 %v9846_v30  ;;  %v9872_v40 = vld [vmem:[%s12802_s7 + $0x3a0] sm:$0xff]   ;;  %v9873_v30 = vld [vmem:[%s12802_s7 + $0x368] sm:$0xff]  }
 0xafe   :  { %8617 = vmatpush3.bf16.msra.mxu0 %v9847_v44  ;;  %v9874_v44 = vld [vmem:[%s12802_s7 + $0x3e8] sm:$0xff]  }
 0xaff   :  { %8639 = vmatpush3.bf16.msra.mxu1 %v9848_v45  ;;  %8618 = vmatprep.subr.bf16.mxu0 %v9849_v59  ;;  %v9875_v45 = vld [vmem:[%s12802_s7 + $0x328] sm:$0xff]  }
 0xb00   :  { %8640 = vmatprep.subr.bf16.mxu1 %v9850_v12  ;;  %v9876_v59 = vld [vmem:[%s12802_s7 + $0x3a8] sm:$0xff]   ;;  %v9877_v12 = vld [vmem:[%s12802_s7 + $0x370] sm:$0xff]  }
 0xb02   :  { %8619 = vmatpush3.bf16.msra.mxu0 %v9851_v42  ;;  %v9878_v42 = vld [vmem:[%s12802_s7 + $0x3f0] sm:$0xff]  }
 0xb03   :  { %8641 = vmatpush3.bf16.msra.mxu1 %v9852_v55  ;;  %8648 = vmatprep.subr.bf16.mxu0 %v9853_v43  ;;  %v9879_v55 = vld [vmem:[%s12802_s7 + $0x330] sm:$0xff]  }
 0xb04   :  { %8670 = vmatprep.subr.bf16.mxu1 %v9854_v8  ;;  %v9880_v43 = vld [vmem:[%s12802_s7 + $0x3b0] sm:$0xff]   ;;  %v9881_v8 = vld [vmem:[%s12802_s7 + $0x378] sm:$0xff]  }
 0xb05   :  { %4476 = vmatmul.mubr.bf16.vlgmr.msra.gmra.mrb[120].mxu0 %v11343_v51  ;;  %v9861_v51 = vld [vmem:[%s12802_s7 + $0x350] sm:$0xff]  }
 0xb06   :  { %4517 = vmatmul.mubr.bf16.vlgmr.msra.gmra.mrb[120].mxu1 %v11345_v14  ;;  %8649 = vmatpush3.bf16.msra.mxu0 %v9855_v21  ;;  %v9862_v14 = vld [vmem:[%s12802_s7 + $0x3d0] sm:$0xff]   ;;  %v9882_v21 = vld [vmem:[%s12802_s7 + $0x3f8] sm:$0xff]  }
 0xb07   :  { %4557 = vmatprep.mubr.bf16.mxu0 %v11387_v2  ;;  %8671 = vmatpush3.bf16.msra.mxu1 %v9856_v36  ;;  %v9863_v2 = vld [vmem:[%s12802_s7 + $0x310] sm:$0xff]   ;;  %v9883_v36 = vld [vmem:[%s12802_s7 + $0x338] sm:$0xff]  }
 0xb08   :  { %4598 = vmatprep.mubr.bf16.mxu1 %v11389_v41  ;;  %8650 = vmatprep.subr.bf16.mxu0 %v9857_v4  ;;  %v9865_v41 = vld [vmem:[%s12802_s7 + $0x358] sm:$0xff]  }
 0xb09   :  { %8672 = vmatprep.subr.bf16.mxu1 %v9858_v0  ;;  %v9884_v4 = vld [vmem:[%s12802_s7 + $0x3b8] sm:$0xff]   ;;  %v12942_v0 = vmov 0.0  }
 0xb0a   :  { %8651 = vmatpush3.bf16.msra.mxu0 %v9859_v31  ;;  %v11616_v31 = vld [vmem:[%s12796_s1] sm:$0xff]  }
 0xb0b   :  { %8673 = vmatpush3.bf16.msra.mxu1 %v9860_v23  ;;  %8652 = vmatprep.subr.bf16.mxu0 %v9861_v51  ;;  %v11622_v23 = vld [vmem:[%s12796_s1 + $0x10] sm:$0xff]  }
 0xb0c   :  { %8674 = vmatprep.subr.bf16.mxu1 %v9862_v14 }
 0xb0e   :  { %8653 = vmatpush3.bf16.msra.mxu0 %v9863_v2  ;;  %v11648_v2 = vld [vmem:[%s12799_s4] sm:$0x3f] }
 0xb0f   :  { %8675 = vmatpush3.bf16.msra.mxu1 %v9864_v5  ;;  %8654 = vmatprep.subr.bf16.mxu0 %v9865_v41  ;;  %v11652_v5 = vrot.slane %v11648_v2, %v11223_v25 }
 0xb10   :  { %8676 = vmatprep.subr.bf16.mxu1 %v9866_v13 }
 0xb11   :  { %12943 = vst [vmem:[#allocation57_spill] sm:$0xff] %v11652_v5 }
 0xb12   :  { %8655 = vmatpush3.bf16.msra.mxu0 %v9867_v1 }
 0xb13   :  { %8677 = vmatpush3.bf16.msra.mxu1 %v9868_v19  ;;  %8656 = vmatprep.subr.bf16.mxu0 %v9869_v3 }
 0xb14   :  { %8678 = vmatprep.subr.bf16.mxu1 %v9870_v34 }
 0xb16   :  { %8657 = vmatpush3.bf16.msra.mxu0 %v9871_v33 }
 0xb17   :  { %8679 = vmatpush3.bf16.msra.mxu1 %v9872_v40  ;;  %8658 = vmatprep.subr.bf16.mxu0 %v9873_v30 }
 0xb18   :  { %8680 = vmatprep.subr.bf16.mxu1 %v9874_v44 }
 0xb1a   :  { %8659 = vmatpush3.bf16.msra.mxu0 %v9875_v45 }
 0xb1b   :  { %8681 = vmatpush3.bf16.msra.mxu1 %v9876_v59  ;;  %8660 = vmatprep.subr.bf16.mxu0 %v9877_v12 }
 0xb1c   :  { %8682 = vmatprep.subr.bf16.mxu1 %v9878_v42 }
 0xb1e   :  { %8661 = vmatpush3.bf16.msra.mxu0 %v9879_v55 }
 0xb1f   :  { %8683 = vmatpush3.bf16.msra.mxu1 %v9880_v43  ;;  %8662 = vmatprep.subr.bf16.mxu0 %v9881_v8 }
 0xb20   :  { %8684 = vmatprep.subr.bf16.mxu1 %v9882_v21 }
 0xb22   :  { %8663 = vmatpush3.bf16.msra.mxu0 %v9883_v36 }
 0xb23   :  { %8685 = vmatpush3.bf16.msra.mxu1 %v9884_v4  ;;  %9338 = vmatprep.subr.bf16.mxu0 %v12942_v0 }
 0xb24   :  { %9346 = vmatprep.subr.bf16.mxu1 %v12942_v0 }
 0xb25   :  { %4558 = vmatmul.mubr.bf16.vlgmr.msra.gmra.mrb[124].mxu0 %v11383_v58  ;;  %v11634_v58 = vld [vmem:[%s12796_s1 + $0x8] sm:$0xff]  }
 0xb26   :  { %4599 = vmatmul.mubr.bf16.vlgmr.msra.gmra.mrb[124].mxu1 %v11385_v6  ;;  %9339 = vmatpush3.bf16.msra.mxu0 %v11616_v31  ;;  %v11640_v6 = vld [vmem:[%s12796_s1 + $0x18] sm:$0xff]  }
 0xb27   :  { %9347 = vmatpush3.bf16.msra.mxu1 %v11622_v23  ;;  %9340 = vmatprep.subr.bf16.mxu0 %v12942_v0 }
 0xb28   :  { %9348 = vmatprep.subr.bf16.mxu1 %v12942_v0  ;;  %9342 = vmatprep.mubr.msk.bf16.mxu0 %vm10181_vm0, %v12942_v0 }
 0xb29   :  { %9350 = vmatprep.mubr.msk.bf16.mxu1 %vm10181_vm0, %v12942_v0 }
 0xb2a   :  { %9341 = vmatpush3.bf16.msra.mxu0 %v11634_v58 }
 0xb2b   :  { %9349 = vmatpush3.bf16.msra.mxu1 %v11640_v6  ;;  %9354 = vmatprep.subr.bf16.mxu0 %v12942_v0 }
 0xb2c   :  { %9362 = vmatprep.subr.bf16.mxu1 %v12942_v0 }
 0xb98   :  { %v8532_v51 = vpop.f32.mrb[112].mxu0  ;;  %v8554_v14 = vpop.f32.mrb[112].mxu1 }
 0xb99   :  { %v8533_v41 = vpop.f32.mrb[113].mxu0  ;;  %v8555_v13 = vpop.f32.mrb[113].mxu1 }
 0xb9a   :  { %v8534_v1 = vadd.f32 %v8533_v41, %v8532_v51  ;;  %v8556_v19 = vadd.f32 %v8555_v13, %v8554_v14  ;;  %v8535_v3 = vpop.f32.mrb[114].mxu0  ;;  %v8557_v34 = vpop.f32.mrb[114].mxu1 }
 0xb9b   :  { %v8536_v33 = vpop.f32.mrb[115].mxu0  ;;  %v8558_v40 = vpop.f32.mrb[115].mxu1 }
 0xb9c   :  { %v4314_v30 = vadd.f32 %v8534_v1, %v11652_v5  ;;  %v8537_v44 = vadd.f32 %v8536_v33, %v8535_v3  ;;  %v8559_v45 = vadd.f32 %v8558_v40, %v8557_v34 }
 0xb9e   :  { %v4355_v59 = vadd.f32 %v8556_v19, %v4314_v30  ;;  %v4317_v12 = vadd.f32 %v8537_v44, %v11652_v5 }
 0xba0   :  { %v4358_v42 = vadd.f32 %v8559_v45, %v4317_v12 }
 0xbb8   :  { %v8576_v55 = vpop.f32.mrb[116].mxu0  ;;  %v8598_v43 = vpop.f32.mrb[116].mxu1 }
 0xbb9   :  { %v8577_v25 = vpop.f32.mrb[117].mxu0  ;;  %v8599_v8 = vpop.f32.mrb[117].mxu1 }
 0xbba   :  { %v8578_v21 = vadd.f32 %v8577_v25, %v8576_v55  ;;  %v8600_v36 = vadd.f32 %v8599_v8, %v8598_v43  ;;  %v8579_v4 = vpop.f32.mrb[118].mxu0  ;;  %v8601_v51 = vpop.f32.mrb[118].mxu1 }
 0xbbb   :  { %v8580_v14 = vpop.f32.mrb[119].mxu0  ;;  %v8602_v41 = vpop.f32.mrb[119].mxu1 }
 0xbbc   :  { %v4396_v13 = vadd.f32 %v8578_v21, %v4355_v59  ;;  %v8581_v18 = vadd.f32 %v8580_v14, %v8579_v4  ;;  %v8603_v57 = vadd.f32 %v8602_v41, %v8601_v51 }
 0xbbe   :  { %v4437_v1 = vadd.f32 %v8600_v36, %v4396_v13  ;;  %v4399_v3 = vadd.f32 %v8581_v18, %v4358_v42 }
 0xbc0   :  { %v4440_v34 = vadd.f32 %v8603_v57, %v4399_v3 }
 0xbd8   :  { %v8620_v19 = vpop.f32.mrb[120].mxu0 }
 0xbd9   :  { %v8642_v33 = vpop.f32.mrb[120].mxu1  ;;  %v8621_v40 = vpop.f32.mrb[121].mxu0 }
 0xbda   :  { %v8622_v30 = vadd.f32 %v8621_v40, %v8620_v19  ;;  %v8643_v44 = vpop.f32.mrb[121].mxu1  ;;  %v8623_v45 = vpop.f32.mrb[122].mxu0 }
 0xbdb   :  { %v8644_v12 = vadd.f32 %v8643_v44, %v8642_v33  ;;  %v8645_v5 = vpop.f32.mrb[122].mxu1  ;;  %v8624_v55 = vpop.f32.mrb[123].mxu0 }
 0xbdc   :  { %v4478_v43 = vadd.f32 %v8622_v30, %v4437_v1  ;;  %v8625_v25 = vadd.f32 %v8624_v55, %v8623_v45  ;;  %v8646_v8 = vpop.f32.mrb[123].mxu1 }
 0xbdd   :  { %v8647_v28 = vadd.f32 %v8646_v8, %v8645_v5 }
 0xbde   :  { %v4519_v63 = vadd.f32 %v8644_v12, %v4478_v43  ;;  %v4481_v59 = vadd.f32 %v8625_v25, %v4440_v34 }
 0xbe0   :  { %v4522_v21 = vadd.f32 %v8647_v28, %v4481_v59  ;;  %v11663_v59 = vrot.slane %v11648_v2, %v11205_v60  ;;  %v11684_v60 = vld [vmem:[%s12796_s1 + $0x20] sm:$0xff]  }
 0xbf8   :  { %v8664_v4 = vpop.f32.mrb[124].mxu0 }
 0xbf9   :  { %v8686_v36 = vpop.f32.mrb[124].mxu1  ;;  %v8665_v18 = vpop.f32.mrb[125].mxu0 }
 0xbfa   :  { %v8666_v57 = vadd.f32 %v8665_v18, %v8664_v4  ;;  %v8687_v42 = vpop.f32.mrb[125].mxu1  ;;  %v8667_v51 = vpop.f32.mrb[126].mxu0 }
 0xbfb   :  { %v8688_v14 = vadd.f32 %v8687_v42, %v8686_v36  ;;  %v8689_v41 = vpop.f32.mrb[126].mxu1  ;;  %v8668_v13 = vpop.f32.mrb[127].mxu0  ;;  %v11708_v42 = vld [vmem:[%s12796_s1 + $0x38] sm:$0xff]  }
 0xbfc   :  { %v4560_v3 = vadd.f32 %v8666_v57, %v4519_v63  ;;  %v8669_v19 = vadd.f32 %v8668_v13, %v8667_v51  ;;  %v8690_v33 = vpop.f32.mrb[127].mxu1  ;;  %v11720_v51 = vld [vmem:[%s12796_s1 + $0x40] sm:$0xff]   ;;  %v11744_v13 = vld [vmem:[%s12796_s1 + $0x58] sm:$0xff]  }
 0xbfd   :  { %v8691_v40 = vadd.f32 %v8690_v33, %v8689_v41  ;;  %v11738_v41 = vld [vmem:[%s12796_s1 + $0x48] sm:$0xff]  }
 0xbfe   :  { %v4601_v1 = vadd.f32 %v8688_v14, %v4560_v3  ;;  %v4563_v30 = vadd.f32 %v8669_v19, %v4522_v21  ;;  %v11726_v14 = vld [vmem:[%s12796_s1 + $0x50] sm:$0xff]   ;;  %v11756_v3 = vld [vmem:[%s12796_s1 + $0x60] sm:$0xff]   ;;  %v11774_v33 = vld [vmem:[%s12796_s1 + $0x68] sm:$0xff]  }
 0xbff   :  { %v11762_v19 = vld [vmem:[%s12796_s1 + $0x70] sm:$0xff]  }
 0xc00   :  { %v11656_v44 = vadd.f32 %v8691_v40, %v4563_v30  ;;  %v4607_v5 = vadd.f32 %v4601_v1, %v10949_v61  ;;  %v11667_v61 = vrot.slane %v11648_v2, %v11220_v37  ;;  %v11690_v37 = vld [vmem:[%s12796_s1 + $0x30] sm:$0xff]   ;;  %v11702_v2 = vld [vmem:[%s12796_s1 + $0x28] sm:$0xff]   ;;  %v11780_v40 = vld [vmem:[%s12796_s1 + $0x78] sm:$0xff]  }
 0xc01   :  { %v11792_v1 = vld [vmem:[%s12796_s1 + $0x80] sm:$0xff]   ;;  %v11798_v30 = vld [vmem:[%s12796_s1 + $0x90] sm:$0xff]  }
 0xc02   :  { %v4609_v28 = vsel %vm430_vm1, %v4607_v5, 0.0 }
 0xc03   :  { %4610 = vadd.xlane.f32.xlu0 %v4609_v28  ;;  %v11816_v28 = vld [vmem:[%s12796_s1 + $0x98] sm:$0xff]  }
 0xc90   :  { %v4611_v34 = vpop.xlane.xlu0 %4610 }
 0xc91   :  { %v4615_v45 = vmul.f32 0.03125, %v4611_v34  ;;  %v11828_v34 = vld [vmem:[%s12796_s1 + $0xa0] sm:$0xff]  }
 0xc93   :  { %v4617_v12 = vsub.f32 %v4607_v5, %v4615_v45  ;;  %v11810_v5 = vld [vmem:[%s12796_s1 + $0x88] sm:$0xff]   ;;  %v11834_v45 = vld [vmem:[%s12796_s1 + $0xb0] sm:$0xff]  }
 0xc95   :  { %v4619_v55 = vmul.f32 %v4617_v12, %v4617_v12 }
 0xc97   :  { %v4621_v43 = vsel %vm430_vm1, %v4619_v55, 0.0  ;;  %v11852_v55 = vld [vmem:[%s12796_s1 + $0xb8] sm:$0xff]  }
 0xc98   :  { %4622 = vadd.xlane.f32.xlu1 %v4621_v43 }
 0xd25   :  { %v4623_v63 = vpop.xlane.xlu1 %4622 }
 0xd26   :  { %v4627_v25 = vmul.f32 0.03125, %v4623_v63 }
 0xd28   :  { %v4629_v8 = vadd.f32 1e-05, %v4627_v25 }
 0xd2a   :  { %9921 = vrsqrt.f32 %v4629_v8 }
 0xd34   :  { %v9922_v21 = vpop.eup %9921 }
 0xd35   :  { %v4633_v4 = vmul.f32 %v9922_v21, %v4617_v12  ;;  %v11846_v12 = vld [vmem:[%s12796_s1 + $0xa8] sm:$0xff]  }
 0xd37   :  { %v4639_v36 = vmul.f32 %v11663_v59, %v4633_v4 }
 0xd39   :  { %v11671_v18 = vadd.f32 %v11667_v61, %v4639_v36 }
 0xd3b   :  { %12944 = vst [vmem:[#allocation58_spill] sm:$0xff] %v11671_v18  ;;  %v11675_v57 = vpack.c.bf16 %v11671_v18, %v11671_v18 }
 0xd3d   :  { %9343 = vmatmul.mubr.msk.bf16.vlgmr.msra.gmra.mrb[128].mxu0 %vm430_vm1, %v11675_v57  ;;  %9351 = vmatmul.mubr.msk.bf16.vlgmr.msra.gmra.mrb[128].mxu1 %vm430_vm1, %v11675_v57 }
 0xd3e   :  { %9355 = vmatpush3.bf16.msra.mxu0 %v11684_v60  ;;  %9363 = vmatpush3.bf16.msra.mxu1 %v11690_v37 }
 0xd3f   :  { %9356 = vmatprep.subr.bf16.mxu0 %v12942_v0  ;;  %9364 = vmatprep.subr.bf16.mxu1 %v12942_v0 }
 0xd40   :  { %9358 = vmatprep.mubr.msk.bf16.mxu0 %vm10181_vm0, %v12942_v0  ;;  %9366 = vmatprep.mubr.msk.bf16.mxu1 %vm10181_vm0, %v12942_v0 }
 0xd42   :  { %9357 = vmatpush3.bf16.msra.mxu0 %v11702_v2  ;;  %9365 = vmatpush3.bf16.msra.mxu1 %v11708_v42 }
 0xd43   :  { %9370 = vmatprep.subr.bf16.mxu0 %v12942_v0  ;;  %9378 = vmatprep.subr.bf16.mxu1 %v12942_v0 }
 0xd45   :  { %9359 = vmatmul.mubr.msk.bf16.vlgmr.msra.gmra.mrb[132].mxu0 %vm430_vm1, %v11675_v57  ;;  %9367 = vmatmul.mubr.msk.bf16.vlgmr.msra.gmra.mrb[132].mxu1 %vm430_vm1, %v11675_v57 }
 0xd46   :  { %9371 = vmatpush3.bf16.msra.mxu0 %v11720_v51  ;;  %9379 = vmatpush3.bf16.msra.mxu1 %v11726_v14 }
 0xd47   :  { %9372 = vmatprep.subr.bf16.mxu0 %v12942_v0  ;;  %9380 = vmatprep.subr.bf16.mxu1 %v12942_v0 }
 0xd48   :  { %9374 = vmatprep.mubr.msk.bf16.mxu0 %vm10181_vm0, %v12942_v0  ;;  %9382 = vmatprep.mubr.msk.bf16.mxu1 %vm10181_vm0, %v12942_v0 }
 0xd4a   :  { %9373 = vmatpush3.bf16.msra.mxu0 %v11738_v41  ;;  %9381 = vmatpush3.bf16.msra.mxu1 %v11744_v13 }
 0xd4b   :  { %9386 = vmatprep.subr.bf16.mxu0 %v12942_v0  ;;  %9394 = vmatprep.subr.bf16.mxu1 %v12942_v0 }
 0xd4d   :  { %9375 = vmatmul.mubr.msk.bf16.vlgmr.msra.gmra.mrb[136].mxu0 %vm430_vm1, %v11675_v57  ;;  %9383 = vmatmul.mubr.msk.bf16.vlgmr.msra.gmra.mrb[136].mxu1 %vm430_vm1, %v11675_v57 }
 0xd4e   :  { %9387 = vmatpush3.bf16.msra.mxu0 %v11756_v3  ;;  %9395 = vmatpush3.bf16.msra.mxu1 %v11762_v19 }
 0xd4f   :  { %9388 = vmatprep.subr.bf16.mxu0 %v12942_v0  ;;  %9396 = vmatprep.subr.bf16.mxu1 %v12942_v0 }
 0xd50   :  { %9390 = vmatprep.mubr.msk.bf16.mxu0 %vm10181_vm0, %v12942_v0  ;;  %9398 = vmatprep.mubr.msk.bf16.mxu1 %vm10181_vm0, %v12942_v0 }
 0xd52   :  { %9389 = vmatpush3.bf16.msra.mxu0 %v11774_v33  ;;  %9397 = vmatpush3.bf16.msra.mxu1 %v11780_v40 }
 0xd53   :  { %9402 = vmatprep.subr.bf16.mxu0 %v12942_v0  ;;  %9410 = vmatprep.subr.bf16.mxu1 %v12942_v0 }
 0xd55   :  { %9391 = vmatmul.mubr.msk.bf16.vlgmr.msra.gmra.mrb[140].mxu0 %vm430_vm1, %v11675_v57  ;;  %9399 = vmatmul.mubr.msk.bf16.vlgmr.msra.gmra.mrb[140].mxu1 %vm430_vm1, %v11675_v57 }
 0xd56   :  { %9403 = vmatpush3.bf16.msra.mxu0 %v11792_v1  ;;  %9411 = vmatpush3.bf16.msra.mxu1 %v11798_v30 }
 0xd57   :  { %9404 = vmatprep.subr.bf16.mxu0 %v12942_v0  ;;  %9412 = vmatprep.subr.bf16.mxu1 %v12942_v0 }
 0xd58   :  { %9406 = vmatprep.mubr.msk.bf16.mxu0 %vm10181_vm0, %v12942_v0  ;;  %9414 = vmatprep.mubr.msk.bf16.mxu1 %vm10181_vm0, %v12942_v0 }
 0xd5a   :  { %9405 = vmatpush3.bf16.msra.mxu0 %v11810_v5  ;;  %9413 = vmatpush3.bf16.msra.mxu1 %v11816_v28 }
 0xd5b   :  { %9418 = vmatprep.subr.bf16.mxu0 %v12942_v0  ;;  %9426 = vmatprep.subr.bf16.mxu1 %v12942_v0 }
 0xd5d   :  { %9407 = vmatmul.mubr.msk.bf16.vlgmr.msra.gmra.mrb[144].mxu0 %vm430_vm1, %v11675_v57  ;;  %9415 = vmatmul.mubr.msk.bf16.vlgmr.msra.gmra.mrb[144].mxu1 %vm430_vm1, %v11675_v57 }
 0xd5e   :  { %9419 = vmatpush3.bf16.msra.mxu0 %v11828_v34  ;;  %9427 = vmatpush3.bf16.msra.mxu1 %v11834_v45 }
 0xd5f   :  { %9420 = vmatprep.subr.bf16.mxu0 %v12942_v0  ;;  %9428 = vmatprep.subr.bf16.mxu1 %v12942_v0 }
 0xd60   :  { %9422 = vmatprep.mubr.msk.bf16.mxu0 %vm10181_vm0, %v12942_v0  ;;  %9430 = vmatprep.mubr.msk.bf16.mxu1 %vm10181_vm0, %v12942_v0 }
 0xd62   :  { %9421 = vmatpush3.bf16.msra.mxu0 %v11846_v12  ;;  %9429 = vmatpush3.bf16.msra.mxu1 %v11852_v55 }
 0xd63   :  { %9434 = vmatprep.subr.bf16.mxu0 %v12942_v0  ;;  %9440 = vmatprep.subr.bf16.mxu1 %v12942_v0 }
 0xd65   :  { %9423 = vmatmul.mubr.msk.bf16.vlgmr.msra.gmra.mrb[148].mxu0 %vm430_vm1, %v11675_v57  ;;  %9431 = vmatmul.mubr.msk.bf16.vlgmr.msra.gmra.mrb[148].mxu1 %vm430_vm1, %v11675_v57 }
 0xd66   :  { %9436 = vmatprep.mubr.msk.bf16.mxu0 %vm10181_vm0, %v12942_v0  ;;  %9442 = vmatprep.mubr.msk.bf16.mxu1 %vm10181_vm0, %v12942_v0 }
 0xe10   :  { %v4685_v43 = vpop.f32.mrb[128].mxu0  ;;  %v4725_v63 = vpop.f32.mrb[128].mxu1 }
 0xe11   :  { %v9344_v25 = vpop.f32.mrb[129].mxu0  ;;  %v9352_v8 = vpop.f32.mrb[129].mxu1 }
 0xe12   :  { %v4688_v21 = vpop.f32.mrb[130].mxu0  ;;  %v4728_v4 = vpop.f32.mrb[130].mxu1 }
 0xe13   :  { %v9345_v36 = vpop.f32.mrb[131].mxu0  ;;  %v9353_v22 = vpop.f32.mrb[131].mxu1 }
 0xe14   :  { %v11874_v22 = vld [vmem:[%s12798_s3 + $0x5] ss:$0 sm:$0xff] }
 0xe18   :  { %v4765_v26 = vpop.f32.mrb[132].mxu0  ;;  %v4805_v49 = vpop.f32.mrb[132].mxu1 }
 0xe19   :  { %v9360_v48 = vpop.f32.mrb[133].mxu0  ;;  %v9368_v46 = vpop.f32.mrb[133].mxu1 }
 0xe1a   :  { %v4768_v38 = vpop.f32.mrb[134].mxu0  ;;  %v4808_v57 = vpop.f32.mrb[134].mxu1 }
 0xe1b   :  { %v9361_v29 = vpop.f32.mrb[135].mxu0  ;;  %v9369_v16 = vpop.f32.mrb[135].mxu1 }
 0xe1c   :  { %v11880_v16 = vld [vmem:[%s12798_s3] ss:$0 sm:$0xff] }
 0xe1d   :  { %v4686_v29 = vadd.f32 %v11880_v16, %v4685_v43 }
 0xe1f   :  { %v5131_v56 = vmul.f32 0.35355338, %v4686_v29  ;;  %v11902_v29 = vld [vmem:[%s12798_s3 + $0x7] ss:$0 sm:$0xff] }
 0xe20   :  { %v4845_v15 = vpop.f32.mrb[136].mxu0  ;;  %v4885_v24 = vpop.f32.mrb[136].mxu1 }
 0xe21   :  { %v4846_v25 = vadd.f32 %v11868_v20, %v4845_v15  ;;  %v4886_v46 = vadd.f32 %v11874_v22, %v4885_v24  ;;  %v9376_v38 = vpop.f32.mrb[137].mxu0  ;;  %v9384_v48 = vpop.f32.mrb[137].mxu1  ;;  %v11886_v15 = vld [vmem:[%s12798_s3 + $0x1] ss:$0 sm:$0xff] }
 0xe22   :  { %v4726_v8 = vadd.f32 %v11886_v15, %v4725_v63  ;;  %v4848_v21 = vpop.f32.mrb[138].mxu0  ;;  %v4888_v4 = vpop.f32.mrb[138].mxu1 }
 0xe23   :  { %v5139_v36 = vpack.c.bf16 %v4846_v25, %v4846_v25  ;;  %v5140_v24 = vpack.c.bf16 %v4886_v46, %v4886_v46  ;;  %v9377_v57 = vpop.f32.mrb[139].mxu0  ;;  %v9385_v38 = vpop.f32.mrb[139].mxu1  ;;  %v11896_v25 = vld [vmem:[%s12798_s3 + $0x6] ss:$0 sm:$0xff]  ;;  %v5135_v4 = vpack.c.bf16 %v5131_v56, %v5131_v56 }
 0xe24   :  { %v5132_v7 = vmul.f32 0.35355338, %v4726_v8  ;;  %v11908_v38 = vld [vmem:[%s12798_s3 + $0x2] ss:$0 sm:$0xff] }
 0xe25   :  { %v5147_v48 = vsel %vm1106_vm2, %v5139_v36, 0  ;;  %v5193_v35 = vsel %vm1106_vm2, %v5140_v24, 0  ;;  %12945 = vst [vmem:[#allocation59_spill] sm:$0xff] %v11908_v38 }
 0xe26   :  { %9435 = vmatpush3.bf16.xpose.msra.mxu0 %v5147_v48  ;;  %9441 = vmatpush3.bf16.xpose.msra.mxu1 %v5193_v35  ;;  %v5136_v36 = vpack.c.bf16 %v5132_v7, %v5132_v7  ;;  %v4766_v48 = vadd.f32 %v11908_v38, %v4765_v26 }
 0xe27   :  { %9446 = vmatprep.subr.bf16.mxu0 %v12942_v0  ;;  %9452 = vmatprep.subr.bf16.mxu1 %v12942_v0 }
 0xe28   :  { %v4925_v43 = vpop.f32.mrb[140].mxu0  ;;  %v4965_v63 = vpop.f32.mrb[140].mxu1  ;;  %v5133_v26 = vmul.f32 0.35355338, %v4766_v48 }
 0xe29   :  { %v4926_v46 = vadd.f32 %v11896_v25, %v4925_v43  ;;  %v4966_v35 = vadd.f32 %v11902_v29, %v4965_v63  ;;  %v9392_v8 = vpop.f32.mrb[141].mxu0  ;;  %v9400_v21 = vpop.f32.mrb[141].mxu1  ;;  %v11914_v43 = vld [vmem:[%s12798_s3 + $0x3] ss:$0 sm:$0xff] }
 0xe2a   :  { %v4928_v24 = vpop.f32.mrb[142].mxu0  ;;  %v4968_v57 = vpop.f32.mrb[142].mxu1  ;;  %v4806_v63 = vadd.f32 %v11914_v43, %v4805_v49 }
 0xe2b   :  { %v5141_v8 = vpack.c.bf16 %v4926_v46, %v4926_v46  ;;  %v5142_v21 = vpack.c.bf16 %v4966_v35, %v4966_v35  ;;  %v9393_v56 = vpop.f32.mrb[143].mxu0  ;;  %v9401_v7 = vpop.f32.mrb[143].mxu1  ;;  %v11930_v35 = vld [vmem:[%s12798_s3 + $0x8] ss:$0 sm:$0xff] }
 0xe2c   :  { %v5134_v9 = vmul.f32 0.35355338, %v4806_v63  ;;  %12946 = vst [vmem:[#allocation60_spill] sm:$0xff] %v11930_v35  ;;  %v5137_v7 = vpack.c.bf16 %v5133_v26, %v5133_v26 }
 0xe2d   :  { %v5239_v24 = vsel %vm1106_vm2, %v5141_v8, 0  ;;  %v5285_v57 = vsel %vm1106_vm2, %v5142_v21, 0  ;;  %9437 = vmatmul.mubr.msk.bf16.vlgmr.msra.gmra.mrb[152].mxu0 %vm1106_vm2, %v5135_v4  ;;  %9443 = vmatmul.mubr.msk.bf16.vlgmr.msra.gmra.mrb[152].mxu1 %vm1106_vm2, %v5136_v36  ;;  %v11936_v36 = vld [vmem:[%s12798_s3 + $0x9] ss:$0 sm:$0xff] }
 0xe2e   :  { %9447 = vmatpush3.bf16.xpose.msra.mxu0 %v5239_v24  ;;  %9453 = vmatpush3.bf16.xpose.msra.mxu1 %v5285_v57  ;;  %12947 = vst [vmem:[#allocation61_spill] sm:$0xff] %v11936_v36  ;;  %v5138_v24 = vpack.c.bf16 %v5134_v9, %v5134_v9 }
 0xe2f   :  { %9448 = vmatprep.mubr.msk.bf16.mxu0 %vm10181_vm0, %v12942_v0  ;;  %9454 = vmatprep.mubr.msk.bf16.mxu1 %vm10181_vm0, %v12942_v0 }
 0xe30   :  { %v5005_v49 = vpop.f32.mrb[144].mxu0  ;;  %v5045_v46 = vpop.f32.mrb[144].mxu1  ;;  %9458 = vmatprep.subr.bf16.mxu0 %v12942_v0  ;;  %9464 = vmatprep.subr.bf16.mxu1 %v12942_v0 }
 0xe31   :  { %v5006_v4 = vadd.f32 %v11930_v35, %v5005_v49  ;;  %v5046_v48 = vadd.f32 %v11936_v36, %v5045_v46  ;;  %v9408_v63 = vpop.f32.mrb[145].mxu0  ;;  %v9416_v8 = vpop.f32.mrb[145].mxu1 }
 0xe32   :  { %v5008_v21 = vpop.f32.mrb[146].mxu0  ;;  %v5048_v56 = vpop.f32.mrb[146].mxu1 }
 0xe33   :  { %v5375_v57 = vpack.c.bf16 %v5006_v4, %v5006_v4  ;;  %v5376_v62 = vpack.c.bf16 %v5046_v48, %v5046_v48  ;;  %v9409_v10 = vpop.f32.mrb[147].mxu0  ;;  %v9417_v52 = vpop.f32.mrb[147].mxu1 }
 0xe35   :  { %v5383_v53 = vsel %vm1346_vm3, %v5375_v57, 0  ;;  %v5429_v49 = vsel %vm1346_vm3, %v5376_v62, 0  ;;  %9449 = vmatmul.mubr.msk.bf16.vlgmr.msra.gmra.mrb[156].mxu0 %vm1106_vm2, %v5137_v7  ;;  %9455 = vmatmul.mubr.msk.bf16.vlgmr.msra.gmra.mrb[156].mxu1 %vm1106_vm2, %v5138_v24 }
 0xe36   :  { %9459 = vmatpush3.bf16.msra.mxu0 %v5383_v53  ;;  %9465 = vmatpush3.bf16.msra.mxu1 %v5429_v49 }
 0xe37   :  { %9460 = vmatprep.mubr.msk.bf16.mxu0 %vm10181_vm0, %v12942_v0  ;;  %9466 = vmatprep.mubr.msk.bf16.mxu1 %vm10181_vm0, %v12942_v0 }
 0xe38   :  { %v11947_v9 = vpop.f32.mrb[148].mxu0  ;;  %v11949_v10 = vpop.f32.mrb[148].mxu1  ;;  %9470 = vmatprep.subr.bf16.mxu0 %v12942_v0  ;;  %9476 = vmatprep.subr.bf16.mxu1 %v12942_v0 }
 0xe39   :  { %v9424_v52 = vpop.f32.mrb[149].mxu0  ;;  %v9432_v62 = vpop.f32.mrb[149].mxu1 }
 0xe3a   :  { %v5088_v26 = vpop.f32.mrb[150].mxu0  ;;  %v5128_v46 = vpop.f32.mrb[150].mxu1 }
 0xe3b   :  { %v9425_v53 = vpop.f32.mrb[151].mxu0  ;;  %v9433_v4 = vpop.f32.mrb[151].mxu1 }
 0xf00   :  { %v5183_v48 = vpop.f32.mrb[152].mxu0  ;;  %v5229_v63 = vpop.f32.mrb[152].mxu1 }
 0xf01   :  { %v9438_v8 = vpop.f32.mrb[153].mxu0  ;;  %v9444_v21 = vpop.f32.mrb[153].mxu1  ;;  %v5330_v56 = vsel %vm1106_vm2, %v5229_v63, -inf  ;;  %v5327_v7 = vsel %vm1106_vm2, %v5183_v48, -inf }
 0xf02   :  { %5331 = vmax.xlane.f32.xlu1 %v5330_v56  ;;  %v5232_v24 = vpop.f32.mrb[154].mxu1  ;;  %5328 = vmax.xlane.f32.xlu0 %v5327_v7  ;;  %v5186_v57 = vpop.f32.mrb[154].mxu0 }
 0xf03   :  { %v9439_v49 = vpop.f32.mrb[155].mxu0  ;;  %v9445_v54 = vpop.f32.mrb[155].mxu1 }
 0xf08   :  { %v5275_v52 = vpop.f32.mrb[156].mxu0  ;;  %v5321_v62 = vpop.f32.mrb[156].mxu1 }
 0xf09   :  { %v9450_v26 = vpop.f32.mrb[157].mxu0  ;;  %v9456_v46 = vpop.f32.mrb[157].mxu1  ;;  %v5336_v53 = vsel %vm1106_vm2, %v5321_v62, -inf  ;;  %v5333_v4 = vsel %vm1106_vm2, %v5275_v52, -inf }
 0xf0a   :  { %5337 = vmax.xlane.f32.xlu1 %v5336_v53  ;;  %v5324_v8 = vpop.f32.mrb[158].mxu1  ;;  %5334 = vmax.xlane.f32.xlu0 %v5333_v4  ;;  %v5278_v21 = vpop.f32.mrb[158].mxu0 }
 0xf0b   :  { %v9451_v47 = vpop.f32.mrb[159].mxu0  ;;  %v9457_v18 = vpop.f32.mrb[159].mxu1 }
 0xf8f   :  { %v5332_v56 = vpop.xlane.xlu1 %5331  ;;  %v5329_v24 = vpop.xlane.xlu0 %5328 }
 0xf90   :  { %v5340_v7 = vsub.f32 %v5229_v63, %v5332_v56  ;;  %v5339_v57 = vsub.f32 %v5183_v48, %v5329_v24 }
 0xf92   :  { %v5345_v49 = vmul.f32 1.442695, %v5340_v7  ;;  %v5343_v54 = vmul.f32 1.442695, %v5339_v57 }
 0xf94   :  { %9923 = vpow2.f32 %v5345_v49 }
 0xf95   :  { %9925 = vpow2.f32 %v5343_v54 }
 0xf97   :  { %v5338_v26 = vpop.xlane.xlu1 %5337  ;;  %v5335_v46 = vpop.xlane.xlu0 %5334 }
 0xf98   :  { %v5342_v11 = vsub.f32 %v5321_v62, %v5338_v26  ;;  %v5341_v35 = vsub.f32 %v5275_v52, %v5335_v46  ;;  %v11967_v52 = vld [vmem:[%s12798_s3 + $0xb] ss:$0 sm:$0xff] }
 0xf99   :  { %v5126_v21 = vadd.f32 %v11967_v52, %v11949_v10 }
 0xf9a   :  { %v5349_v36 = vmul.f32 1.442695, %v5342_v11  ;;  %v5347_v38 = vmul.f32 1.442695, %v5341_v35  ;;  %v4608_v11 = vadd.f32 %v11656_v44, %v10952_v17  ;;  %v11974_v17 = vld [vmem:[%s12798_s3 + $0xa] ss:$0 sm:$0xff] }
 0xf9b   :  { %v5086_v44 = vadd.f32 %v11974_v17, %v11947_v9  ;;  %v5378_v49 = vpack.c.bf16 %v5126_v21, %v5126_v21  ;;  %s10156_s3 = scalar_lea.vmem %s8068_s27, 256 }
 0xf9c   :  { %9927 = vpow2.f32 %v5349_v36  ;;  %p10157_p0 = scmp.ne.s32.totalorder %s8068_s27, %s10156_s3  ;;  %p10162_p2 = scmp.lt.s32.totalorder %s10156_s3, %s10156_s3 }
 0xf9d   :  { %9929 = vpow2.f32 %v5347_v38  ;;  %v4612_v38 = vsel %vm430_vm1, %v4608_v11, 0.0  ;;  %v5377_v26 = vpack.c.bf16 %v5086_v44, %v5086_v44 }
 0xf9e   :  { %v9924_v53 = vpop.eup %9923  ;;  %p10163_p3 = por %p10162_p2, %p10161_p1 }
 0xf9f   :  { %v9926_v4 = vpop.eup %9925  ;;  %v5354_v47 = vsel %vm1106_vm2, %v9924_v53, 0.0  ;;  %v5475_v9 = vsel %vm1346_vm3, %v5377_v26, 0 }
 0xfa0   :  { %5355 = vadd.xlane.f32.xlu1 %v5354_v47  ;;  %v5351_v18 = vsel %vm1106_vm2, %v9926_v4, 0.0  ;;  %p10164_p4 = pnand %p10163_p3, %p10157_p0 }
 0xfa1   :  { %5352 = vadd.xlane.f32.xlu0 %v5351_v18 }
 0xfa6   :  { %v9928_v48 = vpop.eup %9927 }
 0xfa7   :  { %v9930_v63 = vpop.eup %9929  ;;  %v5360_v8 = vsel %vm1106_vm2, %v9928_v48, 0.0 }
 0xfa8   :  { %5361 = vadd.xlane.f32.xlu1 %v5360_v8  ;;  %v5357_v62 = vsel %vm1106_vm2, %v9930_v63, 0.0 }
 0xfa9   :  { %5358 = vadd.xlane.f32.xlu0 %v5357_v62  ;;  %v5521_v62 = vsel %vm1346_vm3, %v5378_v49, 0 }
 0xfad   :  { %4613 = vadd.xlane.f32.xlu0 %v4612_v38 }
0x102d   :  { %v5356_v35 = vpop.xlane.xlu1 %5355 }
0x102e   :  { %9931 = vrcp.f32 %v5356_v35  ;;  %v5353_v36 = vpop.xlane.xlu0 %5352 }
0x102f   :  { %9933 = vrcp.f32 %v5353_v36 }
0x1035   :  { %v5362_v56 = vpop.xlane.xlu1 %5361 }
0x1036   :  { %9935 = vrcp.f32 %v5362_v56  ;;  %v5359_v24 = vpop.xlane.xlu0 %5358 }
0x1037   :  { %9937 = vrcp.f32 %v5359_v24 }
0x1038   :  { %v9932_v7 = vpop.eup %9931 }
0x1039   :  { %v9934_v57 = vpop.eup %9933  ;;  %v5368_v54 = vmul.f32 %v9932_v7, %v9924_v53 }
0x103a   :  { %v5367_v46 = vmul.f32 %v9934_v57, %v9926_v4  ;;  %v4614_v47 = vpop.xlane.xlu0 %4613 }
0x103b   :  { %v4616_v10 = vmul.f32 0.03125, %v4614_v47  ;;  %v5372_v18 = vpack.c.bf16 %v5368_v54, %v5368_v54 }
0x103c   :  { %v5371_v8 = vpack.c.bf16 %v5367_v46, %v5367_v46 }
0x103d   :  { %v4618_v38 = vsub.f32 %v4608_v11, %v4616_v10  ;;  %9467 = vmatmul.mubr.msk.bf16.vlgmr.msra.gmra.mrb[160].mxu1 %vm1106_vm2, %v5372_v18 }
0x103e   :  { %9461 = vmatmul.mubr.msk.bf16.vlgmr.msra.gmra.mrb[160].mxu0 %vm1106_vm2, %v5371_v8  ;;  %9477 = vmatpush3.bf16.msra.mxu1 %v5521_v62 }
0x103f   :  { %9471 = vmatpush3.bf16.msra.mxu0 %v5475_v9  ;;  %v4620_v35 = vmul.f32 %v4618_v38, %v4618_v38  ;;  %9472 = vmatprep.mubr.msk.bf16.mxu0 %vm10181_vm0, %v12942_v0 }
0x1040   :  { %v9936_v53 = vpop.eup %9935  ;;  %9478 = vmatprep.mubr.msk.bf16.mxu1 %vm10181_vm0, %v12942_v0  ;;  %9482 = vmatprep.subr.bf16.mxu0 %v12942_v0 }
0x1041   :  { %v9938_v4 = vpop.eup %9937  ;;  %v5370_v11 = vmul.f32 %v9936_v53, %v9928_v48  ;;  %v4624_v36 = vsel %vm430_vm1, %v4620_v35, 0.0  ;;  %9488 = vmatprep.subr.bf16.mxu1 %v12942_v0 }
0x1042   :  { %v5369_v21 = vmul.f32 %v9938_v4, %v9930_v63  ;;  %4625 = vadd.xlane.f32.xlu1 %v4624_v36 }
0x1043   :  { %v5374_v56 = vpack.c.bf16 %v5370_v11, %v5370_v11 }
0x1044   :  { %v5373_v44 = vpack.c.bf16 %v5369_v21, %v5369_v21 }
0x1045   :  { %9479 = vmatmul.mubr.msk.bf16.vlgmr.msra.gmra.mrb[164].mxu1 %vm1106_vm2, %v5374_v56 }
0x1046   :  { %9473 = vmatmul.mubr.msk.bf16.vlgmr.msra.gmra.mrb[164].mxu0 %vm1106_vm2, %v5373_v44  ;;  %9489 = vmatpush3.bf16.msra.mxu1 %v10556_v32 }
0x1047   :  { %9483 = vmatpush3.bf16.msra.mxu0 %v10541_v27  ;;  %9484 = vmatprep.mubr.msk.bf16.mxu0 %vm10181_vm0, %v12942_v0 }
0x1048   :  { %9490 = vmatprep.mubr.msk.bf16.mxu1 %vm10181_vm0, %v12942_v0  ;;  %9494 = vmatprep.subr.bf16.mxu0 %v12942_v0 }
0x1049   :  { %9500 = vmatprep.subr.bf16.mxu1 %v12942_v0 }
0x10cf   :  { %v4626_v48 = vpop.xlane.xlu1 %4625 }
0x10d0   :  { %v4628_v63 = vmul.f32 0.03125, %v4626_v48 }
0x10d2   :  { %v4630_v24 = vadd.f32 1e-05, %v4628_v63 }
0x10d4   :  { %9939 = vrsqrt.f32 %v4630_v24 }
0x10de   :  { %v9940_v26 = vpop.eup %9939 }
0x10df   :  { %v4634_v9 = vmul.f32 %v9940_v26, %v4618_v38 }
0x10e1   :  { %v4640_v53 = vmul.f32 %v11663_v59, %v4634_v9 }
0x10e3   :  { %v12014_v24 = vadd.f32 %v11667_v61, %v4640_v53 }
0x1110   :  { %v5465_v7 = vpop.f32.mrb[160].mxu1 }
0x1111   :  { %v5419_v57 = vpop.f32.mrb[160].mxu0  ;;  %v5564_v49 = vpack.c.bf16 %v5465_v7, %v5465_v7  ;;  %v9468_v54 = vpop.f32.mrb[161].mxu1 }
0x1112   :  { %v5563_v46 = vpack.c.bf16 %v5419_v57, %v5419_v57  ;;  %v9462_v47 = vpop.f32.mrb[161].mxu0  ;;  %v5468_v10 = vpop.f32.mrb[162].mxu1 }
0x1113   :  { %v5422_v18 = vpop.f32.mrb[162].mxu0  ;;  %v9469_v8 = vpop.f32.mrb[163].mxu1  ;;  %9491 = vmatmul.mubr.msk.bf16.vlgmr.msra.gmra.mrb[168].mxu1 %vm1106_vm2, %v5564_v49 }
0x1114   :  { %v9463_v62 = vpop.f32.mrb[163].mxu0  ;;  %9485 = vmatmul.mubr.msk.bf16.vlgmr.msra.gmra.mrb[168].mxu0 %vm1106_vm2, %v5563_v46  ;;  %9501 = vmatpush3.bf16.msra.mxu1 %v10574_v50 }
0x1115   :  { %9495 = vmatpush3.bf16.msra.mxu0 %v10564_v39  ;;  %9496 = vmatprep.mubr.msk.bf16.mxu0 %vm10181_vm0, %v12942_v0 }
0x1116   :  { %9502 = vmatprep.mubr.msk.bf16.mxu1 %vm10181_vm0, %v12942_v0  ;;  %9506 = vmatprep.subr.bf16.mxu0 %v12942_v0 }
0x1117   :  { %9514 = vmatprep.subr.bf16.mxu1 %v12942_v0 }
0x1118   :  { %v5557_v35 = vpop.f32.mrb[164].mxu1 }
0x1119   :  { %v5511_v4 = vpop.f32.mrb[164].mxu0  ;;  %v5566_v11 = vpack.c.bf16 %v5557_v35, %v5557_v35  ;;  %v9480_v36 = vpop.f32.mrb[165].mxu1 }
0x111a   :  { %v5565_v21 = vpack.c.bf16 %v5511_v4, %v5511_v4  ;;  %v9474_v38 = vpop.f32.mrb[165].mxu0  ;;  %v5560_v56 = vpop.f32.mrb[166].mxu1 }
0x111b   :  { %v5514_v44 = vpop.f32.mrb[166].mxu0  ;;  %v9481_v48 = vpop.f32.mrb[167].mxu1  ;;  %9503 = vmatmul.mubr.msk.bf16.vlgmr.msra.gmra.mrb[172].mxu1 %vm1106_vm2, %v5566_v11 }
0x111c   :  { %v9475_v63 = vpop.f32.mrb[167].mxu0  ;;  %9497 = vmatmul.mubr.msk.bf16.vlgmr.msra.gmra.mrb[172].mxu0 %vm1106_vm2, %v5565_v21  ;;  %9515 = vmatpush3.bf16.msra.mxu1 %v11622_v23  ;;  %v12026_v23 = vpack.c.bf16 %v12014_v24, %v12014_v24 }
0x111d   :  { %9507 = vmatpush3.bf16.msra.mxu0 %v11616_v31  ;;  %9516 = vmatprep.subr.bf16.mxu1 %v12942_v0 }
0x111e   :  { %9508 = vmatprep.subr.bf16.mxu0 %v12942_v0  ;;  %9510 = vmatprep.mubr.msk.bf16.mxu0 %vm10181_vm0, %v12942_v0 }
0x111f   :  { %9518 = vmatprep.mubr.msk.bf16.mxu1 %vm10181_vm0, %v12942_v0 }
0x1120   :  { %9517 = vmatpush3.bf16.msra.mxu1 %v11640_v6 }
0x1121   :  { %9509 = vmatpush3.bf16.msra.mxu0 %v11634_v58  ;;  %9530 = vmatprep.subr.bf16.mxu1 %v12942_v0 }
0x1122   :  { %9522 = vmatprep.subr.bf16.mxu0 %v12942_v0 }
0x1123   :  { %9519 = vmatmul.mubr.msk.bf16.vlgmr.msra.gmra.mrb[176].mxu1 %vm430_vm1, %v12026_v23 }
0x1124   :  { %9511 = vmatmul.mubr.msk.bf16.vlgmr.msra.gmra.mrb[176].mxu0 %vm430_vm1, %v12026_v23  ;;  %9531 = vmatpush3.bf16.msra.mxu1 %v11690_v37 }
0x1125   :  { %9523 = vmatpush3.bf16.msra.mxu0 %v11684_v60  ;;  %9532 = vmatprep.subr.bf16.mxu1 %v12942_v0 }
0x1126   :  { %9524 = vmatprep.subr.bf16.mxu0 %v12942_v0  ;;  %9526 = vmatprep.mubr.msk.bf16.mxu0 %vm10181_vm0, %v12942_v0 }
0x1127   :  { %9534 = vmatprep.mubr.msk.bf16.mxu1 %vm10181_vm0, %v12942_v0 }
0x1128   :  { %9533 = vmatpush3.bf16.msra.mxu1 %v11708_v42 }
0x1129   :  { %9525 = vmatpush3.bf16.msra.mxu0 %v11702_v2  ;;  %9546 = vmatprep.subr.bf16.mxu1 %v12942_v0 }
0x112a   :  { %9538 = vmatprep.subr.bf16.mxu0 %v12942_v0 }
0x112b   :  { %9535 = vmatmul.mubr.msk.bf16.vlgmr.msra.gmra.mrb[180].mxu1 %vm430_vm1, %v12026_v23 }
0x112c   :  { %9527 = vmatmul.mubr.msk.bf16.vlgmr.msra.gmra.mrb[180].mxu0 %vm430_vm1, %v12026_v23  ;;  %9547 = vmatpush3.bf16.msra.mxu1 %v11726_v14 }
0x112d   :  { %9539 = vmatpush3.bf16.msra.mxu0 %v11720_v51  ;;  %9548 = vmatprep.subr.bf16.mxu1 %v12942_v0 }
0x112e   :  { %9540 = vmatprep.subr.bf16.mxu0 %v12942_v0  ;;  %9542 = vmatprep.mubr.msk.bf16.mxu0 %vm10181_vm0, %v12942_v0 }
0x112f   :  { %9550 = vmatprep.mubr.msk.bf16.mxu1 %vm10181_vm0, %v12942_v0 }
0x1130   :  { %9549 = vmatpush3.bf16.msra.mxu1 %v11744_v13 }
0x1131   :  { %9541 = vmatpush3.bf16.msra.mxu0 %v11738_v41  ;;  %9562 = vmatprep.subr.bf16.mxu1 %v12942_v0 }
0x1132   :  { %9554 = vmatprep.subr.bf16.mxu0 %v12942_v0 }
0x1133   :  { %9551 = vmatmul.mubr.msk.bf16.vlgmr.msra.gmra.mrb[184].mxu1 %vm430_vm1, %v12026_v23 }
0x1134   :  { %9543 = vmatmul.mubr.msk.bf16.vlgmr.msra.gmra.mrb[184].mxu0 %vm430_vm1, %v12026_v23  ;;  %9563 = vmatpush3.bf16.msra.mxu1 %v11762_v19 }
0x1135   :  { %9555 = vmatpush3.bf16.msra.mxu0 %v11756_v3  ;;  %9564 = vmatprep.subr.bf16.mxu1 %v12942_v0 }
0x1136   :  { %9556 = vmatprep.subr.bf16.mxu0 %v12942_v0  ;;  %9558 = vmatprep.mubr.msk.bf16.mxu0 %vm10181_vm0, %v12942_v0 }
0x1137   :  { %9566 = vmatprep.mubr.msk.bf16.mxu1 %vm10181_vm0, %v12942_v0 }
0x1138   :  { %9565 = vmatpush3.bf16.msra.mxu1 %v11780_v40 }
0x1139   :  { %9557 = vmatpush3.bf16.msra.mxu0 %v11774_v33  ;;  %9578 = vmatprep.subr.bf16.mxu1 %v12942_v0 }
0x113a   :  { %9570 = vmatprep.subr.bf16.mxu0 %v12942_v0 }
0x113b   :  { %9567 = vmatmul.mubr.msk.bf16.vlgmr.msra.gmra.mrb[188].mxu1 %vm430_vm1, %v12026_v23 }
0x113c   :  { %9559 = vmatmul.mubr.msk.bf16.vlgmr.msra.gmra.mrb[188].mxu0 %vm430_vm1, %v12026_v23  ;;  %9579 = vmatpush3.bf16.msra.mxu1 %v11798_v30 }
0x113d   :  { %9571 = vmatpush3.bf16.msra.mxu0 %v11792_v1  ;;  %9580 = vmatprep.subr.bf16.mxu1 %v12942_v0 }
0x113e   :  { %9572 = vmatprep.subr.bf16.mxu0 %v12942_v0  ;;  %9574 = vmatprep.mubr.msk.bf16.mxu0 %vm10181_vm0, %v12942_v0 }
0x113f   :  { %9582 = vmatprep.mubr.msk.bf16.mxu1 %vm10181_vm0, %v12942_v0 }
0x1140   :  { %9581 = vmatpush3.bf16.msra.mxu1 %v11816_v28 }
0x1141   :  { %9573 = vmatpush3.bf16.msra.mxu0 %v11810_v5  ;;  %9594 = vmatprep.subr.bf16.mxu1 %v12942_v0 }
0x1142   :  { %9586 = vmatprep.subr.bf16.mxu0 %v12942_v0 }
0x1143   :  { %9583 = vmatmul.mubr.msk.bf16.vlgmr.msra.gmra.mrb[192].mxu1 %vm430_vm1, %v12026_v23 }
0x1144   :  { %9575 = vmatmul.mubr.msk.bf16.vlgmr.msra.gmra.mrb[192].mxu0 %vm430_vm1, %v12026_v23  ;;  %9595 = vmatpush3.bf16.msra.mxu1 %v11834_v45 }
0x1145   :  { %9587 = vmatpush3.bf16.msra.mxu0 %v11828_v34  ;;  %9596 = vmatprep.subr.bf16.mxu1 %v12942_v0 }
0x1146   :  { %9588 = vmatprep.subr.bf16.mxu0 %v12942_v0  ;;  %9590 = vmatprep.mubr.msk.bf16.mxu0 %vm10181_vm0, %v12942_v0 }
0x1147   :  { %9598 = vmatprep.mubr.msk.bf16.mxu1 %vm10181_vm0, %v12942_v0 }
0x1148   :  { %9597 = vmatpush3.bf16.msra.mxu1 %v11852_v55 }
0x1149   :  { %9589 = vmatpush3.bf16.msra.mxu0 %v11846_v12  ;;  %9608 = vmatprep.subr.bf16.mxu1 %v12942_v0 }
0x114a   :  { %9602 = vmatprep.subr.bf16.mxu0 %v12942_v0 }
0x114b   :  { %9599 = vmatmul.mubr.msk.bf16.vlgmr.msra.gmra.mrb[196].mxu1 %vm430_vm1, %v12026_v23 }
0x114c   :  { %9591 = vmatmul.mubr.msk.bf16.vlgmr.msra.gmra.mrb[196].mxu0 %vm430_vm1, %v12026_v23  ;;  %9610 = vmatprep.mubr.msk.bf16.mxu1 %vm10181_vm0, %v12942_v0 }
0x114d   :  { %9604 = vmatprep.mubr.msk.bf16.mxu0 %vm10181_vm0, %v12942_v0 }
0x11e6   :  { %v5647_v31 = vpop.f32.mrb[168].mxu1 }
0x11e7   :  { %v5604_v58 = vpop.f32.mrb[168].mxu0  ;;  %v5740_v6 = vsel %vm430_vm1, %v5647_v31, 0.0  ;;  %v9492_v60 = vpop.f32.mrb[169].mxu1 }
0x11e8   :  { %v5739_v37 = vsel %vm430_vm1, %v5604_v58, 0.0  ;;  %v9486_v2 = vpop.f32.mrb[169].mxu0  ;;  %v5650_v42 = vpop.f32.mrb[170].mxu1 }
0x11e9   :  { %v5741_v51 = vadd.f32 %v5740_v6, %v5739_v37  ;;  %v5607_v14 = vpop.f32.mrb[170].mxu0  ;;  %v9493_v41 = vpop.f32.mrb[171].mxu1 }
0x11ea   :  { %v9487_v13 = vpop.f32.mrb[171].mxu0 }
0x11ee   :  { %v5733_v3 = vpop.f32.mrb[172].mxu1 }
0x11ef   :  { %v5690_v19 = vpop.f32.mrb[172].mxu0  ;;  %v9504_v33 = vpop.f32.mrb[173].mxu1  ;;  %v5744_v45 = vsel %vm430_vm1, %v5733_v3, 0.0 }
0x11f0   :  { %v5742_v40 = vsel %vm430_vm1, %v5690_v19, 0.0  ;;  %v9498_v1 = vpop.f32.mrb[173].mxu0  ;;  %v5736_v30 = vpop.f32.mrb[174].mxu1 }
0x11f1   :  { %v5743_v5 = vadd.f32 %v5742_v40, %v5741_v51  ;;  %v5693_v28 = vpop.f32.mrb[174].mxu0  ;;  %v9505_v34 = vpop.f32.mrb[175].mxu1 }
0x11f2   :  { %v9499_v12 = vpop.f32.mrb[175].mxu0  ;;  %v12948_v34 = vld [vmem:[#allocation59_spill] sm:$0xff] }
0x11f3   :  { %v12123_v55 = vadd.f32 %v5744_v45, %v5743_v5 }
0x11f6   :  { %v5825_v7 = vpop.f32.mrb[176].mxu1 }
0x11f7   :  { %v5785_v57 = vpop.f32.mrb[176].mxu0  ;;  %v9520_v49 = vpop.f32.mrb[177].mxu1  ;;  %v5826_v23 = vadd.f32 %v11886_v15, %v5825_v7 }
0x11f8   :  { %v9512_v54 = vpop.f32.mrb[177].mxu0  ;;  %v5828_v26 = vpop.f32.mrb[178].mxu1  ;;  %v5786_v60 = vadd.f32 %v11880_v16, %v5785_v57 }
0x11f9   :  { %v5788_v46 = vpop.f32.mrb[178].mxu0  ;;  %v9521_v47 = vpop.f32.mrb[179].mxu1  ;;  %v12949_v26 = vld [vmem:[#allocation61_spill] sm:$0xff] }
0x11fa   :  { %v9513_v10 = vpop.f32.mrb[179].mxu0 }
0x11fb   :  { %v12950_v10 = vld [vmem:[#allocation60_spill] sm:$0xff] }
0x11fe   :  { %v5905_v18 = vpop.f32.mrb[180].mxu1 }
0x11ff   :  { %v5865_v8 = vpop.f32.mrb[180].mxu0  ;;  %v9536_v62 = vpop.f32.mrb[181].mxu1  ;;  %v5906_v40 = vadd.f32 %v11914_v43, %v5905_v18 }
0x1200   :  { %v9528_v9 = vpop.f32.mrb[181].mxu0  ;;  %v5908_v35 = vpop.f32.mrb[182].mxu1  ;;  %v5866_v45 = vadd.f32 %v12948_v34, %v5865_v8 }
0x1201   :  { %v5868_v53 = vpop.f32.mrb[182].mxu0  ;;  %v9537_v4 = vpop.f32.mrb[183].mxu1 }
0x1202   :  { %v9529_v11 = vpop.f32.mrb[183].mxu0  ;;  %v6233_v43 = vmul.f32 0.35355338, %v5866_v45 }
0x1204   :  { %v6237_v11 = vpack.c.bf16 %v6233_v43, %v6233_v43 }
0x1206   :  { %v5985_v36 = vpop.f32.mrb[184].mxu1 }
0x1207   :  { %v5945_v21 = vpop.f32.mrb[184].mxu0  ;;  %v5986_v38 = vadd.f32 %v11874_v22, %v5985_v36  ;;  %v9552_v56 = vpop.f32.mrb[185].mxu1  ;;  %v6232_v22 = vmul.f32 0.35355338, %v5826_v23 }
0x1208   :  { %v5946_v44 = vadd.f32 %v11868_v20, %v5945_v21  ;;  %v9544_v48 = vpop.f32.mrb[185].mxu0  ;;  %v5988_v63 = vpop.f32.mrb[186].mxu1  ;;  %v6231_v20 = vmul.f32 0.35355338, %v5786_v60 }
0x1209   :  { %v6240_v31 = vpack.c.bf16 %v5986_v38, %v5986_v38  ;;  %v5948_v58 = vpop.f32.mrb[186].mxu0  ;;  %v9553_v6 = vpop.f32.mrb[187].mxu1  ;;  %v6236_v33 = vpack.c.bf16 %v6232_v22, %v6232_v22 }
0x120a   :  { %v6239_v37 = vpack.c.bf16 %v5946_v44, %v5946_v44  ;;  %v9545_v2 = vpop.f32.mrb[187].mxu0  ;;  %v6235_v28 = vpack.c.bf16 %v6231_v20, %v6231_v20 }
0x120b   :  { %v6293_v42 = vsel %vm1106_vm2, %v6240_v31, 0 }
0x120c   :  { %v6247_v51 = vsel %vm1106_vm2, %v6239_v37, 0  ;;  %9609 = vmatpush3.bf16.xpose.msra.mxu1 %v6293_v42 }
0x120d   :  { %9603 = vmatpush3.bf16.xpose.msra.mxu0 %v6247_v51  ;;  %9620 = vmatprep.subr.bf16.mxu1 %v12942_v0 }
0x120e   :  { %v6065_v14 = vpop.f32.mrb[188].mxu1  ;;  %9614 = vmatprep.subr.bf16.mxu0 %v12942_v0 }
0x120f   :  { %v6025_v15 = vpop.f32.mrb[188].mxu0  ;;  %v6066_v41 = vadd.f32 %v11902_v29, %v6065_v14  ;;  %v9568_v13 = vpop.f32.mrb[189].mxu1 }
0x1210   :  { %v6026_v16 = vadd.f32 %v11896_v25, %v6025_v15  ;;  %v9560_v3 = vpop.f32.mrb[189].mxu0  ;;  %v6068_v19 = vpop.f32.mrb[190].mxu1  ;;  %v6234_v25 = vmul.f32 0.35355338, %v5906_v40 }
0x1211   :  { %v6242_v1 = vpack.c.bf16 %v6066_v41, %v6066_v41  ;;  %v6028_v30 = vpop.f32.mrb[190].mxu0  ;;  %v9569_v5 = vpop.f32.mrb[191].mxu1 }
0x1212   :  { %v6241_v12 = vpack.c.bf16 %v6026_v16, %v6026_v16  ;;  %v9561_v7 = vpop.f32.mrb[191].mxu0  ;;  %v6238_v9 = vpack.c.bf16 %v6234_v25, %v6234_v25 }
0x1213   :  { %v6385_v57 = vsel %vm1106_vm2, %v6242_v1, 0  ;;  %9611 = vmatmul.mubr.msk.bf16.vlgmr.msra.gmra.mrb[200].mxu1 %vm1106_vm2, %v6236_v33 }
0x1214   :  { %v6339_v29 = vsel %vm1106_vm2, %v6241_v12, 0  ;;  %9605 = vmatmul.mubr.msk.bf16.vlgmr.msra.gmra.mrb[200].mxu0 %vm1106_vm2, %v6235_v28  ;;  %9621 = vmatpush3.bf16.xpose.msra.mxu1 %v6385_v57 }
0x1215   :  { %9615 = vmatpush3.bf16.xpose.msra.mxu0 %v6339_v29  ;;  %9616 = vmatprep.mubr.msk.bf16.mxu0 %vm10181_vm0, %v12942_v0 }
0x1216   :  { %v6145_v49 = vpop.f32.mrb[192].mxu1  ;;  %9622 = vmatprep.mubr.msk.bf16.mxu1 %vm10181_vm0, %v12942_v0  ;;  %9626 = vmatprep.subr.bf16.mxu0 %v12942_v0 }
0x1217   :  { %v6105_v54 = vpop.f32.mrb[192].mxu0  ;;  %v6146_v46 = vadd.f32 %v12949_v26, %v6145_v49  ;;  %v9584_v47 = vpop.f32.mrb[193].mxu1  ;;  %9632 = vmatprep.subr.bf16.mxu1 %v12942_v0 }
0x1218   :  { %v6106_v18 = vadd.f32 %v12950_v10, %v6105_v54  ;;  %v9576_v8 = vpop.f32.mrb[193].mxu0  ;;  %v6148_v62 = vpop.f32.mrb[194].mxu1 }
0x1219   :  { %v6476_v35 = vpack.c.bf16 %v6146_v46, %v6146_v46  ;;  %v6108_v53 = vpop.f32.mrb[194].mxu0  ;;  %v9585_v4 = vpop.f32.mrb[195].mxu1 }
0x121a   :  { %v6475_v36 = vpack.c.bf16 %v6106_v18, %v6106_v18  ;;  %v9577_v21 = vpop.f32.mrb[195].mxu0 }
0x121b   :  { %v6529_v38 = vsel %vm1346_vm3, %v6476_v35, 0  ;;  %9623 = vmatmul.mubr.msk.bf16.vlgmr.msra.gmra.mrb[204].mxu1 %vm1106_vm2, %v6238_v9  ;;  %v12951_v9 = vld [vmem:[#allocation6_spill] sm:$0xff] }
0x121c   :  { %v6483_v56 = vsel %vm1346_vm3, %v6475_v36, 0  ;;  %9617 = vmatmul.mubr.msk.bf16.vlgmr.msra.gmra.mrb[204].mxu0 %vm1106_vm2, %v6237_v11  ;;  %9633 = vmatpush3.bf16.msra.mxu1 %v6529_v38  ;;  %v5746_v35 = vadd.f32 %v12123_v55, %v12951_v9  ;;  %v12952_v21 = vld [vmem:[#allocation58_spill] sm:$0xff] }
0x121d   :  { %9627 = vmatpush3.bf16.msra.mxu0 %v6483_v56  ;;  %9628 = vmatprep.mubr.msk.bf16.mxu0 %vm10181_vm0, %v12942_v0 }
0x121e   :  { %v12155_v44 = vpop.f32.mrb[196].mxu1  ;;  %9634 = vmatprep.mubr.msk.bf16.mxu1 %vm10181_vm0, %v12942_v0  ;;  %9638 = vmatprep.subr.bf16.mxu0 %v12942_v0  ;;  %v6847_v38 = vadd.f32 %v5746_v35, %v12952_v21  ;;  %v12957_v35 = vld [vmem:[#allocation14_spill] sm:$0xff] }
0x121f   :  { %v12160_v48 = vpop.f32.mrb[196].mxu0  ;;  %v9600_v63 = vpop.f32.mrb[197].mxu1  ;;  %9644 = vmatprep.subr.bf16.mxu1 %v12942_v0  ;;  %v6226_v55 = vadd.f32 %v11967_v52, %v12155_v44  ;;  %v12962_v21 = vld [vmem:[#allocation18_spill] sm:$0xff] }
0x1220   :  { %v9592_v23 = vpop.f32.mrb[197].mxu0  ;;  %v6228_v31 = vpop.f32.mrb[198].mxu1  ;;  %v6849_v56 = vsel %vm430_vm1, %v6847_v38, 0.0 }
0x1221   :  { %v6188_v58 = vpop.f32.mrb[198].mxu0  ;;  %v9601_v6 = vpop.f32.mrb[199].mxu1 }
0x1222   :  { %v9593_v60 = vpop.f32.mrb[199].mxu0  ;;  %v6186_v58 = vadd.f32 %v11974_v17, %v12160_v48 }
0x12e6   :  { %v6329_v37 = vpop.f32.mrb[200].mxu1 }
0x12e7   :  { %v6283_v2 = vpop.f32.mrb[200].mxu0  ;;  %v9612_v42 = vpop.f32.mrb[201].mxu1  ;;  %v6430_v51 = vsel %vm1106_vm2, %v6329_v37, -inf }
0x12e8   :  { %v9606_v22 = vpop.f32.mrb[201].mxu0  ;;  %6431 = vmax.xlane.f32.xlu1 %v6430_v51  ;;  %v6332_v20 = vpop.f32.mrb[202].mxu1  ;;  %v6427_v14 = vsel %vm1106_vm2, %v6283_v2, -inf  ;;  %v6477_v51 = vpack.c.bf16 %v6186_v58, %v6186_v58 }
0x12e9   :  { %6428 = vmax.xlane.f32.xlu0 %v6427_v14  ;;  %v6286_v15 = vpop.f32.mrb[202].mxu0  ;;  %v9613_v41 = vpop.f32.mrb[203].mxu1 }
0x12ea   :  { %v9607_v13 = vpop.f32.mrb[203].mxu0  ;;  %v6575_v17 = vsel %vm1346_vm3, %v6477_v51, 0 }
0x12ee   :  { %v6421_v16 = vpop.f32.mrb[204].mxu1 }
0x12ef   :  { %v6375_v3 = vpop.f32.mrb[204].mxu0  ;;  %v9624_v19 = vpop.f32.mrb[205].mxu1  ;;  %v6436_v33 = vsel %vm1106_vm2, %v6421_v16, -inf }
0x12f0   :  { %v9618_v40 = vpop.f32.mrb[205].mxu0  ;;  %6437 = vmax.xlane.f32.xlu1 %v6436_v33  ;;  %v6424_v1 = vpop.f32.mrb[206].mxu1  ;;  %v6433_v30 = vsel %vm1106_vm2, %v6375_v3, -inf }
0x12f1   :  { %6434 = vmax.xlane.f32.xlu0 %v6433_v30  ;;  %v6378_v5 = vpop.f32.mrb[206].mxu0  ;;  %v9625_v28 = vpop.f32.mrb[207].mxu1 }
0x12f2   :  { %v9619_v34 = vpop.f32.mrb[207].mxu0 }
0x1375   :  { %v6432_v45 = vpop.xlane.xlu1 %6431 }
0x1376   :  { %v6440_v12 = vsub.f32 %v6329_v37, %v6432_v45  ;;  %v6429_v7 = vpop.xlane.xlu0 %6428 }
0x1377   :  { %v6439_v57 = vsub.f32 %v6283_v2, %v6429_v7  ;;  %v6478_v2 = vpack.c.bf16 %v6226_v55, %v6226_v55 }
0x1378   :  { %v6445_v29 = vmul.f32 1.442695, %v6440_v12 }
0x1379   :  { %v6443_v25 = vmul.f32 1.442695, %v6439_v57  ;;  %v6621_v13 = vsel %vm1346_vm3, %v6478_v2, 0 }
0x137a   :  { %9941 = vpow2.f32 %v6445_v29  ;;  %v12953_v29 = vld [vmem:[#allocation7_spill] sm:$0xff] }
0x137b   :  { %9943 = vpow2.f32 %v6443_v25  ;;  %v12954_v25 = vld [vmem:[#allocation10_spill] sm:$0xff] }
0x137d   :  { %v6438_v43 = vpop.xlane.xlu1 %6437 }
0x137e   :  { %v6442_v49 = vsub.f32 %v6421_v16, %v6438_v43  ;;  %v6435_v54 = vpop.xlane.xlu0 %6434 }
0x137f   :  { %v6441_v26 = vsub.f32 %v6375_v3, %v6435_v54 }
0x1380   :  { %v6449_v46 = vmul.f32 1.442695, %v6442_v49 }
0x1381   :  { %v6447_v47 = vmul.f32 1.442695, %v6441_v26 }
0x1382   :  { %9945 = vpow2.f32 %v6449_v46 }
0x1383   :  { %9947 = vpow2.f32 %v6447_v47 }
0x1384   :  { %v9942_v10 = vpop.eup %9941 }
0x1385   :  { %v9944_v18 = vpop.eup %9943  ;;  %v6454_v8 = vsel %vm1106_vm2, %v9942_v10, 0.0 }
0x1386   :  { %6455 = vadd.xlane.f32.xlu1 %v6454_v8  ;;  %v6451_v62 = vsel %vm1106_vm2, %v9944_v18, 0.0  ;;  %v12955_v8 = vld [vmem:[#allocation9_spill] sm:$0xff] }
0x1387   :  { %6452 = vadd.xlane.f32.xlu0 %v6451_v62  ;;  %v12956_v62 = vld [vmem:[#allocation8_spill] sm:$0xff] }
0x138c   :  { %v9946_v53 = vpop.eup %9945 }
0x138d   :  { %v9948_v4 = vpop.eup %9947  ;;  %v6460_v11 = vsel %vm1106_vm2, %v9946_v53, 0.0 }
0x138e   :  { %6461 = vadd.xlane.f32.xlu1 %v6460_v11  ;;  %v6457_v36 = vsel %vm1106_vm2, %v9948_v4, 0.0  ;;  %v12960_v11 = vld [vmem:[#allocation13_spill] sm:$0xff] }
0x138f   :  { %6458 = vadd.xlane.f32.xlu0 %v6457_v36  ;;  %v12961_v36 = vld [vmem:[#allocation12_spill] sm:$0xff] }
0x1393   :  { %6850 = vadd.xlane.f32.xlu0 %v6849_v56 }
0x1413   :  { %v6456_v63 = vpop.xlane.xlu1 %6455 }
0x1414   :  { %9949 = vrcp.f32 %v6456_v63  ;;  %v6453_v23 = vpop.xlane.xlu0 %6452 }
0x1415   :  { %9951 = vrcp.f32 %v6453_v23 }
0x141b   :  { %v6462_v31 = vpop.xlane.xlu1 %6461 }
0x141c   :  { %9953 = vrcp.f32 %v6462_v31  ;;  %v6459_v6 = vpop.xlane.xlu0 %6458 }
0x141d   :  { %9955 = vrcp.f32 %v6459_v6 }
0x141e   :  { %v9950_v60 = vpop.eup %9949 }
0x141f   :  { %v9952_v37 = vpop.eup %9951  ;;  %v6468_v42 = vmul.f32 %v9950_v60, %v9942_v10 }
0x1420   :  { %v6467_v22 = vmul.f32 %v9952_v37, %v9944_v18  ;;  %v6851_v20 = vpop.xlane.xlu0 %6850 }
0x1421   :  { %v6855_v14 = vmul.f32 0.03125, %v6851_v20  ;;  %v6472_v15 = vpack.c.bf16 %v6468_v42, %v6468_v42 }
0x1422   :  { %v6471_v41 = vpack.c.bf16 %v6467_v22, %v6467_v22 }
0x1423   :  { %v12180_v52 = vsub.f32 %v6847_v38, %v6855_v14  ;;  %9635 = vmatmul.mubr.msk.bf16.vlgmr.msra.gmra.mrb[208].mxu1 %vm1106_vm2, %v6472_v15  ;;  %v12963_v38 = vld [vmem:[#allocation15_spill] sm:$0xff] }
0x1424   :  { %9629 = vmatmul.mubr.msk.bf16.vlgmr.msra.gmra.mrb[208].mxu0 %vm1106_vm2, %v6471_v41  ;;  %9645 = vmatpush3.bf16.msra.mxu1 %v6621_v13 }
0x1425   :  { %9639 = vmatpush3.bf16.msra.mxu0 %v6575_v17  ;;  %v6859_v44 = vmul.f32 %v12180_v52, %v12180_v52  ;;  %9640 = vmatprep.mubr.msk.bf16.mxu0 %vm10181_vm0, %v12942_v0 }
0x1426   :  { %v9954_v48 = vpop.eup %9953  ;;  %9646 = vmatprep.mubr.msk.bf16.mxu1 %vm10181_vm0, %v12942_v0  ;;  %9650 = vmatprep.subr.bf16.mxu0 %v12942_v0 }
0x1427   :  { %v9956_v16 = vpop.eup %9955  ;;  %v6470_v3 = vmul.f32 %v9954_v48, %v9946_v53  ;;  %v6861_v19 = vsel %vm430_vm1, %v6859_v44, 0.0  ;;  %9656 = vmatprep.subr.bf16.mxu1 %v12942_v0  ;;  %v12958_v53 = vld [vmem:[#allocation11_spill] sm:$0xff] }
0x1428   :  { %v6469_v33 = vmul.f32 %v9956_v16, %v9948_v4  ;;  %6862 = vadd.xlane.f32.xlu0 %v6861_v19  ;;  %v12959_v4 = vmov 0  }
0x1429   :  { %v6474_v40 = vpack.c.bf16 %v6470_v3, %v6470_v3 }
0x142a   :  { %v6473_v1 = vpack.c.bf16 %v6469_v33, %v6469_v33 }
0x142b   :  { %9647 = vmatmul.mubr.msk.bf16.vlgmr.msra.gmra.mrb[212].mxu1 %vm1106_vm2, %v6474_v40 }
0x142c   :  { %9641 = vmatmul.mubr.msk.bf16.vlgmr.msra.gmra.mrb[212].mxu0 %vm1106_vm2, %v6473_v1  ;;  %9657 = vmatpush3.bf16.msra.mxu1 %v10556_v32 }
0x142d   :  { %9651 = vmatpush3.bf16.msra.mxu0 %v10541_v27  ;;  %9652 = vmatprep.mubr.msk.bf16.mxu0 %vm10181_vm0, %v12942_v0 }
0x142e   :  { %9658 = vmatprep.mubr.msk.bf16.mxu1 %vm10181_vm0, %v12942_v0  ;;  %9662 = vmatprep.subr.bf16.mxu0 %v12942_v0 }
0x142f   :  { %9668 = vmatprep.subr.bf16.mxu1 %v12942_v0 }
0x14f6   :  { %v6565_v30 = vpop.f32.mrb[208].mxu1 }
0x14f7   :  { %v6519_v5 = vpop.f32.mrb[208].mxu0  ;;  %v6664_v28 = vpack.c.bf16 %v6565_v30, %v6565_v30  ;;  %v9636_v34 = vpop.f32.mrb[209].mxu1 }
0x14f8   :  { %v6663_v45 = vpack.c.bf16 %v6519_v5, %v6519_v5  ;;  %v9630_v12 = vpop.f32.mrb[209].mxu0  ;;  %v6568_v7 = vpop.f32.mrb[210].mxu1 }
0x14f9   :  { %v6522_v32 = vpop.f32.mrb[210].mxu0  ;;  %v9637_v57 = vpop.f32.mrb[211].mxu1  ;;  %9659 = vmatmul.mubr.msk.bf16.vlgmr.msra.gmra.mrb[216].mxu1 %vm1106_vm2, %v6664_v28 }
0x14fa   :  { %v9631_v27 = vpop.f32.mrb[211].mxu0  ;;  %9653 = vmatmul.mubr.msk.bf16.vlgmr.msra.gmra.mrb[216].mxu0 %vm1106_vm2, %v6663_v45  ;;  %9669 = vmatpush3.bf16.msra.mxu1 %v10574_v50  ;;  %v6863_v45 = vpop.xlane.xlu0 %6862 }
0x14fb   :  { %9663 = vmatpush3.bf16.msra.mxu0 %v10564_v39  ;;  %9664 = vmatprep.mubr.msk.bf16.mxu0 %vm10181_vm0, %v12942_v0  ;;  %v6867_v12 = vmul.f32 0.03125, %v6863_v45  ;;  %v10050_v45 = vld [vmem:[%s12802_s7 + $0x28] sm:$0xff]  }
0x14fc   :  { %9670 = vmatprep.mubr.msk.bf16.mxu1 %vm10181_vm0, %v12942_v0  ;;  %6883 = vmatprep.subr.bf16.mxu0 %v12953_v29 }
0x14fd   :  { %6926 = vmatprep.subr.bf16.mxu1 %v12954_v25  ;;  %v6869_v7 = vadd.f32 1e-05, %v6867_v12  ;;  %v12964_v25 = vld [vmem:[#allocation19_spill] sm:$0xff]  ;;  %v10051_v12 = vld [vmem:[%s12802_s7 + $0xa8] sm:$0xff]  }
0x14fe   :  { %v6657_v43 = vpop.f32.mrb[212].mxu1 }
0x14ff   :  { %v6611_v49 = vpop.f32.mrb[212].mxu0  ;;  %v6666_v54 = vpack.c.bf16 %v6657_v43, %v6657_v43  ;;  %v9648_v26 = vpop.f32.mrb[213].mxu1  ;;  %9957 = vrsqrt.f32 %v6869_v7  ;;  %v10052_v7 = vld [vmem:[%s12802_s7 + $0x70] sm:$0xff]  }
0x1500   :  { %v6665_v46 = vpack.c.bf16 %v6611_v49, %v6611_v49  ;;  %v9642_v47 = vpop.f32.mrb[213].mxu0  ;;  %v6660_v10 = vpop.f32.mrb[214].mxu1  ;;  %v12965_v26 = vld [vmem:[#allocation20_spill] sm:$0xff] }
0x1501   :  { %v6614_v50 = vpop.f32.mrb[214].mxu0  ;;  %v9649_v18 = vpop.f32.mrb[215].mxu1  ;;  %9671 = vmatmul.mubr.msk.bf16.vlgmr.msra.gmra.mrb[220].mxu1 %vm1106_vm2, %v6666_v54 }
0x1502   :  { %v9643_v39 = vpop.f32.mrb[215].mxu0  ;;  %9665 = vmatmul.mubr.msk.bf16.vlgmr.msra.gmra.mrb[220].mxu0 %vm1106_vm2, %v6665_v46  ;;  %6927 = vmatpush1.bf16.msra.mxu1 %v12955_v8  ;;  %v12967_v50 = vld [vmem:[#allocation17_spill] sm:$0xff]  ;;  %v12970_v8 = vld [vmem:[#allocation23_spill] sm:$0xff] }
0x1503   :  { %6884 = vmatpush1.bf16.msra.mxu0 %v12956_v62  ;;  %6928 = vmatprep.subr.bf16.mxu1 %v12957_v35  ;;  %v12968_v18 = vld [vmem:[#allocation21_spill] sm:$0xff]  ;;  %v12969_v39 = vld [vmem:[#allocation22_spill] sm:$0xff]  ;;  %v12971_v62 = vld [vmem:[#allocation24_spill] sm:$0xff] }
0x1504   :  { %6885 = vmatprep.subr.bf16.mxu0 %v12958_v53  ;;  %6915 = vmatprep.mubr.bf16.mxu0 %v12959_v4  ;;  %v12972_v35 = vld [vmem:[#allocation25_spill] sm:$0xff]  ;;  %v12973_v53 = vld [vmem:[#allocation26_spill] sm:$0xff] }
0x1505   :  { %6958 = vmatprep.mubr.bf16.mxu1 %v12959_v4 }
0x1506   :  { %6929 = vmatpush1.bf16.msra.mxu1 %v12960_v11  ;;  %v12974_v11 = vld [vmem:[#allocation27_spill] sm:$0xff] }
0x1507   :  { %6886 = vmatpush1.bf16.msra.mxu0 %v12961_v36  ;;  %7012 = vmatprep.subr.bf16.mxu1 %v12962_v21  ;;  %v12975_v36 = vld [vmem:[#allocation28_spill] sm:$0xff]  ;;  %v12976_v21 = vld [vmem:[#allocation29_spill] sm:$0xff] }
0x1508   :  { %6969 = vmatprep.subr.bf16.mxu0 %v12963_v38  ;;  %v12977_v38 = vld [vmem:[#allocation30_spill] sm:$0xff] }
0x15cc   :  { %v6747_v56 = vpop.f32.mrb[216].mxu1 }
0x15cd   :  { %v6704_v63 = vpop.f32.mrb[216].mxu0  ;;  %v6840_v23 = vsel %vm430_vm1, %v6747_v56, 0.0  ;;  %v9660_v55 = vpop.f32.mrb[217].mxu1  ;;  %v12978_v56 = vld [vmem:[#allocation31_spill] sm:$0xff] }
0x15ce   :  { %v6839_v31 = vsel %vm430_vm1, %v6704_v63, 0.0  ;;  %v9654_v58 = vpop.f32.mrb[217].mxu0  ;;  %v6750_v6 = vpop.f32.mrb[218].mxu1  ;;  %v12979_v63 = vld [vmem:[#allocation32_spill] sm:$0xff]  ;;  %v12981_v55 = vld [vmem:[#allocation34_spill] sm:$0xff] }
0x15cf   :  { %v6841_v60 = vadd.f32 %v6840_v23, %v6839_v31  ;;  %v6707_v37 = vpop.f32.mrb[218].mxu0  ;;  %v9661_v2 = vpop.f32.mrb[219].mxu1  ;;  %v12980_v23 = vld [vmem:[#allocation33_spill] sm:$0xff]  ;;  %v12982_v31 = vld [vmem:[#allocation35_spill] sm:$0xff]  ;;  %v12983_v58 = vld [vmem:[#allocation36_spill] sm:$0xff] }
0x15d0   :  { %v9655_v42 = vpop.f32.mrb[219].mxu0  ;;  %v12984_v6 = vld [vmem:[#allocation37_spill] sm:$0xff]  ;;  %v12986_v37 = vld [vmem:[#allocation39_spill] sm:$0xff]  ;;  %v12987_v2 = vld [vmem:[#allocation40_spill] sm:$0xff] }
0x15d1   :  { %v10028_v42 = vld [vmem:[%s12802_s7 + $0x40] sm:$0xff]  }
0x15d4   :  { %v6833_v51 = vpop.f32.mrb[220].mxu1 }
0x15d5   :  { %v6790_v22 = vpop.f32.mrb[220].mxu0  ;;  %v9672_v20 = vpop.f32.mrb[221].mxu1  ;;  %v6844_v48 = vsel %vm430_vm1, %v6833_v51, 0.0  ;;  %v10029_v51 = vld [vmem:[%s12802_s7 + $0xc0] sm:$0xff]  }
0x15d6   :  { %v6842_v14 = vsel %vm430_vm1, %v6790_v22, 0.0  ;;  %v9666_v15 = vpop.f32.mrb[221].mxu0  ;;  %v6836_v41 = vpop.f32.mrb[222].mxu1  ;;  %v10031_v22 = vld [vmem:[%s12802_s7 + $0x80] sm:$0xff]   ;;  %v10032_v20 = vld [vmem:[%s12802_s7 + $0x48] sm:$0xff]  }
0x15d7   :  { %v6843_v13 = vadd.f32 %v6842_v14, %v6841_v60  ;;  %v6793_v17 = vpop.f32.mrb[222].mxu0  ;;  %v9673_v44 = vpop.f32.mrb[223].mxu1  ;;  %v12985_v60 = vld [vmem:[#allocation38_spill] sm:$0xff]  ;;  %v10033_v14 = vld [vmem:[%s12802_s7 + $0xc8] sm:$0xff]  }
0x15d8   :  { %v9667_v16 = vpop.f32.mrb[223].mxu0  ;;  %v10034_v15 = vld [vmem:[%s12802_s7 + $0x8] sm:$0xff]   ;;  %v10037_v17 = vld [vmem:[%s12802_s7 + $0xd0] sm:$0xff]  }
0x15d9   :  { %v6845_v3 = vadd.f32 %v6844_v48, %v6843_v13  ;;  %v10035_v41 = vld [vmem:[%s12802_s7 + $0x88] sm:$0xff]   ;;  %v10036_v13 = vld [vmem:[%s12802_s7 + $0x50] sm:$0xff]   ;;  %v10040_v16 = vld [vmem:[%s12802_s7 + $0x58] sm:$0xff]  }
0x15da   :  { %v10038_v44 = vld [vmem:[%s12802_s7 + $0x10] sm:$0xff]  }
0x15db   :  { %v6846_v19 = vadd.f32 %v6845_v3, %v12951_v9  ;;  %v9958_v9 = vpop.eup %9957  ;;  %v10039_v48 = vld [vmem:[%s12802_s7 + $0x90] sm:$0xff]   ;;  %v10041_v3 = vld [vmem:[%s12802_s7 + $0xd8] sm:$0xff]  }
0x15dd   :  { %v6848_v33 = vadd.f32 %v6846_v19, %v12014_v24  ;;  %v6873_v24 = vmul.f32 %v9958_v9, %v12180_v52  ;;  %v12966_v52 = vld [vmem:[#allocation16_spill] sm:$0xff]  ;;  %v10042_v19 = vld [vmem:[%s12802_s7 + $0x18] sm:$0xff]  }
0x15de   :  { %v10056_v9 = vld [vmem:[%s12802_s7 + $0x78] sm:$0xff]  }
0x15df   :  { %v6852_v40 = vsel %vm430_vm1, %v6848_v33, 0.0  ;;  %v6875_v43 = vmul.f32 %v6873_v24, %v12964_v25  ;;  %v10057_v24 = vld [vmem:[%s12802_s7 + $0xf8] sm:$0xff]  }
0x15e0   :  { %6853 = vadd.xlane.f32.xlu1 %v6852_v40  ;;  %v10044_v40 = vld [vmem:[%s12802_s7 + $0x60] sm:$0xff]  }
0x15e1   :  { %v12238_v46 = vadd.f32 %v6875_v43, %v12965_v26  ;;  %v10060_v43 = vld [vmem:[%s12802_s7 + $0x140] sm:$0xff]  }
0x166d   :  { %v6854_v1 = vpop.xlane.xlu1 %6853 }
0x166e   :  { %v6856_v30 = vmul.f32 0.03125, %v6854_v1  ;;  %v10045_v1 = vld [vmem:[%s12802_s7 + $0xe0] sm:$0xff]  }
0x1670   :  { %v6858_v5 = vsub.f32 %v6848_v33, %v6856_v30  ;;  %v10043_v33 = vld [vmem:[%s12802_s7 + $0x98] sm:$0xff]   ;;  %v10046_v30 = vld [vmem:[%s12802_s7 + $0x20] sm:$0xff]  }
0x1672   :  { %v6860_v28 = vmul.f32 %v6858_v5, %v6858_v5 }
0x1674   :  { %v6864_v34 = vsel %vm430_vm1, %v6860_v28, 0.0  ;;  %v10048_v28 = vld [vmem:[%s12802_s7 + $0x68] sm:$0xff]  }
0x1675   :  { %6865 = vadd.xlane.f32.xlu1 %v6864_v34  ;;  %v10049_v34 = vld [vmem:[%s12802_s7 + $0xe8] sm:$0xff]  }
0x1702   :  { %v6866_v32 = vpop.xlane.xlu1 %6865 }
0x1703   :  { %v6868_v57 = vmul.f32 0.03125, %v6866_v32  ;;  %v10053_v32 = vld [vmem:[%s12802_s7 + $0xf0] sm:$0xff]  }
0x1705   :  { %v6870_v27 = vadd.f32 1e-05, %v6868_v57  ;;  %v10054_v57 = vld [vmem:[%s12802_s7 + $0x30] sm:$0xff]  }
0x1707   :  { %9959 = vrsqrt.f32 %v6870_v27  ;;  %v10055_v27 = vld [vmem:[%s12802_s7 + $0xb0] sm:$0xff]  }
0x1711   :  { %v9960_v29 = vpop.eup %9959 }
0x1712   :  { %v6874_v49 = vmul.f32 %v9960_v29, %v6858_v5  ;;  %v10047_v5 = vld [vmem:[%s12802_s7 + $0xa0] sm:$0xff]   ;;  %v10058_v29 = vld [vmem:[%s12802_s7 + $0x38] sm:$0xff]  }
0x1714   :  { %v6876_v54 = vmul.f32 %v6874_v49, %v12964_v25  ;;  %v10059_v25 = vld [vmem:[%s12802_s7 + $0xb8] sm:$0xff]   ;;  %v10061_v49 = vld [vmem:[%s12802_s7 + $0x1c0] sm:$0xff]  }
0x1716   :  { %v12241_v47 = vadd.f32 %v6876_v54, %v12965_v26 }
0x1718   :  { %v6879_v10 = vpack.c.bf16 %v12241_v47, %v12238_v46 }
0x171a   :  { %8382 = vmatmul.mubr.msk.bf16.vlgmr.msra.gmra.mrb[224].mxu0 %vm430_vm1, %v6879_v10  ;;  %8383 = vmatmul.mubr.msk.bf16.vlgmr.msra.gmra.mrb[224].mxu1 %vm430_vm1, %v6879_v10 }
0x171b   :  { %6970 = vmatpush1.bf16.msra.mxu0 %v12966_v52  ;;  %7013 = vmatpush1.bf16.msra.mxu1 %v12967_v50  ;;  %v12989_v50 = vld [vmem:[#allocation43_spill] sm:$0xff] }
0x171c   :  { %6971 = vmatprep.subr.bf16.mxu0 %v12968_v18  ;;  %7014 = vmatprep.subr.bf16.mxu1 %v12969_v39 }
0x171d   :  { %7001 = vmatprep.mubr.bf16.mxu0 %v12959_v4  ;;  %7044 = vmatprep.mubr.bf16.mxu1 %v12959_v4 }
0x171f   :  { %6972 = vmatpush1.bf16.msra.mxu0 %v12970_v8  ;;  %7015 = vmatpush1.bf16.msra.mxu1 %v12971_v62  ;;  %v12990_v62 = vld [vmem:[#allocation44_spill] sm:$0xff] }
0x1720   :  { %7055 = vmatprep.subr.bf16.mxu0 %v12972_v35  ;;  %7098 = vmatprep.subr.bf16.mxu1 %v12973_v53  ;;  %v12991_v53 = vld [vmem:[#allocation45_spill] sm:$0xff] }
0x1722   :  { %8384 = vmatmul.mubr.msk.bf16.vlgmr.msra.gmra.mrb[228].mxu0 %vm430_vm1, %v6879_v10  ;;  %8385 = vmatmul.mubr.msk.bf16.vlgmr.msra.gmra.mrb[228].mxu1 %vm430_vm1, %v6879_v10 }
0x1723   :  { %7056 = vmatpush1.bf16.msra.mxu0 %v12974_v11  ;;  %7099 = vmatpush1.bf16.msra.mxu1 %v12975_v36 }
0x1724   :  { %7057 = vmatprep.subr.bf16.mxu0 %v12976_v21  ;;  %7100 = vmatprep.subr.bf16.mxu1 %v12977_v38 }
0x1725   :  { %7087 = vmatprep.mubr.bf16.mxu0 %v12959_v4  ;;  %7130 = vmatprep.mubr.bf16.mxu1 %v12959_v4 }
0x1727   :  { %7058 = vmatpush1.bf16.msra.mxu0 %v12978_v56  ;;  %7101 = vmatpush1.bf16.msra.mxu1 %v12979_v63 }
0x1728   :  { %7141 = vmatprep.subr.bf16.mxu0 %v12980_v23  ;;  %7184 = vmatprep.subr.bf16.mxu1 %v12981_v55 }
0x172a   :  { %8386 = vmatmul.mubr.msk.bf16.vlgmr.msra.gmra.mrb[232].mxu0 %vm430_vm1, %v6879_v10  ;;  %8387 = vmatmul.mubr.msk.bf16.vlgmr.msra.gmra.mrb[232].mxu1 %vm430_vm1, %v6879_v10 }
0x172b   :  { %7142 = vmatpush1.bf16.msra.mxu0 %v12982_v31  ;;  %7185 = vmatpush1.bf16.msra.mxu1 %v12983_v58 }
0x172c   :  { %7143 = vmatprep.subr.bf16.mxu0 %v12984_v6  ;;  %7186 = vmatprep.subr.bf16.mxu1 %v12985_v60 }
0x172d   :  { %7173 = vmatprep.mubr.bf16.mxu0 %v12959_v4  ;;  %7216 = vmatprep.mubr.bf16.mxu1 %v12959_v4  ;;  %v10030_v4 = vld [vmem:[%s12802_s7] sm:$0xff]  }
0x172f   :  { %7144 = vmatpush1.bf16.msra.mxu0 %v12986_v37  ;;  %7187 = vmatpush1.bf16.msra.mxu1 %v12987_v2 }
0x1730   :  { %8812 = vmatprep.subr.bf16.mxu0 %v10028_v42  ;;  %8834 = vmatprep.subr.bf16.mxu1 %v10029_v51 }
0x1732   :  { %8388 = vmatmul.mubr.msk.bf16.vlgmr.msra.gmra.mrb[236].mxu0 %vm430_vm1, %v6879_v10  ;;  %8389 = vmatmul.mubr.msk.bf16.vlgmr.msra.gmra.mrb[236].mxu1 %vm430_vm1, %v6879_v10  ;;  %v12988_v10 = vld [vmem:[#allocation42_spill] sm:$0xff] }
0x1733   :  { %8813 = vmatpush3.bf16.msra.mxu0 %v10030_v4  ;;  %8835 = vmatpush3.bf16.msra.mxu1 %v10031_v22 }
0x1734   :  { %8814 = vmatprep.subr.bf16.mxu0 %v10032_v20  ;;  %8836 = vmatprep.subr.bf16.mxu1 %v10033_v14 }
0x1737   :  { %8815 = vmatpush3.bf16.msra.mxu0 %v10034_v15  ;;  %8837 = vmatpush3.bf16.msra.mxu1 %v10035_v41 }
0x1738   :  { %8816 = vmatprep.subr.bf16.mxu0 %v10036_v13  ;;  %8838 = vmatprep.subr.bf16.mxu1 %v10037_v17  ;;  %v12992_v17 = vld [vmem:[#allocation46_spill] sm:$0xff] }
0x173b   :  { %8817 = vmatpush3.bf16.msra.mxu0 %v10038_v44  ;;  %8839 = vmatpush3.bf16.msra.mxu1 %v10039_v48  ;;  %v12993_v48 = vld [vmem:[#allocation47_spill] sm:$0xff] }
0x173c   :  { %8818 = vmatprep.subr.bf16.mxu0 %v10040_v16  ;;  %8840 = vmatprep.subr.bf16.mxu1 %v10041_v3 }
0x173f   :  { %8819 = vmatpush3.bf16.msra.mxu0 %v10042_v19  ;;  %8841 = vmatpush3.bf16.msra.mxu1 %v10043_v33  ;;  %v12994_v33 = vld [vmem:[#allocation48_spill] sm:$0xff] }
0x1740   :  { %8820 = vmatprep.subr.bf16.mxu0 %v10044_v40  ;;  %8842 = vmatprep.subr.bf16.mxu1 %v10045_v1  ;;  %v12995_v1 = vld [vmem:[#allocation49_spill] sm:$0xff] }
0x1743   :  { %8821 = vmatpush3.bf16.msra.mxu0 %v10046_v30  ;;  %8843 = vmatpush3.bf16.msra.mxu1 %v10047_v5 }
0x1744   :  { %8822 = vmatprep.subr.bf16.mxu0 %v10048_v28  ;;  %8844 = vmatprep.subr.bf16.mxu1 %v10049_v34 }
0x1747   :  { %8823 = vmatpush3.bf16.msra.mxu0 %v10050_v45  ;;  %8845 = vmatpush3.bf16.msra.mxu1 %v10051_v12 }
0x1748   :  { %8824 = vmatprep.subr.bf16.mxu0 %v10052_v7  ;;  %8846 = vmatprep.subr.bf16.mxu1 %v10053_v32 }
0x174b   :  { %8825 = vmatpush3.bf16.msra.mxu0 %v10054_v57  ;;  %8847 = vmatpush3.bf16.msra.mxu1 %v10055_v27  ;;  %v10062_v27 = vld [vmem:[%s12802_s7 + $0x100] sm:$0xff]  }
0x174c   :  { %8826 = vmatprep.subr.bf16.mxu0 %v10056_v9  ;;  %8848 = vmatprep.subr.bf16.mxu1 %v10057_v24  ;;  %v10063_v9 = vld [vmem:[%s12802_s7 + $0x180] sm:$0xff]  }
0x174f   :  { %8827 = vmatpush3.bf16.msra.mxu0 %v10058_v29  ;;  %8849 = vmatpush3.bf16.msra.mxu1 %v10059_v25 }
0x1750   :  { %8856 = vmatprep.subr.bf16.mxu0 %v10060_v43  ;;  %8878 = vmatprep.subr.bf16.mxu1 %v10061_v49  ;;  %v10064_v49 = vld [vmem:[%s12802_s7 + $0x148] sm:$0xff]  }
0x17ed   :  { %v6917_v54 = vpop.f32.mrb[224].mxu0  ;;  %v6960_v26 = vpop.f32.mrb[224].mxu1 }
0x17ee   :  { %v6918_v52 = vadd.f32 %v6917_v54, %v12988_v10  ;;  %v6961_v18 = vadd.f32 %v6960_v26, %v12989_v50  ;;  %v6919_v39 = vpop.f32.mrb[225].mxu0  ;;  %v6962_v8 = vpop.f32.mrb[225].mxu1  ;;  %v10065_v54 = vld [vmem:[%s12802_s7 + $0x1c8] sm:$0xff]  }
0x17ef   :  { %v6920_v35 = vadd.f32 %v6919_v39, %v12990_v62  ;;  %v6963_v11 = vadd.f32 %v6962_v8, %v12991_v53  ;;  %v6921_v36 = vpop.f32.mrb[226].mxu0  ;;  %v6964_v21 = vpop.f32.mrb[226].mxu1 }
0x17f0   :  { %v6922_v38 = vadd.f32 %v6921_v36, %v12988_v10  ;;  %v6965_v56 = vadd.f32 %v6964_v21, %v12989_v50  ;;  %v6923_v63 = vpop.f32.mrb[227].mxu0  ;;  %v6966_v23 = vpop.f32.mrb[227].mxu1  ;;  %v7227_v58 = vmax.f32 %v6918_v52, 0.0  ;;  %v7229_v6 = vmax.f32 %v6961_v18, 0.0  ;;  %v12996_v21 = vld [vmem:[#allocation50_spill] sm:$0xff] }
0x17f1   :  { %v6924_v55 = vadd.f32 %v6923_v63, %v12990_v62  ;;  %v6967_v31 = vadd.f32 %v6966_v23, %v12991_v53  ;;  %v7228_v2 = vmax.f32 %v6920_v35, 0.0  ;;  %v7230_v42 = vmax.f32 %v6963_v11, 0.0  ;;  %v10066_v35 = vld [vmem:[%s12802_s7 + $0x108] sm:$0xff]  }
0x17f2   :  { %v7243_v60 = vmax.f32 %v6922_v38, 0.0  ;;  %v7245_v37 = vmax.f32 %v6965_v56, 0.0  ;;  %v10067_v53 = vld [vmem:[%s12802_s7 + $0x188] sm:$0xff]   ;;  %v12997_v56 = vld [vmem:[#allocation51_spill] sm:$0xff] }
0x17f3   :  { %v7244_v51 = vmax.f32 %v6924_v55, 0.0  ;;  %v7246_v4 = vmax.f32 %v6967_v31, 0.0  ;;  %v10068_v31 = vld [vmem:[%s12802_s7 + $0x150] sm:$0xff]  }
0x17f4   :  { %v7259_v22 = vpack.c.bf16 %v7243_v60, %v7227_v58  ;;  %v7261_v20 = vpack.c.bf16 %v7245_v37, %v7229_v6  ;;  %v10069_v58 = vld [vmem:[%s12802_s7 + $0x1d0] sm:$0xff]   ;;  %v12998_v6 = vld [vmem:[#allocation52_spill] sm:$0xff] }
0x17f5   :  { %v7260_v14 = vpack.c.bf16 %v7244_v51, %v7228_v2  ;;  %v7262_v15 = vpack.c.bf16 %v7246_v4, %v7230_v42  ;;  %v7003_v41 = vpop.f32.mrb[228].mxu0  ;;  %v7046_v13 = vpop.f32.mrb[228].mxu1  ;;  %v12999_v37 = vld [vmem:[#allocation53_spill] sm:$0xff] }
0x17f6   :  { %v7004_v44 = vadd.f32 %v7003_v41, %v12992_v17  ;;  %v7047_v16 = vadd.f32 %v7046_v13, %v12993_v48  ;;  %v7005_v3 = vpop.f32.mrb[229].mxu0  ;;  %v7048_v19 = vpop.f32.mrb[229].mxu1  ;;  %v10070_v13 = vld [vmem:[%s12802_s7 + $0x110] sm:$0xff]  }
0x17f7   :  { %v7006_v40 = vadd.f32 %v7005_v3, %v12994_v33  ;;  %v7049_v30 = vadd.f32 %v7048_v19, %v12995_v1  ;;  %v7007_v5 = vpop.f32.mrb[230].mxu0  ;;  %v7050_v28 = vpop.f32.mrb[230].mxu1  ;;  %7307 = vmatprep.mubr.bf16.mxu0 %v7260_v14  ;;  %7348 = vmatprep.mubr.bf16.mxu1 %v7262_v15  ;;  %v10072_v19 = vld [vmem:[%s12802_s7 + $0x158] sm:$0xff]  }
0x17f8   :  { %v7008_v34 = vadd.f32 %v7007_v5, %v12992_v17  ;;  %v7051_v45 = vadd.f32 %v7050_v28, %v12993_v48  ;;  %v7009_v12 = vpop.f32.mrb[231].mxu0  ;;  %v7052_v7 = vpop.f32.mrb[231].mxu1  ;;  %7308 = vmatmul.mubr.bf16.vlgmr.msra.gmra.mrb[240].mxu0 %v7259_v22  ;;  %7349 = vmatmul.mubr.bf16.vlgmr.msra.gmra.mrb[240].mxu1 %v7261_v20  ;;  %v7231_v24 = vmax.f32 %v7004_v44, 0.0  ;;  %v7233_v29 = vmax.f32 %v7047_v16, 0.0  ;;  %v10071_v17 = vld [vmem:[%s12802_s7 + $0x190] sm:$0xff]  }
0x17f9   :  { %v7010_v32 = vadd.f32 %v7009_v12, %v12994_v33  ;;  %v7053_v57 = vadd.f32 %v7052_v7, %v12995_v1  ;;  %8857 = vmatpush3.bf16.msra.mxu0 %v10062_v27  ;;  %8879 = vmatpush3.bf16.msra.mxu1 %v10063_v9  ;;  %v7232_v26 = vmax.f32 %v7006_v40, 0.0  ;;  %v7234_v10 = vmax.f32 %v7049_v30, 0.0  ;;  %v10073_v33 = vld [vmem:[%s12802_s7 + $0x1d8] sm:$0xff]  }
0x17fa   :  { %v7247_v25 = vmax.f32 %v7008_v34, 0.0  ;;  %v7249_v43 = vmax.f32 %v7051_v45, 0.0  ;;  %8858 = vmatprep.subr.bf16.mxu0 %v10064_v49  ;;  %8880 = vmatprep.subr.bf16.mxu1 %v10065_v54  ;;  %v10074_v7 = vld [vmem:[%s12802_s7 + $0x118] sm:$0xff]   ;;  %v10076_v54 = vld [vmem:[%s12802_s7 + $0x160] sm:$0xff]  }
0x17fb   :  { %v7248_v52 = vmax.f32 %v7010_v32, 0.0  ;;  %v7250_v50 = vmax.f32 %v7053_v57, 0.0  ;;  %v10075_v32 = vld [vmem:[%s12802_s7 + $0x198] sm:$0xff]  }
0x17fc   :  { %v12411_v18 = vpack.c.bf16 %v7247_v25, %v7231_v24  ;;  %v12413_v39 = vpack.c.bf16 %v7249_v43, %v7233_v29  ;;  %v13000_v9 = vld [vmem:[#allocation54_spill] sm:$0xff]  ;;  %v13001_v29 = vld [vmem:[#allocation41_spill] sm:$0xff] }
0x17fd   :  { %v7264_v8 = vpack.c.bf16 %v7248_v52, %v7232_v26  ;;  %v7266_v62 = vpack.c.bf16 %v7250_v50, %v7234_v10  ;;  %8859 = vmatpush3.bf16.msra.mxu0 %v10066_v35  ;;  %8881 = vmatpush3.bf16.msra.mxu1 %v10067_v53  ;;  %v7089_v11 = vpop.f32.mrb[232].mxu0  ;;  %v7132_v36 = vpop.f32.mrb[232].mxu1  ;;  %v10077_v26 = vld [vmem:[%s12802_s7 + $0x1e0] sm:$0xff]   ;;  %v13003_v50 = vld [vmem:[#allocation56_spill] sm:$0xff] }
0x17fe   :  { %v7090_v38 = vadd.f32 %v7089_v11, %v12996_v21  ;;  %v7133_v63 = vadd.f32 %v7132_v36, %v12997_v56  ;;  %v7091_v23 = vpop.f32.mrb[233].mxu0  ;;  %v7134_v55 = vpop.f32.mrb[233].mxu1  ;;  %8860 = vmatprep.subr.bf16.mxu0 %v10068_v31  ;;  %8882 = vmatprep.subr.bf16.mxu1 %v10069_v58  ;;  %v13002_v10 = vld [vmem:[#allocation55_spill] sm:$0xff] }
0x17ff   :  { %v7092_v60 = vadd.f32 %v7091_v23, %v12998_v6  ;;  %v7135_v2 = vadd.f32 %v7134_v55, %v12999_v37  ;;  %v7093_v42 = vpop.f32.mrb[234].mxu0  ;;  %v7136_v51 = vpop.f32.mrb[234].mxu1  ;;  %7389 = vmatprep.mubr.bf16.mxu0 %v7264_v8  ;;  %7430 = vmatprep.mubr.bf16.mxu1 %v7266_v62  ;;  %v10079_v23 = vld [vmem:[%s12802_s7 + $0x1a0] sm:$0xff]  }
0x1800   :  { %v7094_v4 = vadd.f32 %v7093_v42, %v12996_v21  ;;  %v7137_v22 = vadd.f32 %v7136_v51, %v12997_v56  ;;  %v7095_v20 = vpop.f32.mrb[235].mxu0  ;;  %v7138_v14 = vpop.f32.mrb[235].mxu1  ;;  %v7235_v44 = vmax.f32 %v7090_v38, 0.0  ;;  %v7237_v48 = vmax.f32 %v7133_v63, 0.0  ;;  %v10078_v63 = vld [vmem:[%s12802_s7 + $0x120] sm:$0xff]  }
0x1801   :  { %v7096_v15 = vadd.f32 %v7095_v20, %v12998_v6  ;;  %v7139_v41 = vadd.f32 %v7138_v14, %v12999_v37  ;;  %8861 = vmatpush3.bf16.msra.mxu0 %v10070_v13  ;;  %8883 = vmatpush3.bf16.msra.mxu1 %v10071_v17  ;;  %v7236_v40 = vmax.f32 %v7092_v60, 0.0  ;;  %v7238_v1 = vmax.f32 %v7135_v2, 0.0  ;;  %v10080_v60 = vld [vmem:[%s12802_s7 + $0x168] sm:$0xff]   ;;  %v10084_v17 = vld [vmem:[%s12802_s7 + $0x170] sm:$0xff]  }
0x1802   :  { %v7251_v16 = vmax.f32 %v7094_v4, 0.0  ;;  %v7253_v3 = vmax.f32 %v7137_v22, 0.0  ;;  %8862 = vmatprep.subr.bf16.mxu0 %v10072_v19  ;;  %8884 = vmatprep.subr.bf16.mxu1 %v10073_v33  ;;  %v10081_v37 = vld [vmem:[%s12802_s7 + $0x1e8] sm:$0xff]   ;;  %v10089_v19 = vld [vmem:[%s12802_s7 + $0x1f8] sm:$0xff]  }
0x1803   :  { %v7252_v30 = vmax.f32 %v7096_v15, 0.0  ;;  %v7254_v5 = vmax.f32 %v7139_v41, 0.0  ;;  %v10082_v41 = vld [vmem:[%s12802_s7 + $0x128] sm:$0xff]   ;;  %v10090_v33 = vld [vmem:[%s12802_s7 + $0x138] sm:$0xff]  }
0x1804   :  { %v12447_v28 = vpack.c.bf16 %v7251_v16, %v7235_v44  ;;  %v12449_v34 = vpack.c.bf16 %v7253_v3, %v7237_v48  ;;  %v10083_v13 = vld [vmem:[%s12802_s7 + $0x1a8] sm:$0xff]   ;;  %v10085_v44 = vld [vmem:[%s12802_s7 + $0x1f0] sm:$0xff]   ;;  %v10088_v3 = vld [vmem:[%s12802_s7 + $0x178] sm:$0xff]  }
0x1805   :  { %v12451_v45 = vpack.c.bf16 %v7252_v30, %v7236_v40  ;;  %v12453_v12 = vpack.c.bf16 %v7254_v5, %v7238_v1  ;;  %8863 = vmatpush3.bf16.msra.mxu0 %v10074_v7  ;;  %8885 = vmatpush3.bf16.msra.mxu1 %v10075_v32  ;;  %v7175_v57 = vpop.f32.mrb[236].mxu0  ;;  %v7218_v27 = vpop.f32.mrb[236].mxu1  ;;  %v10086_v48 = vld [vmem:[%s12802_s7 + $0x130] sm:$0xff]   ;;  %v10091_v40 = vld [vmem:[%s12802_s7 + $0x1b8] sm:$0xff]   ;;  %v10092_v1 = vld [vmem:[%s12802_s7 + $0x240] sm:$0xff]  }
0x1806   :  { %v7176_v24 = vadd.f32 %v7175_v57, %v13000_v9  ;;  %v7219_v25 = vadd.f32 %v7218_v27, %v13001_v29  ;;  %v7177_v43 = vpop.f32.mrb[237].mxu0  ;;  %v7220_v49 = vpop.f32.mrb[237].mxu1  ;;  %8864 = vmatprep.subr.bf16.mxu0 %v10076_v54  ;;  %8886 = vmatprep.subr.bf16.mxu1 %v10077_v26  ;;  %v10087_v16 = vld [vmem:[%s12802_s7 + $0x1b0] sm:$0xff]   ;;  %v10093_v30 = vld [vmem:[%s12802_s7 + $0x2c0] sm:$0xff]   ;;  %v10099_v32 = vld [vmem:[%s12802_s7 + $0x288] sm:$0xff]  }
0x1807   :  { %v7178_v52 = vadd.f32 %v7177_v43, %v13002_v10  ;;  %v7221_v8 = vadd.f32 %v7220_v49, %v13003_v50  ;;  %v7179_v62 = vpop.f32.mrb[238].mxu0  ;;  %v7222_v35 = vpop.f32.mrb[238].mxu1  ;;  %v10094_v5 = vld [vmem:[%s12802_s7 + $0x200] sm:$0xff]   ;;  %v10101_v57 = vld [vmem:[%s12802_s7 + $0x2d0] sm:$0xff]   ;;  %v10107_v43 = vld [vmem:[%s12802_s7 + $0x298] sm:$0xff]  }
0x1808   :  { %v7180_v53 = vadd.f32 %v7179_v62, %v13000_v9  ;;  %v7223_v11 = vadd.f32 %v7222_v35, %v13001_v29  ;;  %v7181_v36 = vpop.f32.mrb[239].mxu0  ;;  %v7224_v21 = vpop.f32.mrb[239].mxu1  ;;  %v7239_v55 = vmax.f32 %v7176_v24, 0.0  ;;  %v7241_v31 = vmax.f32 %v7219_v25, 0.0  ;;  %v10095_v7 = vld [vmem:[%s12802_s7 + $0x280] sm:$0xff]   ;;  %v10102_v27 = vld [vmem:[%s12802_s7 + $0x210] sm:$0xff]  }
0x1809   :  { %v7182_v38 = vadd.f32 %v7181_v36, %v13002_v10  ;;  %v7225_v56 = vadd.f32 %v7224_v21, %v13003_v50  ;;  %8865 = vmatpush3.bf16.msra.mxu0 %v10078_v63  ;;  %8887 = vmatpush3.bf16.msra.mxu1 %v10079_v23  ;;  %v7240_v2 = vmax.f32 %v7178_v52, 0.0  ;;  %v7242_v42 = vmax.f32 %v7221_v8, 0.0  ;;  %v10103_v9 = vld [vmem:[%s12802_s7 + $0x290] sm:$0xff]   ;;  %v10104_v24 = vld [vmem:[%s12802_s7 + $0x258] sm:$0xff]   ;;  %v10108_v49 = vld [vmem:[%s12802_s7 + $0x260] sm:$0xff]  }
0x180a   :  { %v7255_v58 = vmax.f32 %v7180_v53, 0.0  ;;  %v7257_v6 = vmax.f32 %v7223_v11, 0.0  ;;  %8866 = vmatprep.subr.bf16.mxu0 %v10080_v60  ;;  %8888 = vmatprep.subr.bf16.mxu1 %v10081_v37  ;;  %v10105_v29 = vld [vmem:[%s12802_s7 + $0x2d8] sm:$0xff]   ;;  %v10109_v54 = vld [vmem:[%s12802_s7 + $0x2e0] sm:$0xff]   ;;  %v10112_v52 = vld [vmem:[%s12802_s7 + $0x268] sm:$0xff]  }
0x180b   :  { %v7256_v51 = vmax.f32 %v7182_v38, 0.0  ;;  %v7258_v4 = vmax.f32 %v7225_v56, 0.0  ;;  %v10106_v25 = vld [vmem:[%s12802_s7 + $0x218] sm:$0xff]   ;;  %v10110_v26 = vld [vmem:[%s12802_s7 + $0x220] sm:$0xff]   ;;  %v10113_v50 = vld [vmem:[%s12802_s7 + $0x2e8] sm:$0xff]  }
0x180c   :  { %v12487_v22 = vpack.c.bf16 %v7255_v58, %v7239_v55  ;;  %v12489_v20 = vpack.c.bf16 %v7257_v6, %v7241_v31  ;;  %v10111_v10 = vld [vmem:[%s12802_s7 + $0x2a0] sm:$0xff]   ;;  %v10114_v8 = vld [vmem:[%s12802_s7 + $0x228] sm:$0xff]   ;;  %v10116_v35 = vld [vmem:[%s12802_s7 + $0x270] sm:$0xff]  }
0x180d   :  { %v12491_v14 = vpack.c.bf16 %v7256_v51, %v7240_v2  ;;  %v12493_v15 = vpack.c.bf16 %v7258_v4, %v7242_v42  ;;  %8867 = vmatpush3.bf16.msra.mxu0 %v10082_v41  ;;  %8889 = vmatpush3.bf16.msra.mxu1 %v10083_v13  ;;  %v10115_v62 = vld [vmem:[%s12802_s7 + $0x2a8] sm:$0xff]   ;;  %v10117_v53 = vld [vmem:[%s12802_s7 + $0x2f0] sm:$0xff]   ;;  %v10120_v21 = vld [vmem:[%s12802_s7 + $0x278] sm:$0xff]  }
0x180e   :  { %8868 = vmatprep.subr.bf16.mxu0 %v10084_v17  ;;  %8890 = vmatprep.subr.bf16.mxu1 %v10085_v44  ;;  %v10118_v11 = vld [vmem:[%s12802_s7 + $0x230] sm:$0xff]   ;;  %v10121_v38 = vld [vmem:[%s12802_s7 + $0x2f8] sm:$0xff]   ;;  %v10124_v23 = vld [vmem:[%s12802_s7 + $0x340] sm:$0xff]  }
0x180f   :  { %v10119_v36 = vld [vmem:[%s12802_s7 + $0x2b0] sm:$0xff]   ;;  %v10122_v56 = vld [vmem:[%s12802_s7 + $0x238] sm:$0xff]   ;;  %v10125_v55 = vld [vmem:[%s12802_s7 + $0x3c0] sm:$0xff]  }
0x1810   :  { %v10123_v63 = vld [vmem:[%s12802_s7 + $0x2b8] sm:$0xff]   ;;  %v10126_v31 = vld [vmem:[%s12802_s7 + $0x300] sm:$0xff]   ;;  %v10130_v6 = vld [vmem:[%s12802_s7 + $0x308] sm:$0xff]  }
0x1811   :  { %8869 = vmatpush3.bf16.msra.mxu0 %v10086_v48  ;;  %8891 = vmatpush3.bf16.msra.mxu1 %v10087_v16  ;;  %v10127_v58 = vld [vmem:[%s12802_s7 + $0x380] sm:$0xff]   ;;  %v10131_v60 = vld [vmem:[%s12802_s7 + $0x388] sm:$0xff]   ;;  %v10132_v37 = vld [vmem:[%s12802_s7 + $0x350] sm:$0xff]  }
0x1812   :  { %8870 = vmatprep.subr.bf16.mxu0 %v10088_v3  ;;  %8892 = vmatprep.subr.bf16.mxu1 %v10089_v19  ;;  %v10133_v2 = vld [vmem:[%s12802_s7 + $0x3d0] sm:$0xff]   ;;  %v10136_v4 = vld [vmem:[%s12802_s7 + $0x358] sm:$0xff]   ;;  %v10140_v13 = vld [vmem:[%s12802_s7 + $0x360] sm:$0xff]  }
0x1813   :  { %v10134_v42 = vld [vmem:[%s12802_s7 + $0x310] sm:$0xff]   ;;  %v10139_v41 = vld [vmem:[%s12802_s7 + $0x398] sm:$0xff]   ;;  %v10141_v17 = vld [vmem:[%s12802_s7 + $0x3e0] sm:$0xff]  }
0x1814   :  { %v10135_v51 = vld [vmem:[%s12802_s7 + $0x390] sm:$0xff]   ;;  %v10142_v44 = vld [vmem:[%s12802_s7 + $0x320] sm:$0xff]   ;;  %v10144_v16 = vld [vmem:[%s12802_s7 + $0x368] sm:$0xff]  }
0x1815   :  { %8871 = vmatpush3.bf16.msra.mxu0 %v10090_v33  ;;  %8893 = vmatpush3.bf16.msra.mxu1 %v10091_v40  ;;  %v10143_v48 = vld [vmem:[%s12802_s7 + $0x3a0] sm:$0xff]   ;;  %v10145_v3 = vld [vmem:[%s12802_s7 + $0x3e8] sm:$0xff]   ;;  %v10148_v40 = vld [vmem:[%s12802_s7 + $0x370] sm:$0xff]  }
0x1816   :  { %8900 = vmatprep.subr.bf16.mxu0 %v10092_v1  ;;  %8922 = vmatprep.subr.bf16.mxu1 %v10093_v30  ;;  %v10146_v19 = vld [vmem:[%s12802_s7 + $0x328] sm:$0xff]   ;;  %v10149_v1 = vld [vmem:[%s12802_s7 + $0x3f0] sm:$0xff]  }
0x1817   :  { %v10147_v33 = vld [vmem:[%s12802_s7 + $0x3a8] sm:$0xff]   ;;  %v10150_v30 = vld [vmem:[%s12802_s7 + $0x330] sm:$0xff]  }
0x1818   :  { %7390 = vmatmul.mubr.bf16.vlgmr.msra.gmra.mrb[244].mxu0 %v12411_v18  ;;  %7431 = vmatmul.mubr.bf16.vlgmr.msra.gmra.mrb[244].mxu1 %v12413_v39  ;;  %v10096_v18 = vld [vmem:[%s12802_s7 + $0x248] sm:$0xff]  }
0x1819   :  { %8901 = vmatpush3.bf16.msra.mxu0 %v10094_v5  ;;  %7471 = vmatprep.mubr.bf16.mxu0 %v12451_v45  ;;  %v10097_v39 = vld [vmem:[%s12802_s7 + $0x2c8] sm:$0xff]   ;;  %v10151_v5 = vld [vmem:[%s12802_s7 + $0x3b0] sm:$0xff]  }
0x181a   :  { %8923 = vmatpush3.bf16.msra.mxu1 %v10095_v7  ;;  %7512 = vmatprep.mubr.bf16.mxu1 %v12453_v12  ;;  %v10098_v45 = vld [vmem:[%s12802_s7 + $0x208] sm:$0xff]   ;;  %v10100_v12 = vld [vmem:[%s12802_s7 + $0x250] sm:$0xff]   ;;  %v10152_v7 = vld [vmem:[%s12802_s7 + $0x378] sm:$0xff]  }
0x181b   :  { %8902 = vmatprep.subr.bf16.mxu0 %v10096_v18  ;;  %8924 = vmatprep.subr.bf16.mxu1 %v10097_v39  ;;  %v10153_v18 = vld [vmem:[%s12802_s7 + $0x3f8] sm:$0xff]  }
0x181c   :  { %v10154_v39 = vld [vmem:[%s12802_s7 + $0x338] sm:$0xff]  }
0x181d   :  { %8903 = vmatpush3.bf16.msra.mxu0 %v10098_v45  ;;  %v10155_v45 = vld [vmem:[%s12802_s7 + $0x3b8] sm:$0xff]  }
0x181e   :  { %8925 = vmatpush3.bf16.msra.mxu1 %v10099_v32  ;;  %8904 = vmatprep.subr.bf16.mxu0 %v10100_v12 }
0x181f   :  { %8926 = vmatprep.subr.bf16.mxu1 %v10101_v57 }
0x1821   :  { %8905 = vmatpush3.bf16.msra.mxu0 %v10102_v27 }
0x1822   :  { %8927 = vmatpush3.bf16.msra.mxu1 %v10103_v9  ;;  %8906 = vmatprep.subr.bf16.mxu0 %v10104_v24 }
0x1823   :  { %8928 = vmatprep.subr.bf16.mxu1 %v10105_v29 }
0x1825   :  { %8907 = vmatpush3.bf16.msra.mxu0 %v10106_v25 }
0x1826   :  { %8929 = vmatpush3.bf16.msra.mxu1 %v10107_v43  ;;  %8908 = vmatprep.subr.bf16.mxu0 %v10108_v49 }
0x1827   :  { %8930 = vmatprep.subr.bf16.mxu1 %v10109_v54  ;;  %v13004_v54 = vld [vmem:[#allocation57_spill] sm:$0xff] }
0x1829   :  { %8909 = vmatpush3.bf16.msra.mxu0 %v10110_v26 }
0x182a   :  { %8931 = vmatpush3.bf16.msra.mxu1 %v10111_v10  ;;  %8910 = vmatprep.subr.bf16.mxu0 %v10112_v52 }
0x182b   :  { %8932 = vmatprep.subr.bf16.mxu1 %v10113_v50 }
0x182d   :  { %8911 = vmatpush3.bf16.msra.mxu0 %v10114_v8 }
0x182e   :  { %8933 = vmatpush3.bf16.msra.mxu1 %v10115_v62  ;;  %8912 = vmatprep.subr.bf16.mxu0 %v10116_v35 }
0x182f   :  { %8934 = vmatprep.subr.bf16.mxu1 %v10117_v53 }
0x1831   :  { %8913 = vmatpush3.bf16.msra.mxu0 %v10118_v11 }
0x1832   :  { %8935 = vmatpush3.bf16.msra.mxu1 %v10119_v36  ;;  %8914 = vmatprep.subr.bf16.mxu0 %v10120_v21 }
0x1833   :  { %8936 = vmatprep.subr.bf16.mxu1 %v10121_v38 }
0x1835   :  { %8915 = vmatpush3.bf16.msra.mxu0 %v10122_v56 }
0x1836   :  { %8937 = vmatpush3.bf16.msra.mxu1 %v10123_v63  ;;  %8944 = vmatprep.subr.bf16.mxu0 %v10124_v23 }
0x1837   :  { %8966 = vmatprep.subr.bf16.mxu1 %v10125_v55 }
0x1838   :  { %7472 = vmatmul.mubr.bf16.vlgmr.msra.gmra.mrb[248].mxu0 %v12447_v28  ;;  %v10128_v28 = vld [vmem:[%s12802_s7 + $0x348] sm:$0xff]  }
0x1839   :  { %7513 = vmatmul.mubr.bf16.vlgmr.msra.gmra.mrb[248].mxu1 %v12449_v34  ;;  %8945 = vmatpush3.bf16.msra.mxu0 %v10126_v31  ;;  %v10129_v34 = vld [vmem:[%s12802_s7 + $0x3c8] sm:$0xff]  }
0x183a   :  { %7553 = vmatprep.mubr.bf16.mxu0 %v12491_v14  ;;  %8967 = vmatpush3.bf16.msra.mxu1 %v10127_v58  ;;  %v10137_v14 = vld [vmem:[%s12802_s7 + $0x3d8] sm:$0xff]  }
0x183b   :  { %7594 = vmatprep.mubr.bf16.mxu1 %v12493_v15  ;;  %8946 = vmatprep.subr.bf16.mxu0 %v10128_v28  ;;  %v10138_v15 = vld [vmem:[%s12802_s7 + $0x318] sm:$0xff]  }
0x183c   :  { %8968 = vmatprep.subr.bf16.mxu1 %v10129_v34 }
0x183d   :  { %8947 = vmatpush3.bf16.msra.mxu0 %v10130_v6 }
0x183e   :  { %8969 = vmatpush3.bf16.msra.mxu1 %v10131_v60  ;;  %8948 = vmatprep.subr.bf16.mxu0 %v10132_v37 }
0x183f   :  { %8970 = vmatprep.subr.bf16.mxu1 %v10133_v2 }
0x1841   :  { %8949 = vmatpush3.bf16.msra.mxu0 %v10134_v42 }
0x1842   :  { %8971 = vmatpush3.bf16.msra.mxu1 %v10135_v51  ;;  %8950 = vmatprep.subr.bf16.mxu0 %v10136_v4 }
0x1843   :  { %8972 = vmatprep.subr.bf16.mxu1 %v10137_v14 }
0x1845   :  { %8951 = vmatpush3.bf16.msra.mxu0 %v10138_v15 }
0x1846   :  { %8973 = vmatpush3.bf16.msra.mxu1 %v10139_v41  ;;  %8952 = vmatprep.subr.bf16.mxu0 %v10140_v13 }
0x1847   :  { %8974 = vmatprep.subr.bf16.mxu1 %v10141_v17 }
0x1849   :  { %8953 = vmatpush3.bf16.msra.mxu0 %v10142_v44 }
0x184a   :  { %8975 = vmatpush3.bf16.msra.mxu1 %v10143_v48  ;;  %8954 = vmatprep.subr.bf16.mxu0 %v10144_v16 }
0x184b   :  { %8976 = vmatprep.subr.bf16.mxu1 %v10145_v3 }
0x184d   :  { %8955 = vmatpush3.bf16.msra.mxu0 %v10146_v19 }
0x184e   :  { %8977 = vmatpush3.bf16.msra.mxu1 %v10147_v33  ;;  %8956 = vmatprep.subr.bf16.mxu0 %v10148_v40 }
0x184f   :  { %8978 = vmatprep.subr.bf16.mxu1 %v10149_v1 }
0x1851   :  { %8957 = vmatpush3.bf16.msra.mxu0 %v10150_v30 }
0x1852   :  { %8979 = vmatpush3.bf16.msra.mxu1 %v10151_v5  ;;  %8958 = vmatprep.subr.bf16.mxu0 %v10152_v7 }
0x1853   :  { %8980 = vmatprep.subr.bf16.mxu1 %v10153_v18 }
0x1855   :  { %8959 = vmatpush3.bf16.msra.mxu0 %v10154_v39 }
0x1856   :  { %8981 = vmatpush3.bf16.msra.mxu1 %v10155_v45 }
0x1857   :  { %9685 = vmatprep.subr.mxu1 %v12942_v0 }
0x1858   :  { %7554 = vmatmul.mubr.bf16.vlgmr.msra.gmra.mrb[252].mxu0 %v12487_v22 }
0x1859   :  { %7595 = vmatmul.mubr.bf16.vlgmr.msra.gmra.mrb[252].mxu1 %v12489_v20  ;;  %9682 = vmatprep.mubr.msk.f32.mxu0 %vm10181_vm0, %v12942_v0 }
0x185a   :  { %9687 = vmatprep.mubr.msk.f32.mxu1 %vm10181_vm0, %v12942_v0 }
0x18cb   :  { %v8828_v32 = vpop.f32.mrb[240].mxu0  ;;  %v8850_v12 = vpop.f32.mrb[240].mxu1 }
0x18cc   :  { %v8829_v57 = vpop.f32.mrb[241].mxu0  ;;  %v8851_v27 = vpop.f32.mrb[241].mxu1 }
0x18cd   :  { %v8830_v9 = vadd.f32 %v8829_v57, %v8828_v32  ;;  %v8852_v24 = vadd.f32 %v8851_v27, %v8850_v12  ;;  %v8831_v29 = vpop.f32.mrb[242].mxu0  ;;  %v8853_v25 = vpop.f32.mrb[242].mxu1 }
0x18ce   :  { %v8832_v43 = vpop.f32.mrb[243].mxu0  ;;  %v8854_v49 = vpop.f32.mrb[243].mxu1 }
0x18cf   :  { %v7310_v22 = vadd.f32 %v8830_v9, %v13004_v54  ;;  %v8833_v26 = vadd.f32 %v8832_v43, %v8831_v29  ;;  %v8855_v20 = vadd.f32 %v8854_v49, %v8853_v25 }
0x18d1   :  { %v7351_v10 = vadd.f32 %v8852_v24, %v7310_v22  ;;  %v7313_v52 = vadd.f32 %v8833_v26, %v13004_v54 }
0x18d3   :  { %v7354_v50 = vadd.f32 %v8855_v20, %v7313_v52 }
0x18eb   :  { %v8872_v8 = vpop.f32.mrb[244].mxu0  ;;  %v8894_v62 = vpop.f32.mrb[244].mxu1 }
0x18ec   :  { %v8873_v35 = vpop.f32.mrb[245].mxu0  ;;  %v8895_v53 = vpop.f32.mrb[245].mxu1 }
0x18ed   :  { %v8874_v11 = vadd.f32 %v8873_v35, %v8872_v8  ;;  %v8896_v36 = vadd.f32 %v8895_v53, %v8894_v62  ;;  %v8875_v21 = vpop.f32.mrb[246].mxu0  ;;  %v8897_v38 = vpop.f32.mrb[246].mxu1  ;;  %v7638_v35 = vld [vmem:[%s12803_s8 + $0x8] sm:$0xff] }
0x18ee   :  { %v8876_v56 = vpop.f32.mrb[247].mxu0  ;;  %v8898_v63 = vpop.f32.mrb[247].mxu1 }
0x18ef   :  { %v7392_v23 = vadd.f32 %v8874_v11, %v7351_v10  ;;  %v8877_v55 = vadd.f32 %v8876_v56, %v8875_v21  ;;  %v8899_v31 = vadd.f32 %v8898_v63, %v8897_v38  ;;  %v10183_v11 = vmov 0.0|0.0   ;;  %v7640_v21 = vld [vmem:[%s12803_s8 + $0x18] sm:$0xff] }
0x18f0   :  { %9706 = vmatprep.subr.bf16.mxu0 %v10183_v11 }
0x18f1   :  { %v7433_v58 = vadd.f32 %v8896_v36, %v7392_v23  ;;  %v7395_v28 = vadd.f32 %v8877_v55, %v7354_v50  ;;  %v7639_v36 = vld [vmem:[%s12803_s8 + $0x10] sm:$0xff] }
0x18f2   :  { %v9710_v38 = vpack.c.bf16 %v7640_v21, %v7639_v36 }
0x18f3   :  { %v7436_v34 = vadd.f32 %v8899_v31, %v7395_v28 }
0x190b   :  { %v8916_v6 = vpop.f32.mrb[248].mxu0 }
0x190c   :  { %v8938_v60 = vpop.f32.mrb[248].mxu1  ;;  %v8917_v37 = vpop.f32.mrb[249].mxu0 }
0x190d   :  { %v8918_v2 = vadd.f32 %v8917_v37, %v8916_v6  ;;  %v8939_v42 = vpop.f32.mrb[249].mxu1  ;;  %v8919_v51 = vpop.f32.mrb[250].mxu0 }
0x190e   :  { %v8940_v4 = vadd.f32 %v8939_v42, %v8938_v60  ;;  %v8941_v14 = vpop.f32.mrb[250].mxu1  ;;  %v8920_v15 = vpop.f32.mrb[251].mxu0 }
0x190f   :  { %v7474_v41 = vadd.f32 %v8918_v2, %v7433_v58  ;;  %v8921_v13 = vadd.f32 %v8920_v15, %v8919_v51  ;;  %v8942_v17 = vpop.f32.mrb[251].mxu1 }
0x1910   :  { %v8943_v44 = vadd.f32 %v8942_v17, %v8941_v14 }
0x1911   :  { %v7515_v48 = vadd.f32 %v8940_v4, %v7474_v41  ;;  %v7477_v16 = vadd.f32 %v8921_v13, %v7436_v34  ;;  %v13006_v13 = vld [vmem:[#allocation5_spill] sm:$0xff] }
0x1913   :  { %v7518_v3 = vadd.f32 %v8943_v44, %v7477_v16 }
0x192b   :  { %v8960_v19 = vpop.f32.mrb[252].mxu0 }
0x192c   :  { %v8982_v33 = vpop.f32.mrb[252].mxu1  ;;  %v8961_v40 = vpop.f32.mrb[253].mxu0 }
0x192d   :  { %v8962_v1 = vadd.f32 %v8961_v40, %v8960_v19  ;;  %v8983_v30 = vpop.f32.mrb[253].mxu1  ;;  %v8963_v5 = vpop.f32.mrb[254].mxu0 }
0x192e   :  { %v8984_v7 = vadd.f32 %v8983_v30, %v8982_v33  ;;  %v8985_v18 = vpop.f32.mrb[254].mxu1  ;;  %v8964_v39 = vpop.f32.mrb[255].mxu0 }
0x192f   :  { %v7556_v45 = vadd.f32 %v8962_v1, %v7515_v48  ;;  %v8965_v32 = vadd.f32 %v8964_v39, %v8963_v5  ;;  %v8986_v12 = vpop.f32.mrb[255].mxu1 }
0x1930   :  { %v8987_v57 = vadd.f32 %v8986_v12, %v8985_v18 }
0x1931   :  { %v7597_v27 = vadd.f32 %v8984_v7, %v7556_v45  ;;  %v7559_v9 = vadd.f32 %v8965_v32, %v7518_v3 }
0x1933   :  { %v7600_v24 = vadd.f32 %v8987_v57, %v7559_v9  ;;  %v7603_v29 = vadd.f32 %v7597_v27, %v12238_v46 }
0x1935   :  { %v7605_v25 = vsel %vm430_vm1, %v7603_v29, 0.0  ;;  %v7604_v43 = vadd.f32 %v7600_v24, %v12241_v47  ;;  %v7637_v47 = vld [vmem:[%s12803_s8] sm:$0xff] }
0x1936   :  { %7606 = vadd.xlane.f32.xlu0 %v7605_v25  ;;  %v9707_v53 = vpack.c.bf16 %v7638_v35, %v7637_v47 }
0x1937   :  { %v7608_v49 = vsel %vm430_vm1, %v7604_v43, 0.0 }
0x1938   :  { %9708 = vmatpush3.bf16.msra.mxu0 %v9707_v53 }
0x1939   :  { %9709 = vmatprep.subr.bf16.mxu0 %v10183_v11 }
0x193a   :  { %7609 = vadd.xlane.f32.xlu0 %v7608_v49 }
0x193c   :  { %9711 = vmatpush3.bf16.msra.mxu0 %v9710_v38 }
0x193d   :  { %9712 = vmatprep.subr.bf16.mxu0 %v10183_v11 }
0x19c3   :  { %v7607_v54 = vpop.xlane.xlu0 %7606 }
0x19c4   :  { %v7611_v22 = vmul.f32 0.03125, %v7607_v54 }
0x19c6   :  { %v7613_v26 = vsub.f32 %v7603_v29, %v7611_v22 }
0x19c7   :  { %v7610_v20 = vpop.xlane.xlu0 %7609 }
0x19c8   :  { %v7612_v10 = vmul.f32 0.03125, %v7610_v20  ;;  %v7615_v52 = vmul.f32 %v7613_v26, %v7613_v26 }
0x19ca   :  { %v7614_v50 = vsub.f32 %v7604_v43, %v7612_v10  ;;  %v7617_v8 = vsel %vm430_vm1, %v7615_v52, 0.0 }
0x19cb   :  { %7618 = vadd.xlane.f32.xlu1 %v7617_v8 }
0x19cc   :  { %v7616_v62 = vmul.f32 %v7614_v50, %v7614_v50 }
0x19ce   :  { %v7620_v46 = vsel %vm430_vm1, %v7616_v62, 0.0 }
0x19cf   :  { %7621 = vadd.xlane.f32.xlu1 %v7620_v46 }
0x1a58   :  { %v7619_v56 = vpop.xlane.xlu1 %7618 }
0x1a59   :  { %v7623_v63 = vmul.f32 0.03125, %v7619_v56 }
0x1a5b   :  { %v7625_v23 = vadd.f32 1e-05, %v7623_v63 }
0x1a5c   :  { %v7622_v55 = vpop.xlane.xlu1 %7621 }
0x1a5d   :  { %9961 = vrsqrt.f32 %v7625_v23  ;;  %v7624_v31 = vmul.f32 0.03125, %v7622_v55 }
0x1a5f   :  { %v7626_v58 = vadd.f32 1e-05, %v7624_v31 }
0x1a61   :  { %9963 = vrsqrt.f32 %v7626_v58 }
0x1a67   :  { %v9962_v28 = vpop.eup %9961 }
0x1a68   :  { %v7629_v34 = vmul.f32 %v9962_v28, %v7613_v26 }
0x1a6a   :  { %v7631_v6 = vmul.f32 %v7629_v34, %v11663_v59 }
0x1a6b   :  { %v9964_v60 = vpop.eup %9963 }
0x1a6c   :  { %v7633_v37 = vadd.f32 %v7631_v6, %v11667_v61  ;;  %v7630_v2 = vmul.f32 %v9964_v60, %v7614_v50 }
0x1a6e   :  { %7635 = vst.msk [vmem:[#allocation2] sm:$0xff] %vm430_vm1, %v7633_v37  ;;  %v7632_v42 = vmul.f32 %v7630_v2, %v11663_v59  ;;  %9683 = vmatmul.mubr.msk.f32.vlgmr.msra.gmra.mrb[0].mxu0 %vm430_vm1, %v7633_v37  ;;  %9686 = vmatpush3.xpose.msk.msra.mxu1 %vm430_vm1, %v7633_v37 }
0x1a6f   :  { %9714 = vmatpush3.bf16.msra.mxu0 %v9707_v53  ;;  %9698 = vmatprep.mubr.msk.f32.mxu0 %vm10181_vm0, %v12942_v0 }
0x1a70   :  { %v7634_v51 = vadd.f32 %v7632_v42, %v11667_v61  ;;  %9715 = vmatprep.subr.bf16.mxu0 %v10183_v11  ;;  %9701 = vmatprep.subr.mxu1 %v12942_v0  ;;  %v13005_v61 = vlaneseq }
0x1a72   :  { %7636 = vst.msk [vmem:[#allocation2 + $0x8] sm:$0xff] %vm430_vm1, %v7634_v51  ;;  %v7644_v41 = vand.u32 127, %v13005_v61 }
0x1a73   :  { %9717 = vmatpush3.bf16.msra.mxu0 %v9710_v38 }
0x1a74   :  { %vm7645_vm4 = vcmp.ge.s32.totalorder %v13006_v13, %v7644_v41 }
0x1a76   :  { %9699 = vmatmul.mubr.msk.f32.vlgmr.msra.gmra.mrb[2].mxu0 %vm430_vm1, %v7634_v51 }
0x1b41   :  { %v7715_v4 = vpop.f32.mrb[0].mxu0 }
0x1b42   :  { %v9684_v59 = vpop.f32.mrb[1].mxu0  ;;  %9688 = vmatmul.mubr.msk.f32.vlgmr.msra.gmra.mrb[0].mxu1 %vm430_vm1, %v7715_v4 }
0x1b43   :  { %9702 = vmatpush3.xpose.msk.msra.mxu1 %vm430_vm1, %v7634_v51  ;;  %9703 = vmatprep.mubr.msk.f32.mxu1 %vm10181_vm0, %v12942_v0 }
0x1b49   :  { %v7922_v14 = vpop.f32.mrb[2].mxu0 }
0x1b4a   :  { %v9700_v15 = vpop.f32.mrb[3].mxu0  ;;  %9704 = vmatmul.mubr.msk.f32.vlgmr.msra.gmra.mrb[2].mxu1 %vm430_vm1, %v7922_v14 }
0x1c15   :  { %v7788_v17 = vpop.f32.mrb[0].mxu1 }
0x1c16   :  { %v7792_v44 = vsel %vm7645_vm4, -inf, %v7788_v17  ;;  %v9689_v48 = vpop.f32.mrb[1].mxu1 }
0x1c17   :  { %v7793_v16 = vsel %vm1106_vm2, %v7792_v44, -inf }
0x1c18   :  { %7794 = vmax.xlane.f32.xlu0 %v7793_v16 }
0x1c1d   :  { %v7995_v3 = vpop.f32.mrb[2].mxu1 }
0x1c1e   :  { %v7999_v19 = vsel %vm7645_vm4, -inf, %v7995_v3  ;;  %v9705_v33 = vpop.f32.mrb[3].mxu1 }
0x1c1f   :  { %v8000_v40 = vsel %vm1106_vm2, %v7999_v19, -inf }
0x1c20   :  { %8001 = vmax.xlane.f32.xlu0 %v8000_v40 }
0x1ca5   :  { %v7795_v0 = vpop.xlane.xlu0 %7794 }
0x1ca6   :  { %v7796_v1 = vrot.slane %v7795_v0, 4 }
0x1ca8   :  { %v7797_v30 = vmax.f32 %v7795_v0, %v7796_v1 }
0x1caa   :  { %v7798_v5 = vrot.slane %v7797_v30, 2 }
0x1cac   :  { %v7799_v7 = vmax.f32 %v7797_v30, %v7798_v5 }
0x1cad   :  { %v8002_v9 = vpop.xlane.xlu0 %8001 }
0x1cae   :  { %v7800_v18 = vrot.slane %v7799_v7, 1  ;;  %v8003_v24 = vrot.slane %v8002_v9, 4 }
0x1cb0   :  { %v7801_v39 = vmax.f32 %v7799_v7, %v7800_v18  ;;  %v8004_v29 = vmax.f32 %v8002_v9, %v8003_v24 }
0x1cb2   :  { %9718 = vpush %v7801_v39  ;;  %v8005_v25 = vrot.slane %v8004_v29, 2 }
0x1cb4   :  { %v8006_v22 = vmax.f32 %v8004_v29, %v8005_v25 }
0x1cb6   :  { %v8007_v10 = vrot.slane %v8006_v22, 1 }
0x1cb8   :  { %v8008_v8 = vmax.f32 %v8006_v22, %v8007_v10 }
0x1ce3   :  { %s9719_s8 = spop %9718 }
0x1ce4   :  { %v7803_v45 = vstv %s9719_s8 }
0x1ce5   :  { %v7804_v32 = vsub.f32 %v7792_v44, %v7803_v45 }
0x1ce7   :  { %v7805_v12 = vmul.f32 1.442695, %v7804_v32 }
0x1ce9   :  { %9965 = vpow2.f32 %v7805_v12 }
0x1cf3   :  { %v9966_v57 = vpop.eup %9965 }
0x1cf4   :  { %v7807_v27 = vsel %vm1106_vm2, %v9966_v57, 0.0 }
0x1cf5   :  { %7808 = vadd.xlane.f32.xlu1 %v7807_v27 }
0x1d82   :  { %v7809_v43 = vpop.xlane.xlu1 %7808 }
0x1d83   :  { %v7810_v49 = vrot.slane %v7809_v43, 4 }
0x1d85   :  { %v7811_v54 = vadd.f32 %v7810_v49, %v7809_v43 }
0x1d87   :  { %v7812_v26 = vrot.slane %v7811_v54, 2 }
0x1d89   :  { %v7813_v20 = vadd.f32 %v7812_v26, %v7811_v54 }
0x1d8b   :  { %v7814_v52 = vrot.slane %v7813_v20, 1 }
0x1d8d   :  { %v7815_v50 = vadd.f32 %v7814_v52, %v7813_v20 }
0x1d8f   :  { %9720 = vpush %v7815_v50 }
0x1d90   :  { %9722 = vpush %v8008_v8 }
0x1dc0   :  { %s9721_s21 = spop %9720 }
0x1dc1   :  { %v7817_v62 = vstv %s9721_s21  ;;  %s9723_s22 = spop %9722 }
0x1dc2   :  { %9967 = vrcp.f32 %v7817_v62  ;;  %v8010_v46 = vstv %s9723_s22 }
0x1dc3   :  { %v8011_v47 = vsub.f32 %v7999_v19, %v8010_v46 }
0x1dc5   :  { %v8012_v35 = vmul.f32 1.442695, %v8011_v47 }
0x1dc7   :  { %9969 = vpow2.f32 %v8012_v35 }
0x1dcc   :  { %v9968_v53 = vpop.eup %9967 }
0x1dcd   :  { %v7819_v11 = vmul.f32 %v9968_v53, %v9966_v57 }
0x1dcf   :  { %7820 = vxpose.xlu0.b32.start.end [1/1] (short) (narrow) %v7819_v11, 8 }
0x1dd1   :  { %v9970_v36 = vpop.eup %9969 }
0x1dd2   :  { %v8014_v21 = vsel %vm1106_vm2, %v9970_v36, 0.0 }
0x1dd3   :  { %8015 = vadd.xlane.f32.xlu1 %v8014_v21 }
0x1e4f   :  { %v7836_v38 = vpop.trf.xlu0 }
0x1e50   :  { %v7852_v56 = vadd.f32 %v7836_v38, %v7819_v11 }
0x1e52   :  { %8060 = vst.msk [vmem:[%s12805_s10] sm:$0xff] %vm1106_vm2, %v7852_v56 }
0x1e60   :  { %v8016_v63 = vpop.xlane.xlu1 %8015 }
0x1e61   :  { %v8017_v23 = vrot.slane %v8016_v63, 4 }
0x1e63   :  { %v8018_v55 = vadd.f32 %v8017_v23, %v8016_v63 }
0x1e65   :  { %v8019_v31 = vrot.slane %v8018_v55, 2 }
0x1e67   :  { %v8020_v58 = vadd.f32 %v8019_v31, %v8018_v55 }
0x1e69   :  { %v8021_v28 = vrot.slane %v8020_v58, 1 }
0x1e6b   :  { %v8022_v34 = vadd.f32 %v8021_v28, %v8020_v58 }
0x1e6d   :  { %9724 = vpush %v8022_v34 }
0x1e9e   :  { %s9725_s25 = spop %9724 }
0x1e9f   :  { %v8024_v6 = vstv %s9725_s25 }
0x1ea0   :  { %9971 = vrcp.f32 %v8024_v6 }
0x1eaa   :  { %v9972_v60 = vpop.eup %9971 }
0x1eab   :  { %v8026_v37 = vmul.f32 %v9972_v60, %v9970_v36 }
0x1ead   :  { %8027 = vxpose.xlu1.b32.start.end [1/1] (short) (narrow) %v8026_v37, 8 }
0x1eae   :  { %10167 = shalt.err (!%p10164_p4)
}
0x1eaf   :  { %s10168_s1 = scalar_lea.hbm %s12804_s9, 256 }
0x1eb0   :  { %p10169_p5 = scmp.ne.s32.totalorder %s12804_s9, %s10168_s1  ;;  %p10172_p6 = scmp.lt.u32.totalorder %s10168_s1, %s12804_s9 }
0x1eb2   :  { %p10174_p7 = pnand %p10172_p6, %p10169_p5 }
0x1eb4   :  { %10177 = shalt.err (!%p10174_p7)
}
0x1eb5   :  { %s10185_s5 = smov 128   ;;  %s10186_s0 = smov 8  }
0x1eb6   :  { %8073 = dma.vmem_to_hbm [thread:$0]  %s8068_s27, 256, %s12804_s9, [#allocation3], %s10185_s5, %s10185_s5, %s10186_s0  }
0x1f2d   :  { %v8043_v2 = vpop.trf.xlu1 }
0x1f2e   :  { %v8059_v42 = vadd.f32 %v8043_v2, %v8026_v37 }
0x1f30   :  { %8061 = vst.msk [vmem:[%s12805_s10 + $0x8] sm:$0xff] %vm1106_vm2, %v8059_v42 }
0x1f31   :  { %10178 = dma.done.wait [#allocation3], 256  }
0x1f32   :  { %10179 = vsyncadd [#allocation3], 4294967040 }
0x1f33   :  { %8081 = vsyncpa [#allocation3], 1 }

</bundles_post_ra>
